<compile_context>
chip_gen: v7x
topology: tpu7x:2x2x1
jax: 0.10.0
libtpu: 0.0.40
codegen_flags: <defaults>
</compile_context>

<pallas_src>
import functools
import math

import jax
import jax.numpy as jnp
from jax.experimental import pallas as pl
from jax.experimental.pallas import tpu as pltpu


def _round_up(x, m):
    return ((x + m - 1) // m) * m


def _mhsa_kernel(xq_ref, xf_ref, wq_ref, wkv_ref, e_head_ref, e_exp_ref, o_ref,
                 *scratch, nh, dim_k, dim_v, n, bt, pos, mm_dtype,
                 num_row_chunks, row_chunk):
    # ---- Projections: full-width MXU matmuls over the whole batch tile. ----
    # (x and weights are already in mm_dtype; norm is folded into wq.)
    q0 = jnp.dot(xq_ref[...], wq_ref[...],
                 preferred_element_type=jnp.float32)          # (bt, dim_k)
    kv = jnp.dot(xf_ref[...], wkv_ref[...],
                 preferred_element_type=jnp.float32)          # (bt*n, dim_k+dim_v)
    k = kv[:, :dim_k]                                         # (bt*n, dim_k)
    v = kv[:, dim_k:]                                         # (bt*n, dim_v)

    # ---- Per-head scores via one block-diagonal "ones" MXU matmul. ---------
    # Keep the query broadcast 3-D (no materialized q_rep copy).
    kq = (k.reshape(bt, n, dim_k) * q0[:, None, :]).reshape(bt * n, dim_k)
    scores = jnp.dot(kq.astype(mm_dtype), e_head_ref[...],
                     preferred_element_type=jnp.float32)      # (bt*n, nh)

    # ---- Lane-dense layout for selection/softmax: (bt*nh, n), n in lanes. --
    s_t = jnp.swapaxes(scores.reshape(bt, n, nh), 1, 2).reshape(bt * nh, n)

    # ---- k-th largest threshold (ties included) via counting compare. ------
    # thr[r] = min{ s[r,i] : #{j : s[r,j] > s[r,i]} <= pos }  ==  value at
    # descending-sort position `pos` (matches torch argsort + take_along_dim).
    pos_f = float(pos)
    if num_row_chunks == 1:
        gt = (s_t[:, None, :] > s_t[:, :, None]).astype(jnp.float32)
        counts = jnp.sum(gt, axis=-1)                                   # (R, n)
        thr = jnp.min(jnp.where(counts <= pos_f, s_t, jnp.inf),
                      axis=-1, keepdims=True)                           # (R, 1)
    else:
        # Chunk the quadratic compare over rows so its VMEM stays bounded.
        s_scr, thr_scr = scratch
        s_scr[...] = s_t

        @pl.loop(0, num_row_chunks)
        def _(c):
            r0 = pl.multiple_of(c * row_chunk, row_chunk)
            s_rows = s_scr[pl.ds(r0, row_chunk), :]                     # (cr, n)
            gt = (s_rows[:, None, :] > s_rows[:, :, None]).astype(jnp.float32)
            counts = jnp.sum(gt, axis=-1)                               # (cr, n)
            thr_scr[pl.ds(r0, row_chunk), :] = jnp.min(
                jnp.where(counts <= pos_f, s_rows, jnp.inf),
                axis=-1, keepdims=True)

        thr = thr_scr[...]                                              # (R, 1)

    # ---- Thresholded softmax over the full length-n axis (lane reduces). ---
    rel = jnp.where(s_t >= thr, s_t, 0.0)
    m = jnp.max(rel, axis=-1, keepdims=True)
    e = jnp.exp(rel - m)
    p = e * pl.reciprocal(jnp.sum(e, axis=-1, keepdims=True), approx=True)

    # ---- Apply to V: expand head weights onto dim_v lanes (MXU), reduce. ---
    p_bn = jnp.swapaxes(p.reshape(bt, nh, n), 1, 2).reshape(bt * n, nh)
    p_exp = jnp.dot(p_bn.astype(mm_dtype), e_exp_ref[...],
                    preferred_element_type=jnp.float32)                 # (bt*n, dim_v)
    att = jnp.sum((p_exp * v).reshape(bt, n, dim_v), axis=1)            # (bt, dim_v)
    o_ref[...] = att.astype(o_ref.dtype)


def multi_head_self_attention(x, wq, wk, wv, *, num_heads, select_rate,
                              block_batch=None, matmul_dtype=jnp.float32,
                              compare_vmem_bytes=8 * 1024 * 1024):
    batch, n, dim_in = x.shape
    dim_k = wq.shape[1]
    dim_v = wv.shape[1]
    assert dim_k % num_heads == 0 and dim_v % num_heads == 0
    nh = num_heads
    dk = dim_k // nh
    pos = int(select_rate * n - 1)
    assert 0 <= pos < n, f"select_rate*n-1 must land in [0, n); got {pos}"
    norm = 1.0 / math.sqrt(dk)
    mm_dtype = jnp.dtype(matmul_dtype)
    itemsize = mm_dtype.itemsize

    # Generation-aware VMEM budget (v5e/v6e: 128 MiB, v7x: 64 MiB per core).
    try:
        phys_vmem = int(pltpu.get_tpu_info().vmem_capacity_bytes)
    except Exception:
        phys_vmem = 64 * 1024 * 1024  # conservative default (v7x)

    # ---- Batch tile: big enough to fill the MXU / amortize per-step cost, --
    # capped by VMEM, and split so >=2 parallel grid steps exist (v7x 2 TCs).
    if block_batch is None:
        per_row = (n * (2 * dim_in * itemsize + (dim_k + dim_v) * 4
                        + dim_k * 4 + dim_v * 4 + 8 * nh * 4)
                   + 2 * (dim_in * itemsize + dim_v * 4))
        block_batch = max(8, min(256, (phys_vmem // 3) // max(per_row, 1)))
        block_batch = (block_batch // 8) * 8
        if batch >= 16:
            block_batch = min(block_batch, _round_up(-(-batch // 2), 8))
        else:
            block_batch = min(block_batch, _round_up(batch, 8))
    assert block_batch > 0 and block_batch % 8 == 0

    bpad = _round_up(batch, block_batch)
    if bpad != batch:
        x = jnp.pad(x, ((0, bpad - batch), (0, 0), (0, 0)))
    grid = (bpad // block_batch,)

    # ---- Wrapper-side (free) layout + weight prep. --------------------------
    x_q = x[:, 0, :].astype(mm_dtype)                      # (bpad, dim_in)
    x_flat = x.reshape(bpad * n, dim_in).astype(mm_dtype)  # (bpad*n, dim_in)
    wq_s = (wq * norm).astype(mm_dtype)                    # norm folded into wq
    wkv = jnp.concatenate([wk, wv], axis=1).astype(mm_dtype)
    eye_h = jnp.eye(nh, dtype=mm_dtype)
    e_head = jnp.repeat(eye_h, dim_k // nh, axis=0)        # (dim_k, nh)
    e_exp = jnp.repeat(eye_h, dim_v // nh, axis=1)         # (nh, dim_v)

    # ---- Bound the O(n^2) counting compare by row-chunking (bt*nh, n). -----
    rows = block_batch * nh
    full_cmp_bytes = rows * n * n * 4
    if full_cmp_bytes <= compare_vmem_bytes:
        num_row_chunks, row_chunk = 1, rows
    else:
        rows8 = rows // 8
        want8 = max(1, compare_vmem_bytes // (8 * n * n * 4))
        d = min(want8, rows8)
        while rows8 % d:
            d -= 1
        row_chunk = 8 * d
        num_row_chunks = rows // row_chunk
    scratch_shapes = []
    if num_row_chunks > 1:
        scratch_shapes = [pltpu.VMEM((rows, n), jnp.float32),
                          pltpu.VMEM((rows, 1), jnp.float32)]

    # ---- Scoped-VMEM limit from the computed working set (with headroom). --
    w_bytes = (dim_in * dim_k + dim_in * (dim_k + dim_v)
               + dim_k * nh + nh * dim_v) * itemsize
    act_bytes = 2 * (block_batch * dim_in + block_batch * n * dim_in) * itemsize
    out_bytes = 2 * block_batch * dim_v * 4
    interm_bytes = (block_batch * n * (2 * dim_k + 2 * dim_v) * 4
                    + 8 * rows * n * 4 + 2 * row_chunk * n * n * 4)
    scratch_bytes = (rows * n + rows * 128) * 4 if num_row_chunks > 1 else 0
    est = 2 * w_bytes + act_bytes + out_bytes + interm_bytes + scratch_bytes
    vmem_limit = int(min(0.9 * phys_vmem, max(48 * 1024 * 1024, 2 * est)))

    kernel = functools.partial(
        _mhsa_kernel, nh=nh, dim_k=dim_k, dim_v=dim_v, n=n, bt=block_batch,
        pos=pos, mm_dtype=mm_dtype, num_row_chunks=num_row_chunks,
        row_chunk=row_chunk)

    def _run(single_buffer_weights):
        def const_spec(shape):
            index_map = lambda b, _s=shape: (0,) * len(_s)
            if single_buffer_weights:
                # Constant-index weights: fetched once, no need to double-buffer.
                return pl.BlockSpec(shape, index_map, pipeline_mode=pl.Buffered(1))
            return pl.BlockSpec(shape, index_map)

        grid_spec = pltpu.PrefetchScalarGridSpec(
            num_scalar_prefetch=0,
            grid=grid,
            in_specs=[
                pl.BlockSpec((block_batch, dim_in), lambda b: (b, 0)),      # x_q
                pl.BlockSpec((block_batch * n, dim_in), lambda b: (b, 0)),  # x_flat
                const_spec((dim_in, dim_k)),                                # wq (scaled)
                const_spec((dim_in, dim_k + dim_v)),                        # wkv
                const_spec((dim_k, nh)),                                    # e_head
                const_spec((nh, dim_v)),                                    # e_exp
            ],
            out_specs=pl.BlockSpec((block_batch, dim_v), lambda b: (b, 0)),
            scratch_shapes=scratch_shapes,
        )
        return pl.pallas_call(
            kernel,
            out_shape=jax.ShapeDtypeStruct((bpad, dim_v), jnp.float32),
            grid_spec=grid_spec,
            compiler_params=pltpu.CompilerParams(
                dimension_semantics=("parallel",),
                vmem_limit_bytes=vmem_limit),
        )(x_q, x_flat, wq_s, wkv, e_head, e_exp)

    single_buf = hasattr(pl, "Buffered")
    try:
        out = _run(single_buf)
    except Exception:
        if not single_buf:
            raise
        # Fallback for jax versions without BlockSpec pipeline_mode support.
        out = _run(False)
    return out[:batch]                                                  # (batch, dim_v)


def _reference(x, wq, wk, wv, *, num_heads, select_rate):
    """Pure-JAX mirror of the PyTorch forward pass (for correctness check)."""
    batch, n, dim_in = x.shape
    dim_k = wq.shape[1]
    dim_v = wv.shape[1]
    nh = num_heads
    dk = dim_k // nh
    dv = dim_v // nh
    norm = 1.0 / math.sqrt(dk)

    q = (x @ wq).reshape(batch, n, nh, dk).transpose(0, 2, 1, 3)
    k = (x @ wk).reshape(batch, n, nh, dk).transpose(0, 2, 1, 3)
    v = (x @ wv).reshape(batch, n, nh, dv).transpose(0, 2, 1, 3)
    dist = jnp.einsum('bhqd,bhkd->bhqk', q, k) * norm              # (b, nh, n, n)
    temp = dist[:, :, 0, :][:, :, None, :]                         # (b, nh, 1, n)
    pos = int(select_rate * n - 1)
    thr = -jnp.sort(-temp, axis=-1)[..., pos:pos + 1]              # (b, nh, 1, 1)
    rel = jnp.where(temp >= thr, temp, 0.0)
    rel = jax.nn.softmax(rel, axis=-1)
    att = jnp.matmul(rel, v)                                       # (b, nh, 1, dv)
    att = att.transpose(0, 2, 1, 3).reshape(batch, 1, dim_v)
    return att[:, 0]


if __name__ == "__main__":
    batch, n, dim_in = 2, 8, 32
    dim_k, dim_v, num_heads = 64, 64, 8
    select_rate = 0.5

    key = jax.random.PRNGKey(0)
    kx, kq, kk, kv = jax.random.split(key, 4)
    x = jax.random.normal(kx, (batch, n, dim_in), dtype=jnp.float32)
    bound = 1.0 / math.sqrt(dim_in)                                # nn.Linear-style init
    wq = jax.random.uniform(kq, (dim_in, dim_k), jnp.float32, -bound, bound)
    wk = jax.random.uniform(kk, (dim_in, dim_k), jnp.float32, -bound, bound)
    wv = jax.random.uniform(kv, (dim_in, dim_v), jnp.float32, -bound, bound)

    # Small case (single grid step, un-chunked compare path).
    out = multi_head_self_attention(x, wq, wk, wv,
                                    num_heads=num_heads, select_rate=select_rate)
    out = jax.block_until_ready(out)
    ref = _reference(x, wq, wk, wv, num_heads=num_heads, select_rate=select_rate)
    assert out.shape == (batch, dim_v)
    if not jnp.allclose(out, ref, rtol=3e-3, atol=3e-3):
        raise AssertionError(
            f"mismatch (small): max abs err {jnp.max(jnp.abs(out - ref))}")

    # Larger batch: exercises batch tiling, grid > 1 and padding.
    batch2 = 80
    kx2 = jax.random.split(key, 5)[4]
    x2 = jax.random.normal(kx2, (batch2, n, dim_in), dtype=jnp.float32)
    out2 = jax.block_until_ready(
        multi_head_self_attention(x2, wq, wk, wv,
                                  num_heads=num_heads, select_rate=select_rate))
    ref2 = _reference(x2, wq, wk, wv, num_heads=num_heads, select_rate=select_rate)
    assert out2.shape == (batch2, dim_v)
    if not jnp.allclose(out2, ref2, rtol=3e-3, atol=3e-3):
        raise AssertionError(
            f"mismatch (tiled): max abs err {jnp.max(jnp.abs(out2 - ref2))}")

    # Same data with a tiny compare budget: forces the row-chunked
    # (VMEM-bounded) threshold loop to run and checks it matches.
    out3 = jax.block_until_ready(
        multi_head_self_attention(x2, wq, wk, wv,
                                  num_heads=num_heads, select_rate=select_rate,
                                  compare_vmem_bytes=4096))
    if not jnp.allclose(out3, ref2, rtol=3e-3, atol=3e-3):
        raise AssertionError(
            f"mismatch (chunked): max abs err {jnp.max(jnp.abs(out3 - ref2))}")

    print("KERNEL_OK")
</pallas_src>

<mosaic_0001>
module attributes {stable_mosaic.version = 11 : i64} {
  func.func @_mhsa_kernel(%arg0: i32, %arg1: memref<8x32xf32, #tpu.memory_space<vmem>>, %arg2: memref<64x32xf32, #tpu.memory_space<vmem>>, %arg3: memref<32x64xf32, #tpu.memory_space<vmem>>, %arg4: memref<32x128xf32, #tpu.memory_space<vmem>>, %arg5: memref<64x8xf32, #tpu.memory_space<vmem>>, %arg6: memref<8x64xf32, #tpu.memory_space<vmem>>, %arg7: memref<8x64xf32, #tpu.memory_space<vmem>>) attributes {dimension_semantics = [#tpu.dimension_semantics<parallel>], iteration_bounds = array<i64: 1>, scalar_prefetch = 0 : i64, scratch_operands = 0 : i64, tpu.core_type = #tpu.core_type<tc>, window_params = [{transform_indices = @transform_0, window_bounds = array<i64: 8, 32>}, {transform_indices = @transform_1, window_bounds = array<i64: 64, 32>}, {pipeline_mode = #tpu.pipeline_mode<synchronous>, transform_indices = @transform_2, window_bounds = array<i64: 32, 64>}, {pipeline_mode = #tpu.pipeline_mode<synchronous>, transform_indices = @transform_3, window_bounds = array<i64: 32, 128>}, {pipeline_mode = #tpu.pipeline_mode<synchronous>, transform_indices = @transform_4, window_bounds = array<i64: 64, 8>}, {pipeline_mode = #tpu.pipeline_mode<synchronous>, transform_indices = @transform_5, window_bounds = array<i64: 8, 64>}, {transform_indices = @transform_6, window_bounds = array<i64: 8, 64>}]} {
    %c0 = arith.constant 0 : index
    %c0_0 = arith.constant 0 : index
    %0 = vector.load %arg1[%c0, %c0_0] : memref<8x32xf32, #tpu.memory_space<vmem>>, vector<8x32xf32>
    %c0_1 = arith.constant 0 : index
    %c0_2 = arith.constant 0 : index
    %1 = vector.load %arg3[%c0_1, %c0_2] : memref<32x64xf32, #tpu.memory_space<vmem>>, vector<32x64xf32>
    %cst = arith.constant dense<0.000000e+00> : vector<8x64xf32>
    %2 = tpu.matmul %0, %1, %cst {dimension_numbers = #tpu.dot_dimension_numbers<[1], [0], [0], [1], [0, 0, 1, 1], [], []>} : vector<8x32xf32>, vector<32x64xf32>, vector<8x64xf32> -> vector<8x64xf32>
    %c0_3 = arith.constant 0 : index
    %c0_4 = arith.constant 0 : index
    %3 = vector.load %arg2[%c0_3, %c0_4] : memref<64x32xf32, #tpu.memory_space<vmem>>, vector<64x32xf32>
    %c0_5 = arith.constant 0 : index
    %c0_6 = arith.constant 0 : index
    %4 = vector.load %arg4[%c0_5, %c0_6] : memref<32x128xf32, #tpu.memory_space<vmem>>, vector<32x128xf32>
    %cst_7 = arith.constant dense<0.000000e+00> : vector<64x128xf32>
    %5 = tpu.matmul %3, %4, %cst_7 {dimension_numbers = #tpu.dot_dimension_numbers<[1], [0], [0], [1], [0, 0, 1, 1], [], []>} : vector<64x32xf32>, vector<32x128xf32>, vector<64x128xf32> -> vector<64x128xf32>
    %6 = vector.extract_strided_slice %5 {offsets = [0, 0], sizes = [64, 64], strides = [1, 1]} : vector<64x128xf32> to vector<64x64xf32>
    %7 = vector.extract_strided_slice %5 {offsets = [0, 64], sizes = [64, 64], strides = [1, 1]} : vector<64x128xf32> to vector<64x64xf32>
    %8 = vector.shape_cast %6 : vector<64x64xf32> to vector<8x8x64xf32>
    %9 = vector.shape_cast %2 : vector<8x64xf32> to vector<8x1x64xf32>
    %10 = vector.broadcast %9 : vector<8x1x64xf32> to vector<8x8x64xf32>
    %11 = arith.mulf %8, %10 : vector<8x8x64xf32>
    %12 = vector.shape_cast %11 : vector<8x8x64xf32> to vector<64x64xf32>
    %c0_8 = arith.constant 0 : index
    %c0_9 = arith.constant 0 : index
    %13 = vector.load %arg5[%c0_8, %c0_9] : memref<64x8xf32, #tpu.memory_space<vmem>>, vector<64x8xf32>
    %cst_10 = arith.constant dense<0.000000e+00> : vector<64x8xf32>
    %14 = tpu.matmul %12, %13, %cst_10 {dimension_numbers = #tpu.dot_dimension_numbers<[1], [0], [0], [1], [0, 0, 1, 1], [], []>} : vector<64x64xf32>, vector<64x8xf32>, vector<64x8xf32> -> vector<64x8xf32>
    %15 = vector.shape_cast %14 : vector<64x8xf32> to vector<8x8x8xf32>
    %16 = tpu.transpose %15, [0, 2, 1] : vector<8x8x8xf32> -> vector<8x8x8xf32>
    %17 = vector.shape_cast %16 : vector<8x8x8xf32> to vector<64x8xf32>
    %18 = vector.shape_cast %17 : vector<64x8xf32> to vector<64x1x8xf32>
    %19 = vector.shape_cast %17 : vector<64x8xf32> to vector<64x8x1xf32>
    %20 = vector.broadcast %18 : vector<64x1x8xf32> to vector<64x8x8xf32>
    %21 = vector.broadcast %19 : vector<64x8x1xf32> to vector<64x8x8xf32>
    %22 = arith.cmpf ogt, %20, %21 : vector<64x8x8xf32>
    %23 = arith.extui %22 : vector<64x8x8xi1> to vector<64x8x8xi32>
    %24 = arith.sitofp %23 : vector<64x8x8xi32> to vector<64x8x8xf32>
    %cst_11 = arith.constant dense<0.000000e+00> : vector<64x8xf32>
    %25 = vector.multi_reduction <add>, %24, %cst_11 [2] : vector<64x8x8xf32> to vector<64x8xf32>
    %cst_12 = arith.constant 3.000000e+00 : f32
    %26 = vector.broadcast %cst_12 : f32 to vector<64x8xf32>
    %27 = arith.cmpf ole, %25, %26 : vector<64x8xf32>
    %cst_13 = arith.constant 0x7F800000 : f32
    %28 = vector.broadcast %cst_13 : f32 to vector<64x8xf32>
    %29 = arith.select %27, %17, %28 : vector<64x8xi1>, vector<64x8xf32>
    %cst_14 = arith.constant dense<0x7F800000> : vector<64xf32>
    %30 = vector.multi_reduction <minimumf>, %29, %cst_14 [1] : vector<64x8xf32> to vector<64xf32>
    %31 = vector.shape_cast %30 : vector<64xf32> to vector<64x1xf32>
    %32 = vector.broadcast %31 : vector<64x1xf32> to vector<64x8xf32>
    %33 = arith.cmpf oge, %17, %32 : vector<64x8xf32>
    %cst_15 = arith.constant 0.000000e+00 : f32
    %34 = vector.broadcast %cst_15 : f32 to vector<64x8xf32>
    %35 = arith.select %33, %17, %34 : vector<64x8xi1>, vector<64x8xf32>
    %cst_16 = arith.constant dense<0xFF800000> : vector<64xf32>
    %36 = vector.multi_reduction <maximumf>, %35, %cst_16 [1] : vector<64x8xf32> to vector<64xf32>
    %37 = vector.shape_cast %36 : vector<64xf32> to vector<64x1xf32>
    %38 = vector.broadcast %37 : vector<64x1xf32> to vector<64x8xf32>
    %39 = arith.subf %35, %38 : vector<64x8xf32>
    %40 = math.exp %39 : vector<64x8xf32>
    %cst_17 = arith.constant dense<0.000000e+00> : vector<64xf32>
    %41 = vector.multi_reduction <add>, %40, %cst_17 [1] : vector<64x8xf32> to vector<64xf32>
    %42 = vector.shape_cast %41 : vector<64xf32> to vector<64x1xf32>
    %43 = tpu.reciprocal %42 {approx = true} : vector<64x1xf32> -> vector<64x1xf32>
    %44 = vector.broadcast %43 : vector<64x1xf32> to vector<64x8xf32>
    %45 = arith.mulf %40, %44 : vector<64x8xf32>
    %46 = vector.shape_cast %45 : vector<64x8xf32> to vector<8x8x8xf32>
    %47 = tpu.transpose %46, [0, 2, 1] : vector<8x8x8xf32> -> vector<8x8x8xf32>
    %48 = vector.shape_cast %47 : vector<8x8x8xf32> to vector<64x8xf32>
    %c0_18 = arith.constant 0 : index
    %c0_19 = arith.constant 0 : index
    %49 = vector.load %arg6[%c0_18, %c0_19] : memref<8x64xf32, #tpu.memory_space<vmem>>, vector<8x64xf32>
    %cst_20 = arith.constant dense<0.000000e+00> : vector<64x64xf32>
    %50 = tpu.matmul %48, %49, %cst_20 {dimension_numbers = #tpu.dot_dimension_numbers<[1], [0], [0], [1], [0, 0, 1, 1], [], []>} : vector<64x8xf32>, vector<8x64xf32>, vector<64x64xf32> -> vector<64x64xf32>
    %51 = arith.mulf %50, %7 : vector<64x64xf32>
    %52 = vector.shape_cast %51 : vector<64x64xf32> to vector<8x8x64xf32>
    %cst_21 = arith.constant dense<0.000000e+00> : vector<8x64xf32>
    %53 = vector.multi_reduction <add>, %52, %cst_21 [1] : vector<8x8x64xf32> to vector<8x64xf32>
    %c0_22 = arith.constant 0 : index
    %c0_23 = arith.constant 0 : index
    %54 = vector.load %arg7[%c0_22, %c0_23] : memref<8x64xf32, #tpu.memory_space<vmem>>, vector<8x64xf32>
    tpu.vector_store %arg7[%c0_22, %c0_23], %53 {strides = array<i32>} : memref<8x64xf32, #tpu.memory_space<vmem>>, vector<8x64xf32>,
    return
  }
  func.func @transform_0(%arg0: i32) -> (i32, i32) {
    %c0_i32 = arith.constant 0 : i32
    %c0_i32_0 = arith.constant 0 : i32
    return %arg0, %c0_i32 : i32, i32
  }
  func.func @transform_1(%arg0: i32) -> (i32, i32) {
    %c0_i32 = arith.constant 0 : i32
    %c0_i32_0 = arith.constant 0 : i32
    return %arg0, %c0_i32 : i32, i32
  }
  func.func @transform_2(%arg0: i32) -> (i32, i32) {
    %c0_i32 = arith.constant 0 : i32
    %c0_i32_0 = arith.constant 0 : i32
    %c0_i32_1 = arith.constant 0 : i32
    return %c0_i32, %c0_i32_0 : i32, i32
  }
  func.func @transform_3(%arg0: i32) -> (i32, i32) {
    %c0_i32 = arith.constant 0 : i32
    %c0_i32_0 = arith.constant 0 : i32
    %c0_i32_1 = arith.constant 0 : i32
    return %c0_i32, %c0_i32_0 : i32, i32
  }
  func.func @transform_4(%arg0: i32) -> (i32, i32) {
    %c0_i32 = arith.constant 0 : i32
    %c0_i32_0 = arith.constant 0 : i32
    %c0_i32_1 = arith.constant 0 : i32
    return %c0_i32, %c0_i32_0 : i32, i32
  }
  func.func @transform_5(%arg0: i32) -> (i32, i32) {
    %c0_i32 = arith.constant 0 : i32
    %c0_i32_0 = arith.constant 0 : i32
    %c0_i32_1 = arith.constant 0 : i32
    return %c0_i32, %c0_i32_0 : i32, i32
  }
  func.func @transform_6(%arg0: i32) -> (i32, i32) {
    %c0_i32 = arith.constant 0 : i32
    %c0_i32_0 = arith.constant 0 : i32
    return %arg0, %c0_i32 : i32, i32
  }
}

module attributes {stable_mosaic.version = 11 : i64} {
  func.func @_mhsa_kernel(%arg0: i32, %arg1: memref<8x32xf32, #tpu.memory_space<vmem>>, %arg2: memref<64x32xf32, #tpu.memory_space<vmem>>, %arg3: memref<32x64xf32, #tpu.memory_space<vmem>>, %arg4: memref<32x128xf32, #tpu.memory_space<vmem>>, %arg5: memref<64x8xf32, #tpu.memory_space<vmem>>, %arg6: memref<8x64xf32, #tpu.memory_space<vmem>>, %arg7: memref<8x64xf32, #tpu.memory_space<vmem>>) attributes {dimension_semantics = [#tpu.dimension_semantics<parallel>], iteration_bounds = array<i64: 1>, scalar_prefetch = 0 : i64, scratch_operands = 0 : i64, tpu.core_type = #tpu.core_type<tc>, window_params = [{transform_indices = @transform_0, window_bounds = array<i64: 8, 32>}, {transform_indices = @transform_1, window_bounds = array<i64: 64, 32>}, {pipeline_mode = #tpu.pipeline_mode<synchronous>, transform_indices = @transform_2, window_bounds = array<i64: 32, 64>}, {pipeline_mode = #tpu.pipeline_mode<synchronous>, transform_indices = @transform_3, window_bounds = array<i64: 32, 128>}, {pipeline_mode = #tpu.pipeline_mode<synchronous>, transform_indices = @transform_4, window_bounds = array<i64: 64, 8>}, {pipeline_mode = #tpu.pipeline_mode<synchronous>, transform_indices = @transform_5, window_bounds = array<i64: 8, 64>}, {transform_indices = @transform_6, window_bounds = array<i64: 8, 64>}]} {
    %c0 = arith.constant 0 : index
    %c0_0 = arith.constant 0 : index
    %0 = vector.load %arg1[%c0, %c0_0] : memref<8x32xf32, #tpu.memory_space<vmem>>, vector<8x32xf32>
    %c0_1 = arith.constant 0 : index
    %c0_2 = arith.constant 0 : index
    %1 = vector.load %arg3[%c0_1, %c0_2] : memref<32x64xf32, #tpu.memory_space<vmem>>, vector<32x64xf32>
    %cst = arith.constant dense<0.000000e+00> : vector<8x64xf32>
    %2 = tpu.matmul %0, %1, %cst {dimension_numbers = #tpu.dot_dimension_numbers<[1], [0], [0], [1], [0, 0, 1, 1], [], []>} : vector<8x32xf32>, vector<32x64xf32>, vector<8x64xf32> -> vector<8x64xf32>
    %c0_3 = arith.constant 0 : index
    %c0_4 = arith.constant 0 : index
    %3 = vector.load %arg2[%c0_3, %c0_4] : memref<64x32xf32, #tpu.memory_space<vmem>>, vector<64x32xf32>
    %c0_5 = arith.constant 0 : index
    %c0_6 = arith.constant 0 : index
    %4 = vector.load %arg4[%c0_5, %c0_6] : memref<32x128xf32, #tpu.memory_space<vmem>>, vector<32x128xf32>
    %cst_7 = arith.constant dense<0.000000e+00> : vector<64x128xf32>
    %5 = tpu.matmul %3, %4, %cst_7 {dimension_numbers = #tpu.dot_dimension_numbers<[1], [0], [0], [1], [0, 0, 1, 1], [], []>} : vector<64x32xf32>, vector<32x128xf32>, vector<64x128xf32> -> vector<64x128xf32>
    %6 = vector.extract_strided_slice %5 {offsets = [0, 0], sizes = [64, 64], strides = [1, 1]} : vector<64x128xf32> to vector<64x64xf32>
    %7 = vector.extract_strided_slice %5 {offsets = [0, 64], sizes = [64, 64], strides = [1, 1]} : vector<64x128xf32> to vector<64x64xf32>
    %8 = vector.shape_cast %6 : vector<64x64xf32> to vector<8x8x64xf32>
    %9 = vector.shape_cast %2 : vector<8x64xf32> to vector<8x1x64xf32>
    %10 = vector.broadcast %9 : vector<8x1x64xf32> to vector<8x8x64xf32>
    %11 = arith.mulf %8, %10 : vector<8x8x64xf32>
    %12 = vector.shape_cast %11 : vector<8x8x64xf32> to vector<64x64xf32>
    %c0_8 = arith.constant 0 : index
    %c0_9 = arith.constant 0 : index
    %13 = vector.load %arg5[%c0_8, %c0_9] : memref<64x8xf32, #tpu.memory_space<vmem>>, vector<64x8xf32>
    %cst_10 = arith.constant dense<0.000000e+00> : vector<64x8xf32>
    %14 = tpu.matmul %12, %13, %cst_10 {dimension_numbers = #tpu.dot_dimension_numbers<[1], [0], [0], [1], [0, 0, 1, 1], [], []>} : vector<64x64xf32>, vector<64x8xf32>, vector<64x8xf32> -> vector<64x8xf32>
    %15 = vector.shape_cast %14 : vector<64x8xf32> to vector<8x8x8xf32>
    %16 = tpu.transpose %15, [0, 2, 1] : vector<8x8x8xf32> -> vector<8x8x8xf32>
    %17 = vector.shape_cast %16 : vector<8x8x8xf32> to vector<64x8xf32>
    %18 = vector.shape_cast %17 : vector<64x8xf32> to vector<64x1x8xf32>
    %19 = vector.shape_cast %17 : vector<64x8xf32> to vector<64x8x1xf32>
    %20 = vector.broadcast %18 : vector<64x1x8xf32> to vector<64x8x8xf32>
    %21 = vector.broadcast %19 : vector<64x8x1xf32> to vector<64x8x8xf32>
    %22 = arith.cmpf ogt, %20, %21 : vector<64x8x8xf32>
    %23 = arith.extui %22 : vector<64x8x8xi1> to vector<64x8x8xi32>
    %24 = arith.sitofp %23 : vector<64x8x8xi32> to vector<64x8x8xf32>
    %cst_11 = arith.constant dense<0.000000e+00> : vector<64x8xf32>
    %25 = vector.multi_reduction <add>, %24, %cst_11 [2] : vector<64x8x8xf32> to vector<64x8xf32>
    %cst_12 = arith.constant 3.000000e+00 : f32
    %26 = vector.broadcast %cst_12 : f32 to vector<64x8xf32>
    %27 = arith.cmpf ole, %25, %26 : vector<64x8xf32>
    %cst_13 = arith.constant 0x7F800000 : f32
    %28 = vector.broadcast %cst_13 : f32 to vector<64x8xf32>
    %29 = arith.select %27, %17, %28 : vector<64x8xi1>, vector<64x8xf32>
    %cst_14 = arith.constant dense<0x7F800000> : vector<64xf32>
    %30 = vector.multi_reduction <minimumf>, %29, %cst_14 [1] : vector<64x8xf32> to vector<64xf32>
    %31 = vector.shape_cast %30 : vector<64xf32> to vector<64x1xf32>
    %32 = vector.broadcast %31 : vector<64x1xf32> to vector<64x8xf32>
    %33 = arith.cmpf oge, %17, %32 : vector<64x8xf32>
    %cst_15 = arith.constant 0.000000e+00 : f32
    %34 = vector.broadcast %cst_15 : f32 to vector<64x8xf32>
    %35 = arith.select %33, %17, %34 : vector<64x8xi1>, vector<64x8xf32>
    %cst_16 = arith.constant dense<0xFF800000> : vector<64xf32>
    %36 = vector.multi_reduction <maximumf>, %35, %cst_16 [1] : vector<64x8xf32> to vector<64xf32>
    %37 = vector.shape_cast %36 : vector<64xf32> to vector<64x1xf32>
    %38 = vector.broadcast %37 : vector<64x1xf32> to vector<64x8xf32>
    %39 = arith.subf %35, %38 : vector<64x8xf32>
    %40 = math.exp %39 : vector<64x8xf32>
    %cst_17 = arith.constant dense<0.000000e+00> : vector<64xf32>
    %41 = vector.multi_reduction <add>, %40, %cst_17 [1] : vector<64x8xf32> to vector<64xf32>
    %42 = vector.shape_cast %41 : vector<64xf32> to vector<64x1xf32>
    %43 = tpu.reciprocal %42 {approx = true} : vector<64x1xf32> -> vector<64x1xf32>
    %44 = vector.broadcast %43 : vector<64x1xf32> to vector<64x8xf32>
    %45 = arith.mulf %40, %44 : vector<64x8xf32>
    %46 = vector.shape_cast %45 : vector<64x8xf32> to vector<8x8x8xf32>
    %47 = tpu.transpose %46, [0, 2, 1] : vector<8x8x8xf32> -> vector<8x8x8xf32>
    %48 = vector.shape_cast %47 : vector<8x8x8xf32> to vector<64x8xf32>
    %c0_18 = arith.constant 0 : index
    %c0_19 = arith.constant 0 : index
    %49 = vector.load %arg6[%c0_18, %c0_19] : memref<8x64xf32, #tpu.memory_space<vmem>>, vector<8x64xf32>
    %cst_20 = arith.constant dense<0.000000e+00> : vector<64x64xf32>
    %50 = tpu.matmul %48, %49, %cst_20 {dimension_numbers = #tpu.dot_dimension_numbers<[1], [0], [0], [1], [0, 0, 1, 1], [], []>} : vector<64x8xf32>, vector<8x64xf32>, vector<64x64xf32> -> vector<64x64xf32>
    %51 = arith.mulf %50, %7 : vector<64x64xf32>
    %52 = vector.shape_cast %51 : vector<64x64xf32> to vector<8x8x64xf32>
    %cst_21 = arith.constant dense<0.000000e+00> : vector<8x64xf32>
    %53 = vector.multi_reduction <add>, %52, %cst_21 [1] : vector<8x8x64xf32> to vector<8x64xf32>
    %c0_22 = arith.constant 0 : index
    %c0_23 = arith.constant 0 : index
    %54 = vector.load %arg7[%c0_22, %c0_23] : memref<8x64xf32, #tpu.memory_space<vmem>>, vector<8x64xf32>
    tpu.vector_store %arg7[%c0_22, %c0_23], %53 {strides = array<i32>} : memref<8x64xf32, #tpu.memory_space<vmem>>, vector<8x64xf32>,
    return
  }
  func.func @transform_0(%arg0: i32) -> (i32, i32) {
    %c0_i32 = arith.constant 0 : i32
    %c0_i32_0 = arith.constant 0 : i32
    return %arg0, %c0_i32 : i32, i32
  }
  func.func @transform_1(%arg0: i32) -> (i32, i32) {
    %c0_i32 = arith.constant 0 : i32
    %c0_i32_0 = arith.constant 0 : i32
    return %arg0, %c0_i32 : i32, i32
  }
  func.func @transform_2(%arg0: i32) -> (i32, i32) {
    %c0_i32 = arith.constant 0 : i32
    %c0_i32_0 = arith.constant 0 : i32
    %c0_i32_1 = arith.constant 0 : i32
    return %c0_i32, %c0_i32_0 : i32, i32
  }
  func.func @transform_3(%arg0: i32) -> (i32, i32) {
    %c0_i32 = arith.constant 0 : i32
    %c0_i32_0 = arith.constant 0 : i32
    %c0_i32_1 = arith.constant 0 : i32
    return %c0_i32, %c0_i32_0 : i32, i32
  }
  func.func @transform_4(%arg0: i32) -> (i32, i32) {
    %c0_i32 = arith.constant 0 : i32
    %c0_i32_0 = arith.constant 0 : i32
    %c0_i32_1 = arith.constant 0 : i32
    return %c0_i32, %c0_i32_0 : i32, i32
  }
  func.func @transform_5(%arg0: i32) -> (i32, i32) {
    %c0_i32 = arith.constant 0 : i32
    %c0_i32_0 = arith.constant 0 : i32
    %c0_i32_1 = arith.constant 0 : i32
    return %c0_i32, %c0_i32_0 : i32, i32
  }
  func.func @transform_6(%arg0: i32) -> (i32, i32) {
    %c0_i32 = arith.constant 0 : i32
    %c0_i32_0 = arith.constant 0 : i32
    return %arg0, %c0_i32 : i32, i32
  }
}

</mosaic_0001>

<bundles_post_ra>
// kernel: tpu_custom_call.1
= control target key start
LH: loop header
LB: loop body
LE: loop exit
PB: predicated region body
PF: predicated region fallthrough
CT: control target
= control target key end

     0   :  { %v4454_v3 = vmov 0.0|0.0   ;;  %vm4455_vm0 = vmmov 0   ;;  %v5791_v8 = vmov 0.0   ;;  %vm29_vm1 = vcmask 261120   ;;  %s5783_s0 = inlined_call_operand.vmem [shape: f32[8,32], index: 0, kind: input, shape index: {}]   ;;  %s5784_s1 = inlined_call_operand.vmem [shape: f32[64,32], index: 1, kind: input, shape index: {}]   ;;  %s5785_s2 = inlined_call_operand.vmem [shape: f32[32,64], index: 2, kind: input, shape index: {}]   ;;  %s5786_s3 = inlined_call_operand.vmem [shape: f32[32,128], index: 3, kind: input, shape index: {}]   ;;  %s5787_s4 = inlined_call_operand.vmem [shape: f32[64,8], index: 4, kind: input, shape index: {}]   ;;  %s5788_s5 = inlined_call_operand.vmem [shape: f32[8,64], index: 5, kind: input, shape index: {}]   ;;  %s5789_s6 = inlined_call_operand.hbm [shape: f32[8,64], index: 6, kind: output, shape index: {}]  }
   0x1   :  { %v25_v0 = vld [vmem:[%s5785_s2] sm:$0xff]  ;;  %v26_v1 = vld [vmem:[%s5785_s2 + $0x8] sm:$0xff]  ;;  %4359 = vmatprep.subr.bf16.mxu0 %v4454_v3  ;;  %v27_v6 = vld [vmem:[%s5785_s2 + $0x10] sm:$0xff]  ;;  %4294 = vmatprep.mubr.msk.f32.mxu0 %vm4455_vm0, %v5791_v8 }
   0x2   :  { %v111_v2 = vld [vmem:[%s5786_s3] sm:$0xff]  ;;  %v4360_v4 = vpack.c.bf16 %v26_v1, %v25_v0  ;;  %v112_v5 = vld [vmem:[%s5786_s3 + $0x8] sm:$0xff]  ;;  %v28_v7 = vld [vmem:[%s5785_s2 + $0x18] sm:$0xff] }
   0x3   :  { %v4365_v9 = vpack.c.bf16 %v112_v5, %v111_v2  ;;  %v113_v10 = vld [vmem:[%s5786_s3 + $0x10] sm:$0xff]  ;;  %v114_v11 = vld [vmem:[%s5786_s3 + $0x18] sm:$0xff]  ;;  %v4363_v12 = vpack.c.bf16 %v28_v7, %v27_v6  ;;  %v103_v14 = vld [vmem:[%s5784_s1] sm:$0xff] }
   0x4   :  { %4361 = vmatpush3.bf16.msra.mxu0 %v4360_v4  ;;  %v4369_v13 = vpack.c.bf16 %v114_v11, %v113_v10  ;;  %4305 = vmatprep.mubr.msk.f32.mxu1 %vm29_vm1, %v103_v14  ;;  %v342_v15 = vld [vmem:[%s5787_s4] sm:$0xff]  ;;  %v343_v16 = vld [vmem:[%s5787_s4 + $0x8] sm:$0xff]  ;;  %v344_v17 = vld [vmem:[%s5787_s4 + $0x10] sm:$0xff] }
   0x5   :  { %4366 = vmatprep.subr.bf16.mxu1 %v4365_v9  ;;  %4362 = vmatprep.subr.bf16.mxu0 %v4454_v3  ;;  %v345_v18 = vld [vmem:[%s5787_s4 + $0x18] sm:$0xff]  ;;  %v24_v19 = vld [vmem:[%s5783_s0] sm:$0xff]  ;;  %v4373_v20 = vpack.c.bf16 %v343_v16, %v342_v15 }
   0x6   :  { %4368 = vmatpush3.bf16.msra.mxu1 %v4365_v9 }
   0x7   :  { %4370 = vmatprep.subr.bf16.mxu1 %v4369_v13 }
   0x8   :  { %4364 = vmatpush3.bf16.msra.mxu0 %v4363_v12 }
   0x9   :  { %11 = vsyncpa [#allocation3], 0  ;;  %v4377_v21 = vpack.c.bf16 %v345_v18, %v344_v17  ;;  %v104_v22 = vld [vmem:[%s5784_s1 + $0x8] sm:$0xff]  ;;  %4374 = vmatprep.subr.bf16.mxu0 %v4373_v20  ;;  %v105_v23 = vld [vmem:[%s5784_s1 + $0x10] sm:$0xff]  ;;  %v4457_v35 = vmov 1966171168   ;;  %v5790_v37 = vlaneseq }
   0xa   :  { %4372 = vmatpush3.bf16.msra.mxu1 %v4369_v13  ;;  %v106_v24 = vld [vmem:[%s5784_s1 + $0x18] sm:$0xff]  ;;  %v107_v25 = vld [vmem:[%s5784_s1 + $0x20] sm:$0xff]  ;;  %v108_v26 = vld [vmem:[%s5784_s1 + $0x28] sm:$0xff]  ;;  %v247_v36 = vunpack.c.l.s4 %v4457_v35  ;;  %vm350_vm2 = vcmask 523264   ;;  %vm2096_vm4 = vcmask 64512   ;;  %s4460_s18 = smov [#allocation2]  }
   0xb   :  { %4295 = vmatmul.mubr.msk.f32.vlgmr.msra.gmra.mrb[0].mxu0 %vm29_vm1, %v24_v19  ;;  %v109_v27 = vld [vmem:[%s5784_s1 + $0x30] sm:$0xff]  ;;  %v110_v28 = vld [vmem:[%s5784_s1 + $0x38] sm:$0xff]  ;;  %v346_v29 = vld [vmem:[%s5787_s4 + $0x20] sm:$0xff]  ;;  %v4582_v39 = vshrl.u32 %v5790_v37, 7  ;;  %s4147_s19 = sshll.u32 %s4460_s18, 4  ;;  %s4148_s19 = int_to_ptr.vmem [resolvable:$true] %s4147_s19 }
   0xc   :  { %4376 = vmatpush3.bf16.msra.mxu0 %v4373_v20  ;;  %v347_v30 = vld [vmem:[%s5787_s4 + $0x28] sm:$0xff]  ;;  %v348_v32 = vld [vmem:[%s5787_s4 + $0x30] sm:$0xff]  ;;  %v349_v33 = vld [vmem:[%s5787_s4 + $0x38] sm:$0xff]  ;;  %v248_v38 = vunpack.c.0.s8 %v247_v36  ;;  %s4430_s20 = scalar_lea.vmem %s4148_s19, 128  ;;  %p4435_p1 = scmp.lt.s32.totalorder %s4148_s19, %s4148_s19 }
   0xd   :  { %4306 = vmatmul.mubr.msk.f32.vlgmr.msra.gmra.mrb[0].mxu1 %vm29_vm1, %v104_v22  ;;  %4378 = vmatprep.subr.bf16.mxu0 %v4377_v21  ;;  %v4381_v31 = vpack.c.bf16 %v347_v30, %v346_v29  ;;  %v4385_v34 = vpack.c.bf16 %v349_v33, %v348_v32  ;;  %5808 = vst [vmem:[#allocation5_spill] sm:$0xff] %v4582_v39  ;;  %v4589_v45 = vsub.s32 0, %v4582_v39  ;;  %v4646_v30 = vsub.s32 2, %v4582_v39  ;;  %p4431_p0 = scmp.ne.s32.totalorder %s4148_s19, %s4430_s20  ;;  %p4436_p2 = scmp.lt.s32.totalorder %s4430_s20, %s4430_s20 }
   0xe   :  { %4308 = vmatprep.mubr.msk.f32.mxu1 %vm29_vm1, %v105_v23  ;;  %v4585_v40 = vsub.s32 %v248_v38, %v4582_v39  ;;  %v4659_v35 = vsub.s32 5, %v4582_v39 }
   0xf   :  { %p4437_p3 = por %p4436_p2, %p4435_p1 }
  0x10   :  { %4380 = vmatpush3.bf16.msra.mxu0 %v4377_v21 }
  0x11   :  { %4309 = vmatmul.mubr.msk.f32.gmra.mrb[2].mxu1 %vm29_vm1, %v106_v24  ;;  %4382 = vmatprep.subr.bf16.mxu0 %v4381_v31  ;;  %p4438_p4 = pnand %p4437_p3, %p4431_p0 }
  0x12   :  { %4311 = vmatprep.mubr.msk.f32.mxu1 %vm29_vm1, %v107_v25 }
  0x14   :  { %4384 = vmatpush3.bf16.msra.mxu0 %v4381_v31  ;;  %v4649_v31 = vsub.s32 3, %v4582_v39 }
  0x15   :  { %4312 = vmatmul.mubr.msk.f32.gmra.mrb[4].mxu1 %vm29_vm1, %v108_v26  ;;  %4386 = vmatprep.subr.bf16.mxu0 %v4385_v34  ;;  %v4637_v26 = vsub.s32 1, %v4582_v39 }
  0x16   :  { %4314 = vmatprep.mubr.msk.f32.mxu1 %vm29_vm1, %v109_v27 }
  0x18   :  { %4388 = vmatpush3.bf16.msra.mxu0 %v4385_v34  ;;  %v4656_v34 = vsub.s32 4, %v4582_v39 }
  0x19   :  { %4315 = vmatmul.mubr.msk.f32.gmra.mrb[6].mxu1 %vm29_vm1, %v110_v28 }
  0xde   :  { %v99_v41 = vpop.f32.mrb[0].mxu0 }
  0xdf   :  { %v245_v42 = vcombine.high %v99_v41, %v99_v41  ;;  %v252_v43 = vrot.slane %v99_v41, %v4585_v40  ;;  %v4296_v44 = vpop.f32.mrb[1].mxu0  ;;  %v4666_v41 = vsub.s32 6, %v4582_v39 }
  0xe0   :  { %v4591_v46 = vpop.f32.mrb[0].mxu1 }
  0xe1   :  { %5809 = vst [vmem:[#allocation6_spill] sm:$0xff] %v4591_v46  ;;  %v259_v47 = vrot.slane %v245_v42, %v4585_v40  ;;  %v260_v48 = vcombine.high %v252_v43, %v252_v43  ;;  %v268_v49 = vrot.slane %v252_v43, %v4585_v40  ;;  %v4595_v50 = vpop.f32.mrb[1].mxu1  ;;  %v4669_v42 = vsub.s32 7, %v4582_v39 }
  0xe2   :  { %5810 = vst [vmem:[#allocation7_spill] sm:$0xff] %v4595_v50 }
  0xe3   :  { %v261_v51 = vcombine.high %v259_v47, %v259_v47  ;;  %v282_v52 = vrot.slane %v260_v48, %v4585_v40  ;;  %v297_v53 = vrot.slane %v268_v49, %v4589_v45  ;;  %v290_v54 = vcombine.high %v268_v49, %v268_v49 }
  0xe4   :  { %v4599_v55 = vpop.f32.mrb[2].mxu1  ;;  %v275_v56 = vrot.slane %v259_v47, %v4585_v40 }
  0xe5   :  { %5811 = vst [vmem:[#allocation8_spill] sm:$0xff] %v4599_v55  ;;  %v301_v57 = vrot.slane %v282_v52, %v4589_v45  ;;  %v334_v58 = vmul.f32 %v297_v53, %v4595_v50  ;;  %v292_v59 = vcombine.high %v282_v52, %v282_v52  ;;  %v4604_v60 = vpop.f32.mrb[3].mxu1  ;;  %v305_v61 = vrot.slane %v290_v54, %v4589_v45 }
  0xe6   :  { %5812 = vst [vmem:[#allocation9_spill] sm:$0xff] %v4604_v60  ;;  %v289_v62 = vrot.slane %v261_v51, %v4585_v40  ;;  %v313_v4 = vrot.slane %v275_v56, %v4589_v45  ;;  %v291_v6 = vcombine.high %v275_v56, %v275_v56 }
  0xe7   :  { %v335_v63 = vmul.f32 %v4591_v46, %v301_v57  ;;  %v309_v0 = vrot.slane %v292_v59, %v4589_v45  ;;  %v336_v1 = vmul.f32 %v305_v61, %v4604_v60  ;;  %4333 = vmatprep.mubr.msk.f32.mxu0 %vm350_vm2, %v334_v58 }
  0xe8   :  { %v4612_v2 = vpop.f32.mrb[4].mxu1  ;;  %v317_v3 = vrot.slane %v289_v62, %v4589_v45  ;;  %v293_v5 = vcombine.high %v289_v62, %v289_v62  ;;  %v321_v14 = vrot.slane %v291_v6, %v4589_v45 }
  0xe9   :  { %5813 = vst [vmem:[#allocation10_spill] sm:$0xff] %v4612_v2  ;;  %v337_v7 = vmul.f32 %v4599_v55, %v309_v0  ;;  %v4617_v9 = vpop.f32.mrb[5].mxu1  ;;  %4334 = vmatmul.mubr.msk.f32.vlgmr.msra.gmra.mrb[2].mxu0 %vm350_vm2, %v335_v63 }
  0xea   :  { %5814 = vst [vmem:[#allocation11_spill] sm:$0xff] %v4617_v9  ;;  %v339_v10 = vmul.f32 %v4612_v2, %v317_v3  ;;  %v338_v11 = vmul.f32 %v313_v4, %v4617_v9  ;;  %4336 = vmatprep.mubr.msk.f32.mxu0 %vm350_vm2, %v336_v1  ;;  %v325_v12 = vrot.slane %v293_v5, %v4589_v45 }
  0xec   :  { %v4624_v13 = vpop.f32.mrb[6].mxu1 }
  0xed   :  { %5815 = vst [vmem:[#allocation12_spill] sm:$0xff] %v4624_v13  ;;  %v341_v15 = vmul.f32 %v4624_v13, %v325_v12  ;;  %v4628_v16 = vpop.f32.mrb[7].mxu1  ;;  %4337 = vmatmul.mubr.msk.f32.gmra.mrb[4].mxu0 %vm350_vm2, %v337_v7 }
  0xee   :  { %5816 = vst [vmem:[#allocation13_spill] sm:$0xff] %v4628_v16  ;;  %v340_v17 = vmul.f32 %v321_v14, %v4628_v16  ;;  %4339 = vmatprep.mubr.msk.f32.mxu0 %vm350_vm2, %v338_v11 }
  0xf1   :  { %4340 = vmatmul.mubr.msk.f32.gmra.mrb[6].mxu0 %vm350_vm2, %v339_v10 }
  0xf2   :  { %4342 = vmatprep.mubr.msk.f32.mxu0 %vm350_vm2, %v340_v17 }
  0xf5   :  { %4343 = vmatmul.mubr.msk.f32.gmra.mrb[8].mxu0 %vm350_vm2, %v341_v15 }
 0x1bc   :  { %v4335_v18 = vpop.f32.mrb[2].mxu0 }
 0x1bd   :  { %512 = vxpose.xlu0.b32.start.end [1/1] (short) (narrow) %v4335_v18, 8  ;;  %v441_v19 = vpop.f32.mrb[3].mxu0 }
 0x1c0   :  { %v4338_v20 = vpop.f32.mrb[4].mxu0 }
 0x1c1   :  { %480 = vxpose.xlu0.b32.start.end [1/1] (short) (narrow) %v441_v19, 8  ;;  %576 = vxpose.xlu1.b32.start.end [1/1] (short) (narrow) %v4338_v20, 8  ;;  %v451_v21 = vpop.f32.mrb[5].mxu0 }
 0x1c4   :  { %v4341_v22 = vpop.f32.mrb[6].mxu0 }
 0x1c5   :  { %544 = vxpose.xlu1.b32.start.end [1/1] (short) (narrow) %v451_v21, 8  ;;  %v461_v23 = vpop.f32.mrb[7].mxu0 }
 0x1c6   :  { %608 = vxpose.xlu0.b32.start.end [1/1] (short) (narrow) %v461_v23, 8 }
 0x1c8   :  { %v4344_v24 = vpop.f32.mrb[8].mxu0 }
 0x1c9   :  { %640 = vxpose.xlu1.b32.start.end [1/1] (short) (narrow) %v4341_v22, 8  ;;  %v471_v25 = vpop.f32.mrb[9].mxu0 }
 0x1ca   :  { %672 = vxpose.xlu0.b32.start.end [1/1] (short) (narrow) %v471_v25, 8 }
 0x1cd   :  { %704 = vxpose.xlu1.b32.start.end [1/1] (short) (narrow) %v4344_v24, 8 }
 0x23d   :  { %v4639_v27 = vpop.trf.xlu0 }
 0x23e   :  { %5817 = vst [vmem:[#allocation14_spill] sm:$0xff] %v4639_v27  ;;  %v1195_v28 = vrot.slane %v4639_v27, %v4589_v45  ;;  %v1202_v29 = vrot.slane %v4639_v27, %v4637_v26  ;;  %v1209_v32 = vrot.slane %v4639_v27, %v4646_v30  ;;  %v1216_v33 = vrot.slane %v4639_v27, %v4649_v31 }
 0x23f   :  { %v1223_v36 = vrot.slane %v4639_v27, %v4656_v34  ;;  %v1230_v38 = vrot.slane %v4639_v27, %v4659_v35  ;;  %v1237_v43 = vrot.slane %v4639_v27, %v4666_v41  ;;  %v1244_v44 = vrot.slane %v4639_v27, %v4669_v42 }
 0x240   :  { %1197 = vbcast.lane.b32.xlu1 %v1195_v28, 256  ;;  %1204 = vbcast.lane.b32.xlu0 %v1202_v29, 256 }
 0x241   :  { %v4675_v47 = vpop.trf.xlu0  ;;  %v4693_v58 = vpop.trf.xlu1 }
 0x242   :  { %5818 = vst [vmem:[#allocation15_spill] sm:$0xff] %v4675_v47  ;;  %v1146_v48 = vrot.slane %v4675_v47, %v4637_v26  ;;  %v1153_v49 = vrot.slane %v4675_v47, %v4646_v30  ;;  %v1160_v51 = vrot.slane %v4675_v47, %v4649_v31  ;;  %v1139_v52 = vrot.slane %v4675_v47, %v4589_v45 }
 0x243   :  { %v1167_v53 = vrot.slane %v4675_v47, %v4656_v34  ;;  %v1174_v54 = vrot.slane %v4675_v47, %v4659_v35  ;;  %v1181_v56 = vrot.slane %v4675_v47, %v4666_v41  ;;  %v1188_v57 = vrot.slane %v4675_v47, %v4669_v42  ;;  %5819 = vst [vmem:[#allocation16_spill] sm:$0xff] %v4693_v58 }
 0x244   :  { %1211 = vbcast.lane.b32.xlu1 %v1209_v32, 256  ;;  %1218 = vbcast.lane.b32.xlu0 %v1216_v33, 256  ;;  %v1307_v59 = vrot.slane %v4693_v58, %v4589_v45  ;;  %v1321_v61 = vrot.slane %v4693_v58, %v4646_v30  ;;  %v1335_v62 = vrot.slane %v4693_v58, %v4656_v34 }
 0x245   :  { %v1314_v63 = vrot.slane %v4693_v58, %v4637_v26  ;;  %v1349_v0 = vrot.slane %v4693_v58, %v4666_v41  ;;  %v1328_v1 = vrot.slane %v4693_v58, %v4649_v31  ;;  %v4707_v3 = vpop.trf.xlu1  ;;  %v1342_v4 = vrot.slane %v4693_v58, %v4659_v35 }
 0x246   :  { %v1251_v5 = vrot.slane %v4707_v3, %v4589_v45  ;;  %v1356_v6 = vrot.slane %v4693_v58, %v4669_v42  ;;  %v1265_v7 = vrot.slane %v4707_v3, %v4646_v30  ;;  %v1279_v10 = vrot.slane %v4707_v3, %v4656_v34  ;;  %v4725_v15 = vpop.trf.xlu0 }
 0x247   :  { %v1293_v11 = vrot.slane %v4707_v3, %v4666_v41  ;;  %v1286_v12 = vrot.slane %v4707_v3, %v4659_v35  ;;  %v1258_v21 = vrot.slane %v4707_v3, %v4637_v26  ;;  %v1272_v25 = vrot.slane %v4707_v3, %v4649_v31 }
 0x248   :  { %1225 = vbcast.lane.b32.xlu1 %v1223_v36, 256  ;;  %1232 = vbcast.lane.b32.xlu0 %v1230_v38, 256  ;;  %v1370_v16 = vrot.slane %v4725_v15, %v4637_v26 }
 0x249   :  { %v4723_v14 = vpop.trf.xlu1 }
 0x24a   :  { %v1426_v17 = vrot.slane %v4723_v14, %v4637_v26  ;;  %v4731_v19 = vpop.trf.xlu0  ;;  %v1433_v20 = vrot.slane %v4723_v14, %v4646_v30  ;;  %v1440_v22 = vrot.slane %v4723_v14, %v4649_v31 }
 0x24c   :  { %1239 = vbcast.lane.b32.xlu1 %v1237_v43, 256  ;;  %1246 = vbcast.lane.b32.xlu0 %v1244_v44, 256 }
 0x24d   :  { %v4729_v18 = vpop.trf.xlu1 }
 0x24e   :  { %v1559_v50 = vrot.slane %v4729_v18, %v4656_v34  ;;  %v1566_v46 = vrot.slane %v4729_v18, %v4659_v35 }
 0x250   :  { %2421 = vbcast.lane.b32.xlu1 %v1202_v29, 256  ;;  %2414 = vbcast.lane.b32.xlu0 %v1195_v28, 256  ;;  %v1447_v28 = vrot.slane %v4723_v14, %v4656_v34 }
 0x254   :  { %2428 = vbcast.lane.b32.xlu1 %v1209_v32, 256  ;;  %2442 = vbcast.lane.b32.xlu0 %v1223_v36, 256 }
 0x258   :  { %2435 = vbcast.lane.b32.xlu1 %v1216_v33, 256  ;;  %2449 = vbcast.lane.b32.xlu0 %v1230_v38, 256  ;;  %v1454_v33 = vrot.slane %v4723_v14, %v4659_v35 }
 0x25c   :  { %1148 = vbcast.lane.b32.xlu1 %v1146_v48, 256  ;;  %2456 = vbcast.lane.b32.xlu0 %v1237_v43, 256  ;;  %v1300_v43 = vrot.slane %v4707_v3, %v4669_v42 }
 0x260   :  { %1155 = vbcast.lane.b32.xlu1 %v1153_v49, 256  ;;  %2463 = vbcast.lane.b32.xlu0 %v1244_v44, 256  ;;  %v1468_v44 = vrot.slane %v4723_v14, %v4669_v42 }
 0x264   :  { %1162 = vbcast.lane.b32.xlu1 %v1160_v51, 256  ;;  %1141 = vbcast.lane.b32.xlu0 %v1139_v52, 256 }
 0x268   :  { %1169 = vbcast.lane.b32.xlu1 %v1167_v53, 256  ;;  %1176 = vbcast.lane.b32.xlu0 %v1174_v54, 256 }
 0x26c   :  { %1183 = vbcast.lane.b32.xlu1 %v1181_v56, 256  ;;  %1190 = vbcast.lane.b32.xlu0 %v1188_v57, 256 }
 0x270   :  { %2358 = vbcast.lane.b32.xlu1 %v1139_v52, 256  ;;  %2365 = vbcast.lane.b32.xlu0 %v1146_v48, 256 }
 0x274   :  { %2372 = vbcast.lane.b32.xlu1 %v1153_v49, 256  ;;  %2379 = vbcast.lane.b32.xlu0 %v1160_v51, 256 }
 0x278   :  { %2407 = vbcast.lane.b32.xlu1 %v1188_v57, 256  ;;  %2386 = vbcast.lane.b32.xlu0 %v1167_v53, 256 }
 0x27c   :  { %1309 = vbcast.lane.b32.xlu1 %v1307_v59, 256  ;;  %2393 = vbcast.lane.b32.xlu0 %v1174_v54, 256 }
 0x280   :  { %1323 = vbcast.lane.b32.xlu1 %v1321_v61, 256  ;;  %2400 = vbcast.lane.b32.xlu0 %v1181_v56, 256 }
 0x284   :  { %1337 = vbcast.lane.b32.xlu1 %v1335_v62, 256  ;;  %1316 = vbcast.lane.b32.xlu0 %v1314_v63, 256 }
 0x288   :  { %1351 = vbcast.lane.b32.xlu1 %v1349_v0, 256  ;;  %1330 = vbcast.lane.b32.xlu0 %v1328_v1, 256 }
 0x28c   :  { %2568 = vbcast.lane.b32.xlu1 %v1349_v0, 256  ;;  %1344 = vbcast.lane.b32.xlu0 %v1342_v4, 256  ;;  %v1377_v0 = vrot.slane %v4725_v15, %v4646_v30 }
 0x290   :  { %1253 = vbcast.lane.b32.xlu1 %v1251_v5, 256  ;;  %1358 = vbcast.lane.b32.xlu0 %v1356_v6, 256 }
 0x294   :  { %1267 = vbcast.lane.b32.xlu1 %v1265_v7, 256  ;;  %2526 = vbcast.lane.b32.xlu0 %v1307_v59, 256  ;;  %v1461_v59 = vrot.slane %v4723_v14, %v4666_v41 }
 0x298   :  { %1281 = vbcast.lane.b32.xlu1 %v1279_v10, 256  ;;  %2533 = vbcast.lane.b32.xlu0 %v1314_v63, 256 }
 0x29c   :  { %1295 = vbcast.lane.b32.xlu1 %v1293_v11, 256  ;;  %2540 = vbcast.lane.b32.xlu0 %v1321_v61, 256  ;;  %v1363_v61 = vrot.slane %v4725_v15, %v4589_v45 }
 0x2a0   :  { %2498 = vbcast.lane.b32.xlu1 %v1279_v10, 256  ;;  %2547 = vbcast.lane.b32.xlu0 %v1328_v1, 256 }
 0x2a4   :  { %2505 = vbcast.lane.b32.xlu1 %v1286_v12, 256  ;;  %2554 = vbcast.lane.b32.xlu0 %v1335_v62, 256 }
 0x2a8   :  { %2512 = vbcast.lane.b32.xlu1 %v1293_v11, 256  ;;  %2561 = vbcast.lane.b32.xlu0 %v1342_v4, 256 }
 0x2ac   :  { %1428 = vbcast.lane.b32.xlu1 %v1426_v17, 256  ;;  %2575 = vbcast.lane.b32.xlu0 %v1356_v6, 256  ;;  %v4795_v6 = vrot.slane %v4725_v15, %v4669_v42 }
 0x2b0   :  { %1435 = vbcast.lane.b32.xlu1 %v1433_v20, 256  ;;  %1260 = vbcast.lane.b32.xlu0 %v1258_v21, 256 }
 0x2b2   :  { %v4739_v23 = vpop.permute.xlu1 %1197  ;;  %v4741_v24 = vpop.permute.xlu0 %1204 }
 0x2b4   :  { %1442 = vbcast.lane.b32.xlu1 %v1440_v22, 256  ;;  %1274 = vbcast.lane.b32.xlu0 %v1272_v25, 256 }
 0x2b6   :  { %v4747_v29 = vpop.permute.xlu1 %1211  ;;  %v4749_v32 = vpop.permute.xlu0 %1218 }
 0x2b8   :  { %1449 = vbcast.lane.b32.xlu1 %v1447_v28, 256  ;;  %1288 = vbcast.lane.b32.xlu0 %v1286_v12, 256 }
 0x2ba   :  { %v4753_v36 = vpop.permute.xlu1 %1225  ;;  %v4755_v38 = vpop.permute.xlu0 %1232 }
 0x2bc   :  { %1456 = vbcast.lane.b32.xlu1 %v1454_v33, 256  ;;  %1302 = vbcast.lane.b32.xlu0 %v1300_v43, 256 }
 0x2be   :  { %v4761_v48 = vpop.permute.xlu1 %1239  ;;  %v4763_v49 = vpop.permute.xlu0 %1246 }
 0x2c0   :  { %1470 = vbcast.lane.b32.xlu1 %v1468_v44, 256  ;;  %2470 = vbcast.lane.b32.xlu0 %v1251_v5, 256  ;;  %v1419_v5 = vrot.slane %v4723_v14, %v4589_v45 }
 0x2c2   :  { %v4765_v51 = vpop.permute.xlu1 %2421  ;;  %v4767_v52 = vpop.permute.xlu0 %2414 }
 0x2c3   :  { %5820 = vst [vmem:[#allocation17_spill] sm:$0xff] %v4765_v51  ;;  %5821 = vst [vmem:[#allocation18_spill] sm:$0xff] %v4767_v52  ;;  %v744_v51 = vcombine.high %v4675_v47, %v4675_v47 }
 0x2c4   :  { %2645 = vbcast.lane.b32.xlu1 %v1426_v17, 256  ;;  %2477 = vbcast.lane.b32.xlu0 %v1258_v21, 256 }
 0x2c6   :  { %v4769_v53 = vpop.permute.xlu1 %2428  ;;  %v4771_v54 = vpop.permute.xlu0 %2442 }
 0x2c7   :  { %5822 = vst [vmem:[#allocation19_spill] sm:$0xff] %v4769_v53  ;;  %5823 = vst [vmem:[#allocation20_spill] sm:$0xff] %v4771_v54 }
 0x2c8   :  { %2652 = vbcast.lane.b32.xlu1 %v1433_v20, 256  ;;  %2484 = vbcast.lane.b32.xlu0 %v1265_v7, 256 }
 0x2ca   :  { %v4773_v56 = vpop.permute.xlu1 %2435  ;;  %v4775_v57 = vpop.permute.xlu0 %2449 }
 0x2cb   :  { %5824 = vst [vmem:[#allocation21_spill] sm:$0xff] %v4773_v56  ;;  %5825 = vst [vmem:[#allocation22_spill] sm:$0xff] %v4775_v57 }
 0x2cc   :  { %2680 = vbcast.lane.b32.xlu1 %v1461_v59, 256  ;;  %2491 = vbcast.lane.b32.xlu0 %v1272_v25, 256 }
 0x2ce   :  { %v4781_v62 = vpop.permute.xlu1 %1148  ;;  %v4783_v63 = vpop.permute.xlu0 %2456 }
 0x2cf   :  { %5826 = vst [vmem:[#allocation23_spill] sm:$0xff] %v4783_v63 }
 0x2d0   :  { %1365 = vbcast.lane.b32.xlu1 %v1363_v61, 256  ;;  %2519 = vbcast.lane.b32.xlu0 %v1300_v43, 256  ;;  %v1391_v43 = vrot.slane %v4725_v15, %v4656_v34 }
 0x2d2   :  { %v4787_v1 = vpop.permute.xlu1 %1155  ;;  %v4789_v4 = vpop.permute.xlu0 %2463 }
 0x2d3   :  { %5827 = vst [vmem:[#allocation24_spill] sm:$0xff] %v4789_v4 }
 0x2d4   :  { %1379 = vbcast.lane.b32.xlu1 %v1377_v0, 256  ;;  %1421 = vbcast.lane.b32.xlu0 %v1419_v5, 256 }
 0x2d6   :  { %v4797_v7 = vpop.permute.xlu1 %1162  ;;  %v4799_v10 = vpop.permute.xlu0 %1141 }
 0x2d8   :  { %1414 = vbcast.lane.b32.xlu1 %v4795_v6, 256  ;;  %1463 = vbcast.lane.b32.xlu0 %v1461_v59, 256 }
 0x2da   :  { %v4802_v11 = vpop.permute.xlu1 %1169  ;;  %v4804_v12 = vpop.permute.xlu0 %1176 }
 0x2dc   :  { %2582 = vbcast.lane.b32.xlu1 %v1363_v61, 256  ;;  %2638 = vbcast.lane.b32.xlu0 %v1419_v5, 256  ;;  %v1398_v61 = vrot.slane %v4725_v15, %v4659_v35  ;;  %v1405_v5 = vrot.slane %v4725_v15, %v4666_v41 }
 0x2de   :  { %v4806_v17 = vpop.permute.xlu1 %1183  ;;  %v4808_v20 = vpop.permute.xlu0 %1190 }
 0x2e0   :  { %2596 = vbcast.lane.b32.xlu1 %v1377_v0, 256  ;;  %2659 = vbcast.lane.b32.xlu0 %v1440_v22, 256 }
 0x2e2   :  { %v4810_v21 = vpop.permute.xlu1 %2358  ;;  %v4812_v25 = vpop.permute.xlu0 %2365 }
 0x2e3   :  { %5828 = vst [vmem:[#allocation25_spill] sm:$0xff] %v4810_v21  ;;  %5829 = vst [vmem:[#allocation26_spill] sm:$0xff] %v4812_v25  ;;  %v4887_v21 = vrot.slane %v4731_v19, %v4637_v26 }
 0x2e4   :  { %2610 = vbcast.lane.b32.xlu1 %v1391_v43, 256  ;;  %2666 = vbcast.lane.b32.xlu0 %v1447_v28, 256  ;;  %v1531_v28 = vrot.slane %v4729_v18, %v4589_v45 }
 0x2e6   :  { %v4816_v59 = vpop.permute.xlu1 %2372  ;;  %v4818_v37 = vpop.permute.xlu0 %2379 }
 0x2e7   :  { %5830 = vst [vmem:[#allocation27_spill] sm:$0xff] %v4816_v59  ;;  %5831 = vst [vmem:[#allocation28_spill] sm:$0xff] %v4818_v37  ;;  %v1573_v59 = vrot.slane %v4729_v18, %v4666_v41  ;;  %v1580_v37 = vrot.slane %v4729_v18, %v4669_v42 }
 0x2e8   :  { %2617 = vbcast.lane.b32.xlu1 %v1398_v61, 256  ;;  %2673 = vbcast.lane.b32.xlu0 %v1454_v33, 256  ;;  %v1552_v33 = vrot.slane %v4729_v18, %v4649_v31 }
 0x2ea   :  { %v4822_v0 = vpop.permute.xlu1 %2407  ;;  %v4824_v22 = vpop.permute.xlu0 %2386 }
 0x2eb   :  { %5832 = vst [vmem:[#allocation29_spill] sm:$0xff] %v4822_v0  ;;  %5833 = vst [vmem:[#allocation30_spill] sm:$0xff] %v4824_v22 }
 0x2ec   :  { %2624 = vbcast.lane.b32.xlu1 %v1405_v5, 256  ;;  %2687 = vbcast.lane.b32.xlu0 %v1468_v44, 256  ;;  %v1384_v44 = vrot.slane %v4725_v15, %v4649_v31 }
 0x2ee   :  { %v4830_v8 = vpop.permute.xlu1 %1309  ;;  %v4832_v13 = vpop.permute.xlu0 %2393 }
 0x2ef   :  { %5834 = vst [vmem:[#allocation31_spill] sm:$0xff] %v4832_v13 }
 0x2f0   :  { %1533 = vbcast.lane.b32.xlu1 %v1531_v28, 256  ;;  %1372 = vbcast.lane.b32.xlu0 %v1370_v16, 256 }
 0x2f2   :  { %v4838_v2 = vpop.permute.xlu1 %1323  ;;  %v4840_v9 = vpop.permute.xlu0 %2400 }
 0x2f3   :  { %5835 = vst [vmem:[#allocation32_spill] sm:$0xff] %v4840_v9 }
 0x2f4   :  { %1554 = vbcast.lane.b32.xlu1 %v1552_v33, 256  ;;  %1386 = vbcast.lane.b32.xlu0 %v1384_v44, 256 }
 0x2f6   :  { %v4846_v55 = vpop.permute.xlu1 %1337  ;;  %v4848_v60 = vpop.permute.xlu0 %1316 }
 0x2f8   :  { %1561 = vbcast.lane.b32.xlu1 %v1559_v50, 256  ;;  %1393 = vbcast.lane.b32.xlu0 %v1391_v43, 256  ;;  %v1538_v43 = vrot.slane %v4729_v18, %v4637_v26  ;;  %v1475_v26 = vrot.slane %v4731_v19, %v4589_v45 }
 0x2fa   :  { %v4852_v39 = vpop.permute.xlu1 %1351  ;;  %v4854_v0 = vpop.permute.xlu0 %1330 }
 0x2fc   :  { %1568 = vbcast.lane.b32.xlu1 %v1566_v46, 256  ;;  %1400 = vbcast.lane.b32.xlu0 %v1398_v61, 256  ;;  %v1545_v61 = vrot.slane %v4729_v18, %v4646_v30 }
 0x2fe   :  { %v4858_v9 = vpop.permute.xlu1 %2568  ;;  %v4860_v25 = vpop.permute.xlu0 %1344 }
 0x2ff   :  { %5836 = vst [vmem:[#allocation33_spill] sm:$0xff] %v4858_v9 }
 0x300   :  { %1575 = vbcast.lane.b32.xlu1 %v1573_v59, 256  ;;  %1407 = vbcast.lane.b32.xlu0 %v1405_v5, 256 }
 0x302   :  { %v4864_v13 = vpop.permute.xlu1 %1253  ;;  %v4866_v4 = vpop.permute.xlu0 %1358 }
 0x304   :  { %2757 = vbcast.lane.b32.xlu1 %v1538_v43, 256  ;;  %2589 = vbcast.lane.b32.xlu0 %v1370_v16, 256 }
 0x306   :  { %v4870_v22 = vpop.permute.xlu1 %1267  ;;  %v4872_v57 = vpop.permute.xlu0 %2526 }
 0x307   :  { %5837 = vst [vmem:[#allocation34_spill] sm:$0xff] %v4872_v57 }
 0x308   :  { %2764 = vbcast.lane.b32.xlu1 %v1545_v61, 256  ;;  %2603 = vbcast.lane.b32.xlu0 %v1384_v44, 256 }
 0x30a   :  { %v4874_v9 = vpop.permute.xlu1 %1281  ;;  %v4876_v5 = vpop.permute.xlu0 %2533 }
 0x30b   :  { %5838 = vst [vmem:[#allocation35_spill] sm:$0xff] %v4876_v5  ;;  %v4896_v5 = vrot.slane %v4731_v19, %v4649_v31  ;;  %v1489_v31 = vrot.slane %v4731_v19, %v4646_v30 }
 0x30c   :  { %2799 = vbcast.lane.b32.xlu1 %v1580_v37, 256  ;;  %2631 = vbcast.lane.b32.xlu0 %v4795_v6, 256 }
 0x30e   :  { %v4881_v16 = vpop.permute.xlu1 %1295  ;;  %v4883_v54 = vpop.permute.xlu0 %2540 }
 0x30f   :  { %5839 = vst [vmem:[#allocation36_spill] sm:$0xff] %v4883_v54 }
 0x310   :  { %1484 = vbcast.lane.b32.xlu1 %v4887_v21, 256  ;;  %1540 = vbcast.lane.b32.xlu0 %v1538_v43, 256 }
 0x312   :  { %v4890_v44 = vpop.permute.xlu1 %2498  ;;  %v4892_v57 = vpop.permute.xlu0 %2547 }
 0x313   :  { %5840 = vst [vmem:[#allocation37_spill] sm:$0xff] %v4890_v44  ;;  %5841 = vst [vmem:[#allocation38_spill] sm:$0xff] %v4892_v57 }
 0x314   :  { %1498 = vbcast.lane.b32.xlu1 %v4896_v5, 256  ;;  %1547 = vbcast.lane.b32.xlu0 %v1545_v61, 256 }
 0x316   :  { %v4899_v6 = vpop.permute.xlu1 %2505  ;;  %v4901_v54 = vpop.permute.xlu0 %2554 }
 0x317   :  { %5842 = vst [vmem:[#allocation39_spill] sm:$0xff] %v4899_v6  ;;  %5843 = vst [vmem:[#allocation40_spill] sm:$0xff] %v4901_v54  ;;  %v1503_v6 = vrot.slane %v4731_v19, %v4656_v34 }
 0x318   :  { %2694 = vbcast.lane.b32.xlu1 %v1475_v26, 256  ;;  %1582 = vbcast.lane.b32.xlu0 %v1580_v37, 256 }
 0x31a   :  { %v4905_v43 = vpop.permute.xlu1 %2512  ;;  %v4907_v44 = vpop.permute.xlu0 %2561 }
 0x31b   :  { %5844 = vst [vmem:[#allocation41_spill] sm:$0xff] %v4905_v43  ;;  %5845 = vst [vmem:[#allocation42_spill] sm:$0xff] %v4907_v44  ;;  %v1510_v43 = vrot.slane %v4731_v19, %v4659_v35 }
 0x31c   :  { %2708 = vbcast.lane.b32.xlu1 %v1489_v31, 256  ;;  %2750 = vbcast.lane.b32.xlu0 %v1531_v28, 256 }
 0x31e   :  { %v4911_v57 = vpop.permute.xlu1 %1428  ;;  %v4913_v61 = vpop.permute.xlu0 %2575 }
 0x31f   :  { %5846 = vst [vmem:[#allocation43_spill] sm:$0xff] %v4913_v61  ;;  %v1517_v61 = vrot.slane %v4731_v19, %v4666_v41 }
 0x320   :  { %2722 = vbcast.lane.b32.xlu1 %v1503_v6, 256  ;;  %2771 = vbcast.lane.b32.xlu0 %v1552_v33, 256  ;;  %v1524_v33 = vrot.slane %v4731_v19, %v4669_v42  ;;  %v793_v42 = vcombine.high %v4639_v27, %v4639_v27 }
 0x322   :  { %v4917_v54 = vpop.permute.xlu1 %1435  ;;  %v4919_v37 = vpop.permute.xlu0 %1260 }
 0x324   :  { %2729 = vbcast.lane.b32.xlu1 %v1510_v43, 256  ;;  %2778 = vbcast.lane.b32.xlu0 %v1559_v50, 256 }
 0x326   :  { %v4923_v30 = vpop.permute.xlu1 %1442  ;;  %v4925_v28 = vpop.permute.xlu0 %1274 }
 0x328   :  { %2736 = vbcast.lane.b32.xlu1 %v1517_v61, 256  ;;  %2785 = vbcast.lane.b32.xlu0 %v1566_v46, 256 }
 0x32a   :  { %v4929_v34 = vpop.permute.xlu0 %1288  ;;  %v4933_v44 = vpop.permute.xlu1 %1449 }
 0x32b   :  { %5847 = vst [vmem:[#allocation44_spill] sm:$0xff] %v4933_v44 }
 0x32c   :  { %2743 = vbcast.lane.b32.xlu1 %v1524_v33, 256  ;;  %2792 = vbcast.lane.b32.xlu0 %v1573_v59, 256 }
 0x32e   :  { %v4935_v35 = vpop.permute.xlu0 %1302  ;;  %v4937_v50 = vpop.permute.xlu1 %1456 }
 0x32f   :  { %5848 = vst [vmem:[#allocation45_spill] sm:$0xff] %v4937_v50 }
 0x330   :  { %1477 = vbcast.lane.b32.xlu0 %v1475_v26, 256  ;;  %v4955_v26 = vrot.slane %v4639_v27, %v4585_v40 }
 0x332   :  { %v4939_v56 = vpop.permute.xlu0 %2470  ;;  %v4943_v46 = vpop.permute.xlu1 %1470 }
 0x333   :  { %5849 = vst [vmem:[#allocation46_spill] sm:$0xff] %v4939_v56  ;;  %5851 = vst [vmem:[#allocation48_spill] sm:$0xff] %v4943_v46 }
 0x334   :  { %1491 = vbcast.lane.b32.xlu0 %v1489_v31, 256  ;;  %v4958_v31 = vrot.slane %v793_v42, %v4585_v40 }
 0x336   :  { %v4941_v41 = vpop.permute.xlu0 %2477  ;;  %v4949_v59 = vpop.permute.xlu1 %2645 }
 0x337   :  { %5850 = vst [vmem:[#allocation47_spill] sm:$0xff] %v4941_v41  ;;  %5853 = vst [vmem:[#allocation50_spill] sm:$0xff] %v4949_v59  ;;  %v751_v59 = vrot.slane %v4675_v47, %v4585_v40 }
 0x338   :  { %1505 = vbcast.lane.b32.xlu0 %v1503_v6, 256  ;;  %v4964_v6 = vrot.slane %v4955_v26, %v4585_v40 }
 0x339   :  { %v4991_v52 = vrot.slane %v751_v59, %v4585_v40 }
 0x33a   :  { %v4945_v63 = vpop.permute.xlu0 %2484 }
 0x33b   :  { %5852 = vst [vmem:[#allocation49_spill] sm:$0xff] %v4945_v63 }
 0x33c   :  { %1512 = vbcast.lane.b32.xlu0 %v1510_v43, 256  ;;  %v4968_v43 = vrot.slane %v4958_v31, %v4585_v40 }
 0x33e   :  { %v4951_v53 = vpop.permute.xlu0 %2491  ;;  %v839_v42 = vcombine.high %v4968_v43, %v4968_v43 }
 0x33f   :  { %5854 = vst [vmem:[#allocation51_spill] sm:$0xff] %v4951_v53  ;;  %v4972_v53 = vpop.permute.xlu1 %2652 }
 0x340   :  { %1519 = vbcast.lane.b32.xlu0 %v1517_v61, 256  ;;  %5856 = vst [vmem:[#allocation53_spill] sm:$0xff] %v4972_v53  ;;  %v1619_v61 = vrot.slane %v4964_v6, %v4589_v45  ;;  %v1643_v53 = vrot.slane %v839_v42, %v4589_v45 }
 0x342   :  { %v4960_v41 = vpop.permute.xlu0 %2519  ;;  %vm1912_vm3 = vcmp.gt.f32.partialorder %v1619_v61, %v4739_v23  ;;  %vm1918_vm5 = vcmp.gt.f32.partialorder %v1643_v53, %v4761_v48 }
 0x343   :  { %5855 = vst [vmem:[#allocation52_spill] sm:$0xff] %v4960_v41  ;;  %v759_v41 = vcombine.high %v751_v59, %v751_v59  ;;  %v4982_v63 = vpop.permute.xlu1 %2680  ;;  %v758_v59 = vrot.slane %v744_v51, %v4585_v40 }
 0x344   :  { %1526 = vbcast.lane.b32.xlu0 %v1524_v33, 256  ;;  %5857 = vst [vmem:[#allocation54_spill] sm:$0xff] %v4982_v63 }
 0x345   :  { %v4988_v33 = vrot.slane %v759_v41, %v4585_v40  ;;  %v1587_v41 = vrot.slane %v4991_v52, %v4589_v45  ;;  %v774_v63 = vrot.slane %v758_v59, %v4585_v40 }
 0x346   :  { %v4974_v27 = vpop.permute.xlu0 %1421 }
 0x347   :  { %v791_v61 = vcombine.high %v4988_v33, %v4988_v33  ;;  %v5005_v42 = vpop.permute.xlu1 %1365  ;;  %vm1904_vm6 = vcmp.gt.f32.partialorder %v1587_v41, %v4799_v10  ;;  %v1603_v10 = vrot.slane %v774_v63, %v4589_v45 }
 0x348   :  { %2701 = vbcast.lane.b32.xlu0 %v4887_v21, 256  ;;  %v5858_v21 = vmov 0.0  }
 0x349   :  { %v4180_v46 = vsel %vm1912_vm3, 1.0, %v5858_v21  ;;  %v1599_v53 = vrot.slane %v791_v61, %v4589_v45  ;;  %v4172_v51 = vsel %vm1904_vm6, 1.0, %v5858_v21  ;;  %v898_v61 = vrot.slane %v4693_v58, %v4585_v40 }
 0x34a   :  { %v4984_v56 = vpop.permute.xlu0 %1463  ;;  %v2121_v47 = vsel %vm2096_vm4, %v4180_v46, 0.0  ;;  %vm1908_vm8 = vcmp.gt.f32.partialorder %v1603_v10, %v4802_v11 }
 0x34b   :  { %vm1907_vm7 = vcmp.gt.f32.partialorder %v1599_v53, %v4797_v7  ;;  %v5017_v46 = vpop.permute.xlu1 %1379  ;;  %v808_v7 = vcombine.high %v4955_v26, %v4955_v26  ;;  %v4176_v11 = vsel %vm1908_vm8, 1.0, %v5858_v21  ;;  %v5045_v10 = vrot.slane %v898_v61, %v4585_v40 }
 0x34c   :  { %2715 = vbcast.lane.b32.xlu0 %v4896_v5, 256  ;;  %v4186_v5 = vsel %vm1918_vm5, 1.0, %v5858_v21 }
 0x34d   :  { %v2139_v50 = vsel %vm2096_vm4, %v4186_v5, 0.0  ;;  %v891_v5 = vcombine.high %v4693_v58, %v4693_v58  ;;  %v830_v26 = vrot.slane %v808_v7, %v4585_v40 }
 0x34e   :  { %v4998_v23 = vpop.permute.xlu0 %2638 }
 0x34f   :  { %5859 = vst [vmem:[#allocation55_spill] sm:$0xff] %v4998_v23  ;;  %v760_v23 = vcombine.high %v758_v59, %v758_v59  ;;  %v2097_v59 = vsel %vm2096_vm4, %v4172_v51, 0.0  ;;  %v5038_v44 = vpop.permute.xlu1 %1414 }
 0x350   :  { %2122 = vadd.xlane.f32.xlu1 %v2121_v47 }
 0x351   :  { %v5023_v41 = vrot.slane %v760_v23, %v4585_v40 }
 0x352   :  { %v5010_v48 = vpop.permute.xlu0 %2659 }
 0x353   :  { %5860 = vst [vmem:[#allocation56_spill] sm:$0xff] %v5010_v48  ;;  %v1607_v23 = vrot.slane %v5023_v41, %v4589_v45  ;;  %v906_v48 = vcombine.high %v898_v61, %v898_v61  ;;  %v5059_v7 = vpop.permute.xlu1 %2582  ;;  %v1623_v61 = vrot.slane %v830_v26, %v4589_v45 }
 0x354   :  { %2140 = vadd.xlane.f32.xlu1 %v2139_v50  ;;  %v4175_v50 = vsel %vm1907_vm7, 1.0, %v5858_v21  ;;  %5864 = vst [vmem:[#allocation60_spill] sm:$0xff] %v5059_v7 }
 0x355   :  { %v2106_v51 = vsel %vm2096_vm4, %v4175_v50, 0.0  ;;  %vm1909_vm9 = vcmp.gt.f32.partialorder %v1607_v23, %v4804_v12  ;;  %v2109_v50 = vsel %vm2096_vm4, %v4176_v11, 0.0  ;;  %vm1913_vm11 = vcmp.gt.f32.partialorder %v1623_v61, %v4741_v24 }
 0x356   :  { %v5019_v47 = vpop.permute.xlu0 %2666  ;;  %v4177_v12 = vsel %vm1909_vm9, 1.0, %v5858_v21  ;;  %v840_v11 = vcombine.high %v830_v26, %v830_v26 }
 0x357   :  { %5861 = vst [vmem:[#allocation57_spill] sm:$0xff] %v5019_v47  ;;  %v790_v47 = vcombine.high %v774_v63, %v774_v63  ;;  %v5051_v63 = vrot.slane %v891_v5, %v4585_v40  ;;  %v5088_v24 = vpop.permute.xlu1 %2596 }
 0x358   :  { %2098 = vadd.xlane.f32.xlu1 %v2097_v59  ;;  %5865 = vst [vmem:[#allocation61_spill] sm:$0xff] %v5088_v24 }
 0x359   :  { %v1611_v58 = vrot.slane %v790_v47, %v4589_v45  ;;  %v838_v47 = vcombine.high %v4964_v6, %v4964_v6  ;;  %v5070_v5 = vrot.slane %v5051_v63, %v4585_v40 }
 0x35a   :  { %v5034_v53 = vpop.permute.xlu0 %2673 }
 0x35b   :  { %5862 = vst [vmem:[#allocation58_spill] sm:$0xff] %v5034_v53  ;;  %v5054_v53 = vrot.slane %v906_v48, %v4585_v40  ;;  %vm1910_vm10 = vcmp.gt.f32.partialorder %v1611_v58, %v4806_v17  ;;  %v936_v48 = vcombine.high %v5045_v10, %v5045_v10  ;;  %v2112_v58 = vsel %vm2096_vm4, %v4177_v12, 0.0 }
 0x35c   :  { %2107 = vadd.xlane.f32.xlu1 %v2106_v51  ;;  %v4178_v17 = vsel %vm1910_vm10, 1.0, %v5858_v21  ;;  %v1627_v6 = vrot.slane %v838_v47, %v4589_v45  ;;  %v937_v12 = vcombine.high %v5070_v5, %v5070_v5  ;;  %v1631_v47 = vrot.slane %v840_v11, %v4589_v45 }
 0x35d   :  { %v1687_v51 = vrot.slane %v5054_v53, %v4589_v45  ;;  %v1691_v7 = vrot.slane %v936_v48, %v4589_v45  ;;  %v2115_v61 = vsel %vm2096_vm4, %v4178_v17, 0.0  ;;  %v809_v48 = vcombine.high %v4958_v31, %v4958_v31 }
 0x35e   :  { %v5047_v59 = vpop.permute.xlu0 %2687  ;;  %vm1914_vm13 = vcmp.gt.f32.partialorder %v1627_v6, %v4747_v29  ;;  %v1707_v24 = vrot.slane %v937_v12, %v4589_v45  ;;  %v842_v29 = vcombine.high %v4707_v3, %v4707_v3  ;;  %vm1915_vm15 = vcmp.gt.f32.partialorder %v1631_v47, %v4749_v32  ;;  %v5111_v6 = vpop.permute.xlu1 %2610 }
 0x35f   :  { %5863 = vst [vmem:[#allocation59_spill] sm:$0xff] %v5047_v59  ;;  %vm1929_vm12 = vcmp.gt.f32.partialorder %v1687_v51, %v4848_v60  ;;  %v4181_v60 = vsel %vm1913_vm11, 1.0, %v5858_v21  ;;  %vm1930_vm14 = vcmp.gt.f32.partialorder %v1691_v7, %v4838_v2  ;;  %v4182_v7 = vsel %vm1914_vm13, 1.0, %v5858_v21 }
 0x360   :  { %2110 = vadd.xlane.f32.xlu1 %v2109_v50  ;;  %v5081_v50 = vrot.slane %v4707_v3, %v4585_v40  ;;  %v4197_v26 = vsel %vm1929_vm12, 1.0, %v5858_v21  ;;  %v2124_v17 = vsel %vm2096_vm4, %v4181_v60, 0.0  ;;  %v4198_v31 = vsel %vm1930_vm14, 1.0, %v5858_v21 }
 0x361   :  { %v2172_v2 = vsel %vm2096_vm4, %v4197_v26, 0.0  ;;  %vm1934_vm0 = vcmp.gt.f32.partialorder %v1707_v24, %v4852_v39  ;;  %v1635_v11 = vrot.slane %v4968_v43, %v4589_v45  ;;  %v837_v12 = vrot.slane %v809_v48, %v4585_v40 }
 0x362   :  { %v5064_v23 = vpop.permute.xlu0 %1372  ;;  %v865_v51 = vrot.slane %v5081_v50, %v4585_v40  ;;  %v2127_v26 = vsel %vm2096_vm4, %v4182_v7, 0.0  ;;  %v856_v32 = vrot.slane %v842_v29, %v4585_v40  ;;  %v2175_v47 = vsel %vm2096_vm4, %v4198_v31, 0.0 }
 0x363   :  { %v4183_v39 = vsel %vm1915_vm15, 1.0, %v5858_v21  ;;  %vm1916_vm1 = vcmp.gt.f32.partialorder %v1635_v11, %v4753_v36  ;;  %v4202_v43 = vsel %vm1934_vm0, 1.0, %v5858_v21  ;;  %v1639_v24 = vrot.slane %v837_v12, %v4589_v45 }
 0x364   :  { %2113 = vadd.xlane.f32.xlu1 %v2112_v58  ;;  %v841_v48 = vcombine.high %v837_v12, %v837_v12  ;;  %v2130_v29 = vsel %vm2096_vm4, %v4183_v39, 0.0  ;;  %v872_v7 = vrot.slane %v856_v32, %v4585_v40  ;;  %v858_v31 = vcombine.high %v856_v32, %v856_v32 }
 0x365   :  { %v2187_v36 = vsel %vm2096_vm4, %v4202_v43, 0.0  ;;  %v4184_v11 = vsel %vm1916_vm1, 1.0, %v5858_v21  ;;  %vm1917_vm5 = vcmp.gt.f32.partialorder %v1639_v24, %v4755_v38  ;;  %v1591_v24 = vrot.slane %v4988_v33, %v4589_v45 }
 0x366   :  { %v5083_v59 = vpop.permute.xlu0 %1386  ;;  %v1647_v12 = vrot.slane %v841_v48, %v4589_v45  ;;  %v2133_v32 = vsel %vm2096_vm4, %v4184_v11, 0.0  ;;  %v5147_v39 = vrot.slane %v858_v31, %v4585_v40  ;;  %v4185_v43 = vsel %vm1917_vm5, 1.0, %v5858_v21 }
 0x367   :  { %v789_v48 = vcombine.high %v4991_v52, %v4991_v52  ;;  %vm5170_vm9 = vcmp.gt.f32.partialorder %v1591_v24, %v4781_v62 }
 0x368   :  { %2116 = vadd.xlane.f32.xlu1 %v2115_v61  ;;  %v887_v61 = vcombine.high %v865_v51, %v865_v51  ;;  %vm1919_vm7 = vcmp.gt.f32.partialorder %v1647_v12, %v4763_v49  ;;  %v2136_v49 = vsel %vm2096_vm4, %v4185_v43, 0.0  ;;  %v4458_v12 = vmov 0  }
 0x369   :  { %v4187_v52 = vsel %vm1919_vm7, 1.0, %v5858_v21  ;;  %4396 = vset.pattern.permute.xlu0 %v4458_v12  ;;  %4397 = vset.pattern.permute.xlu1 %v4458_v12  ;;  %v1683_v12 = vrot.slane %v5045_v10, %v4589_v45 }
 0x36a   :  { %v5100_v58 = vpop.permute.xlu0 %1393 }
 0x36b   :  { %2125 = vadd.xlane.f32.xlu0 %v2124_v17  ;;  %v1651_v17 = vrot.slane %v865_v51, %v4589_v45  ;;  %vm1928_vm15 = vcmp.gt.f32.partialorder %v1683_v12, %v4830_v8  ;;  %v1699_v12 = vrot.slane %v5070_v5, %v4589_v45 }
 0x36c   :  { %2173 = vadd.xlane.f32.xlu1 %v2172_v2  ;;  %v1659_v2 = vrot.slane %v887_v61, %v4589_v45  ;;  %v996_v61 = vrot.slane %v4723_v14, %v4585_v40 }
 0x36d   :  { %vm1920_vm3 = vcmp.gt.f32.partialorder %v1651_v17, %v4864_v13  ;;  %vm1932_vm5 = vcmp.gt.f32.partialorder %v1699_v12, %v4846_v55 }
 0x36e   :  { %v5116_v60 = vpop.permute.xlu0 %1400  ;;  %v4188_v13 = vsel %vm1920_vm3, 1.0, %v5858_v21  ;;  %vm1922_vm6 = vcmp.gt.f32.partialorder %v1659_v2, %v4870_v22  ;;  %v1004_v31 = vcombine.high %v996_v61, %v996_v61  ;;  %v5183_v62 = vrot.slane %v996_v61, %v4585_v40 }
 0x36f   :  { %2128 = vadd.xlane.f32.xlu0 %v2127_v26  ;;  %v5132_v26 = vpop.permute.xlu1 %2617  ;;  %v2145_v38 = vsel %vm2096_vm4, %v4188_v13, 0.0  ;;  %v4190_v22 = vsel %vm1922_vm6, 1.0, %v5858_v21  ;;  %v1671_v13 = vrot.slane %v5147_v39, %v4589_v45 }
 0x370   :  { %2176 = vadd.xlane.f32.xlu1 %v2175_v47  ;;  %v1667_v47 = vrot.slane %v872_v7, %v4589_v45  ;;  %v2151_v33 = vsel %vm2096_vm4, %v4190_v22, 0.0  ;;  %v2142_v22 = vsel %vm2096_vm4, %v4187_v52, 0.0 }
 0x371   :  { %vm1925_vm10 = vcmp.gt.f32.partialorder %v1671_v13, %v4929_v34 }
 0x372   :  { %v5128_v51 = vpop.permute.xlu0 %1407  ;;  %vm1924_vm8 = vcmp.gt.f32.partialorder %v1667_v47, %v4874_v9  ;;  %v792_v47 = vcombine.high %v5023_v41, %v5023_v41  ;;  %v4193_v61 = vsel %vm1925_vm10, 1.0, %v5858_v21 }
 0x373   :  { %2131 = vadd.xlane.f32.xlu0 %v2130_v29  ;;  %v5158_v2 = vpop.permute.xlu1 %2624  ;;  %v888_v29 = vcombine.high %v872_v7, %v872_v7  ;;  %v4192_v7 = vsel %vm1924_vm8, 1.0, %v5858_v21  ;;  %v2160_v52 = vsel %vm2096_vm4, %v4193_v61, 0.0 }
 0x374   :  { %2188 = vadd.xlane.f32.xlu1 %v2187_v36  ;;  %v989_v36 = vcombine.high %v4723_v14, %v4723_v14  ;;  %v2157_v41 = vsel %vm2096_vm4, %v4192_v7, 0.0 }
 0x375   :  { %v1675_v24 = vrot.slane %v888_v29, %v4589_v45  ;;  %v1615_v29 = vrot.slane %v792_v47, %v4589_v45 }
 0x376   :  { %v5142_v17 = vpop.permute.xlu0 %2589 }
 0x377   :  { %2134 = vadd.xlane.f32.xlu0 %v2133_v32  ;;  %v1595_v32 = vrot.slane %v789_v48, %v4589_v45  ;;  %v5190_v48 = vrot.slane %v989_v36, %v4585_v40  ;;  %v5192_v34 = vpop.permute.xlu1 %1533  ;;  %vm1926_vm12 = vcmp.gt.f32.partialorder %v1675_v24, %v4881_v16  ;;  %v1034_v36 = vcombine.high %v5183_v62, %v5183_v62 }
 0x378   :  { %2146 = vadd.xlane.f32.xlu1 %v2145_v38  ;;  %v5180_v38 = vrot.slane %v1004_v31, %v4585_v40  ;;  %v4173_v31 = vsel %vm5170_vm9, 1.0, %v5858_v21  ;;  %vm1911_vm13 = vcmp.gt.f32.partialorder %v1615_v29, %v4808_v20  ;;  %v4194_v9 = vsel %vm1926_vm12, 1.0, %v5858_v21 }
 0x379   :  { %vm1906_vm11 = vcmp.gt.f32.partialorder %v1595_v32, %v4787_v1  ;;  %v2100_v13 = vsel %vm2096_vm4, %v4173_v31, 0.0  ;;  %v5211_v1 = vrot.slane %v5190_v48, %v4585_v40  ;;  %v938_v32 = vcombine.high %v5054_v53, %v5054_v53 }
 0x37a   :  { %v5162_v11 = vpop.permute.xlu0 %2603  ;;  %v4174_v16 = vsel %vm1906_vm11, 1.0, %v5858_v21  ;;  %v1755_v47 = vrot.slane %v1034_v36, %v4589_v45  ;;  %v5230_v20 = vrot.slane %v4725_v15, %v4585_v40  ;;  %v4179_v10 = vsel %vm1911_vm13, 1.0, %v5858_v21 }
 0x37b   :  { %2137 = vadd.xlane.f32.xlu0 %v2136_v49  ;;  %v5218_v7 = vpop.permute.xlu1 %1554  ;;  %v2103_v24 = vsel %vm2096_vm4, %v4174_v16, 0.0  ;;  %v907_v31 = vcombine.high %v5051_v63, %v5051_v63  ;;  %v1695_v61 = vrot.slane %v938_v32, %v4589_v45  ;;  %v940_v29 = vcombine.high %v4725_v15, %v4725_v15 }
 0x37c   :  { %2152 = vadd.xlane.f32.xlu1 %v2151_v33  ;;  %v1751_v33 = vrot.slane %v5180_v38, %v4589_v45  ;;  %vm1946_vm0 = vcmp.gt.f32.partialorder %v1755_v47, %v4917_v54  ;;  %v963_v8 = vrot.slane %v5230_v20, %v4585_v40  ;;  %v4196_v54 = vsel %vm1928_vm15, 1.0, %v5858_v21 }
 0x37d   :  { %vm1931_vm1 = vcmp.gt.f32.partialorder %v1695_v61, %v4854_v0  ;;  %v4214_v16 = vsel %vm1946_vm0, 1.0, %v5858_v21  ;;  %v954_v32 = vrot.slane %v940_v29, %v4585_v40 }
 0x37e   :  { %v5185_v43 = vpop.permute.xlu0 %2631  ;;  %vm1945_vm14 = vcmp.gt.f32.partialorder %v1751_v33, %v4911_v57  ;;  %v1035_v57 = vcombine.high %v5211_v1, %v5211_v1  ;;  %v2223_v0 = vsel %vm2096_vm4, %v4214_v16, 0.0 }
 0x37f   :  { %2143 = vadd.xlane.f32.xlu0 %v2142_v22  ;;  %v4213_v53 = vsel %vm1945_vm14, 1.0, %v5858_v21  ;;  %v956_v29 = vcombine.high %v954_v32, %v954_v32 }
 0x380   :  { %2158 = vadd.xlane.f32.xlu1 %v2157_v41  ;;  %v2163_v41 = vsel %vm2096_vm4, %v4194_v9, 0.0  ;;  %v1771_v33 = vrot.slane %v1035_v57, %v4589_v45  ;;  %v2220_v63 = vsel %vm2096_vm4, %v4213_v53, 0.0  ;;  %v935_v9 = vrot.slane %v907_v31, %v4585_v40 }
 0x381   :  { %v1715_v57 = vrot.slane %v963_v8, %v4589_v45  ;;  %v857_v53 = vcombine.high %v5081_v50, %v5081_v50 }
 0x382   :  { %v5204_v49 = vpop.permute.xlu0 %1540  ;;  %vm1950_vm3 = vcmp.gt.f32.partialorder %v1771_v33, %v4984_v56  ;;  %v1703_v5 = vrot.slane %v935_v9, %v4589_v45  ;;  %v939_v61 = vcombine.high %v935_v9, %v935_v9  ;;  %v5288_v9 = vrot.slane %v956_v29, %v4585_v40 }
 0x383   :  { %2101 = vadd.xlane.f32.xlu0 %v2100_v13  ;;  %v2118_v13 = vsel %vm2096_vm4, %v4179_v10, 0.0  ;;  %v4199_v10 = vsel %vm1931_vm1, 1.0, %v5858_v21  ;;  %v4218_v56 = vsel %vm1950_vm3, 1.0, %v5858_v21  ;;  %vm1936_vm6 = vcmp.gt.f32.partialorder %v1715_v57, %v5005_v42 }
 0x384   :  { %2161 = vadd.xlane.f32.xlu1 %v2160_v52  ;;  %v5250_v52 = vpop.permute.xlu1 %1561  ;;  %v2178_v55 = vsel %vm2096_vm4, %v4199_v10, 0.0  ;;  %vm1933_vm7 = vcmp.gt.f32.partialorder %v1703_v5, %v4860_v25  ;;  %v4204_v42 = vsel %vm1936_vm6, 1.0, %v5858_v21  ;;  %v879_v50 = vrot.slane %v857_v53, %v4585_v40 }
 0x385   :  { %v1711_v16 = vrot.slane %v939_v61, %v4589_v45  ;;  %v1094_v25 = vrot.slane %v4729_v18, %v4585_v40  ;;  %v1087_v57 = vcombine.high %v4729_v18, %v4729_v18  ;;  %v1735_v53 = vrot.slane %v5288_v9, %v4589_v45 }
 0x386   :  { %v5225_v22 = vpop.permute.xlu0 %1547  ;;  %v1655_v5 = vrot.slane %v879_v50, %v4589_v45 }
 0x387   :  { %2104 = vadd.xlane.f32.xlu0 %v2103_v24  ;;  %v2169_v24 = vsel %vm2096_vm4, %v4196_v54, 0.0  ;;  %v4200_v54 = vsel %vm1932_vm5, 1.0, %v5858_v21  ;;  %vm1935_vm9 = vcmp.gt.f32.partialorder %v1711_v16, %v4866_v4  ;;  %vm1941_vm12 = vcmp.gt.f32.partialorder %v1735_v53, %v5116_v60 }
 0x388   :  { %2164 = vadd.xlane.f32.xlu1 %v2163_v41  ;;  %v985_v41 = vcombine.high %v963_v8, %v963_v8  ;;  %v5273_v31 = vpop.permute.xlu1 %1568  ;;  %vm1921_vm11 = vcmp.gt.f32.partialorder %v1655_v5, %v4919_v37  ;;  %v5325_v16 = vrot.slane %v1094_v25, %v4585_v40 }
 0x38a   :  { %v5244_v36 = vpop.permute.xlu0 %1582  ;;  %v1723_v33 = vrot.slane %v985_v41, %v4589_v45 }
 0x38b   :  { %2119 = vadd.xlane.f32.xlu0 %v2118_v13  ;;  %v970_v13 = vrot.slane %v954_v32, %v4585_v40 }
 0x38c   :  { %2221 = vadd.xlane.f32.xlu1 %v2220_v63  ;;  %v2235_v63 = vsel %vm2096_vm4, %v4218_v56, 0.0  ;;  %vm1938_vm8 = vcmp.gt.f32.partialorder %v1723_v33, %v5017_v46  ;;  %v5298_v41 = vpop.permute.xlu1 %1575  ;;  %v2193_v46 = vsel %vm2096_vm4, %v4204_v42, 0.0  ;;  %v889_v56 = vcombine.high %v879_v50, %v879_v50 }
 0x38d   :  { %v1731_v12 = vrot.slane %v970_v13, %v4589_v45  ;;  %v4206_v10 = vsel %vm1938_vm8, 1.0, %v5858_v21  ;;  %v986_v61 = vcombine.high %v970_v13, %v970_v13  ;;  %v1102_v33 = vcombine.high %v1094_v25, %v1094_v25 }
 0x38e   :  { %v5261_v47 = vpop.permute.xlu0 %2750  ;;  %v2199_v4 = vsel %vm2096_vm4, %v4206_v10, 0.0  ;;  %v1663_v13 = vrot.slane %v889_v56, %v4589_v45  ;;  %v890_v50 = vcombine.high %v5147_v39, %v5147_v39  ;;  %v4189_v39 = vsel %vm1921_vm11, 1.0, %v5858_v21 }
 0x38f   :  { %2170 = vadd.xlane.f32.xlu0 %v2169_v24  ;;  %v2181_v24 = vsel %vm2096_vm4, %v4200_v54, 0.0  ;;  %vm1940_vm10 = vcmp.gt.f32.partialorder %v1731_v12, %v5100_v58  ;;  %v4203_v54 = vsel %vm1935_vm9, 1.0, %v5858_v21  ;;  %v1739_v12 = vrot.slane %v986_v61, %v4589_v45 }
 0x390   :  { %2224 = vadd.xlane.f32.xlu1 %v2223_v0  ;;  %v4201_v0 = vsel %vm1933_vm7, 1.0, %v5858_v21  ;;  %v4208_v58 = vsel %vm1940_vm10, 1.0, %v5858_v21  ;;  %v5320_v42 = vpop.permute.xlu1 %2757  ;;  %v2190_v37 = vsel %vm2096_vm4, %v4203_v54, 0.0  ;;  %vm1923_vm13 = vcmp.gt.f32.partialorder %v1663_v13, %v4925_v28 }
 0x391   :  { %v4209_v25 = vsel %vm1941_vm12, 1.0, %v5858_v21  ;;  %vm1942_vm14 = vcmp.gt.f32.partialorder %v1739_v12, %v5128_v51  ;;  %v1132_v10 = vcombine.high %v5325_v16, %v5325_v16  ;;  %v2148_v56 = vsel %vm2096_vm4, %v4189_v39, 0.0 }
 0x392   :  { %v5276_v8 = vpop.permute.xlu0 %2771  ;;  %v2208_v61 = vsel %vm2096_vm4, %v4209_v25, 0.0  ;;  %v4191_v51 = vsel %vm1923_vm13, 1.0, %v5858_v21  ;;  %v1747_v54 = vrot.slane %v5183_v62, %v4589_v45  ;;  %v1038_v39 = vcombine.high %v4731_v19, %v4731_v19 }
 0x393   :  { %2179 = vadd.xlane.f32.xlu0 %v2178_v55  ;;  %v2184_v55 = vsel %vm2096_vm4, %v4201_v0, 0.0  ;;  %v1679_v0 = vrot.slane %v890_v50, %v4589_v45  ;;  %v2154_v13 = vsel %vm2096_vm4, %v4191_v51, 0.0 }
 0x394   :  { %2236 = vadd.xlane.f32.xlu1 %v2235_v63  ;;  %v5312_v63 = vrot.slane %v1087_v57, %v4585_v40  ;;  %v5332_v57 = vrot.slane %v1102_v33, %v4585_v40  ;;  %v5348_v53 = vpop.permute.xlu1 %2764  ;;  %v4210_v33 = vsel %vm1942_vm14, 1.0, %v5858_v21  ;;  %vm1944_vm1 = vcmp.gt.f32.partialorder %v1747_v54, %v4974_v27 }
 0x395   :  { %vm1927_vm15 = vcmp.gt.f32.partialorder %v1679_v0, %v4935_v35  ;;  %v1819_v35 = vrot.slane %v1132_v10, %v4589_v45 }
 0x396   :  { %v5291_v32 = vpop.permute.xlu0 %2778  ;;  %v1103_v60 = vcombine.high %v5312_v63, %v5312_v63  ;;  %v1815_v28 = vrot.slane %v5332_v57, %v4589_v45  ;;  %v4195_v12 = vsel %vm1927_vm15, 1.0, %v5858_v21 }
 0x397   :  { %2182 = vadd.xlane.f32.xlu0 %v2181_v24  ;;  %vm1962_vm3 = vcmp.gt.f32.partialorder %v1819_v35, %v5225_v22  ;;  %v2166_v25 = vsel %vm2096_vm4, %v4195_v12, 0.0  ;;  %v4212_v22 = vsel %vm1944_vm1, 1.0, %v5858_v21 }
 0x398   :  { %2194 = vadd.xlane.f32.xlu1 %v2193_v46  ;;  %v2205_v46 = vsel %vm2096_vm4, %v4208_v58, 0.0  ;;  %v5346_v5 = vrot.slane %v1103_v60, %v4585_v40  ;;  %vm1961_vm0 = vcmp.gt.f32.partialorder %v1815_v28, %v5204_v49  ;;  %v5363_v58 = vrot.slane %v4731_v19, %v4585_v40  ;;  %v5373_v62 = vpop.permute.xlu1 %2799 }
 0x399   :  { %v2211_v49 = vsel %vm2096_vm4, %v4210_v33, 0.0  ;;  %v1005_v60 = vcombine.high %v5190_v48, %v5190_v48  ;;  %v4230_v48 = vsel %vm1962_vm3, 1.0, %v5858_v21  ;;  %v2217_v51 = vsel %vm2096_vm4, %v4212_v22, 0.0 }
 0x39a   :  { %v5308_v29 = vpop.permute.xlu0 %2785  ;;  %v1135_v50 = vcombine.high %v5346_v5, %v5346_v5  ;;  %v1061_v0 = vrot.slane %v5363_v58, %v4585_v40 }
 0x39b   :  { %2185 = vadd.xlane.f32.xlu0 %v2184_v55  ;;  %v1033_v28 = vrot.slane %v1005_v60, %v4585_v40 }
 0x39c   :  { %2200 = vadd.xlane.f32.xlu1 %v2199_v4  ;;  %v1036_v4 = vcombine.high %v5180_v38, %v5180_v38  ;;  %v4229_v38 = vsel %vm1961_vm0, 1.0, %v5858_v21  ;;  %v1839_v27 = vrot.slane %v1135_v50, %v4589_v45  ;;  %v5395_v33 = vpop.permute.xlu1 %1484  ;;  %v1083_v54 = vcombine.high %v1061_v0, %v1061_v0 }
 0x39d   :  { %v2268_v10 = vsel %vm2096_vm4, %v4229_v38, 0.0  ;;  %v955_v50 = vcombine.high %v5230_v20, %v5230_v20  ;;  %v1037_v12 = vcombine.high %v1033_v28, %v1033_v28 }
 0x39e   :  { %v5328_v24 = vpop.permute.xlu0 %2792  ;;  %vm1967_vm6 = vcmp.gt.f32.partialorder %v1839_v27, %v5244_v36  ;;  %v5868_v36 = vld [vmem:[#allocation44_spill] sm:$0xff]  ;;  %v1787_v60 = vrot.slane %v1083_v54, %v4589_v45 }
 0x39f   :  { %2191 = vadd.xlane.f32.xlu0 %v2190_v37  ;;  %v1759_v37 = vrot.slane %v1036_v4, %v4589_v45  ;;  %v1779_v4 = vrot.slane %v1061_v0, %v4589_v45  ;;  %v5869_v0 = vld [vmem:[#allocation45_spill] sm:$0xff]  ;;  %v977_v22 = vrot.slane %v955_v50, %v4585_v40  ;;  %v5870_v54 = vld [vmem:[#allocation48_spill] sm:$0xff] }
 0x3a0   :  { %2206 = vadd.xlane.f32.xlu1 %v2205_v46 }
 0x3a1   :  { %vm1947_vm5 = vcmp.gt.f32.partialorder %v1759_v37, %v4923_v30  ;;  %v2271_v30 = vsel %vm2096_vm4, %v4230_v48, 0.0 }
 0x3a2   :  { %v1478_v55 = vpop.permute.xlu0 %1477 }
 0x3a3   :  { %2149 = vadd.xlane.f32.xlu0 %v2148_v56  ;;  %v1763_v56 = vrot.slane %v5211_v1, %v4589_v45  ;;  %v4235_v1 = vsel %vm1967_vm6, 1.0, %v5858_v21  ;;  %vm1952_vm8 = vcmp.gt.f32.partialorder %v1779_v4, %v1478_v55  ;;  %v5412_v55 = vpop.permute.xlu1 %1498 }
 0x3a4   :  { %2209 = vadd.xlane.f32.xlu1 %v2208_v61  ;;  %v1052_v61 = vrot.slane %v1038_v39, %v4585_v40  ;;  %v4220_v20 = vsel %vm1952_vm8, 1.0, %v5858_v21 }
 0x3a5   :  { %vm1948_vm7 = vcmp.gt.f32.partialorder %v1763_v56, %v5868_v36 }
 0x3a6   :  { %v1492_v46 = vpop.permute.xlu0 %1491  ;;  %v1068_v38 = vrot.slane %v1052_v61, %v4585_v40  ;;  %v1054_v39 = vcombine.high %v1052_v61, %v1052_v61  ;;  %v4216_v27 = vsel %vm1948_vm7, 1.0, %v5858_v21 }
 0x3a7   :  { %2155 = vadd.xlane.f32.xlu0 %v2154_v13  ;;  %v4215_v13 = vsel %vm1947_vm5, 1.0, %v5858_v21  ;;  %vm1954_vm10 = vcmp.gt.f32.partialorder %v1787_v60, %v1492_v46  ;;  %v2229_v56 = vsel %vm2096_vm4, %v4216_v27, 0.0 }
 0x3a8   :  { %2212 = vadd.xlane.f32.xlu1 %v2211_v49  ;;  %v1767_v49 = vrot.slane %v1033_v28, %v4589_v45  ;;  %v2226_v37 = vsel %vm2096_vm4, %v4215_v13, 0.0  ;;  %v1795_v28 = vrot.slane %v1068_v38, %v4589_v45  ;;  %v1082_v61 = vrot.slane %v1054_v39, %v4585_v40 }
 0x3a9   :  { %v4222_v46 = vsel %vm1954_vm10, 1.0, %v5858_v21  ;;  %v987_v13 = vcombine.high %v977_v22, %v977_v22  ;;  %v988_v39 = vcombine.high %v5288_v9, %v5288_v9 }
 0x3aa   :  { %v1506_v35 = vpop.permute.xlu0 %1505  ;;  %vm1949_vm9 = vcmp.gt.f32.partialorder %v1767_v49, %v5869_v0  ;;  %v1799_v50 = vrot.slane %v1082_v61, %v4589_v45  ;;  %v1084_v49 = vcombine.high %v1068_v38, %v1068_v38  ;;  %v1086_v0 = vcombine.high %v1082_v61, %v1082_v61 }
 0x3ab   :  { %2167 = vadd.xlane.f32.xlu0 %v2166_v25  ;;  %v2286_v25 = vsel %vm2096_vm4, %v4235_v1, 0.0  ;;  %v4217_v4 = vsel %vm1949_vm9, 1.0, %v5858_v21  ;;  %vm1956_vm12 = vcmp.gt.f32.partialorder %v1795_v28, %v1506_v35  ;;  %v5425_v1 = vpop.permute.xlu1 %2694  ;;  %v1743_v9 = vrot.slane %v988_v39, %v4589_v45 }
 0x3ac   :  { %2269 = vadd.xlane.f32.xlu1 %v2268_v10  ;;  %v1775_v10 = vrot.slane %v1037_v12, %v4589_v45  ;;  %v2232_v36 = vsel %vm2096_vm4, %v4217_v4, 0.0  ;;  %v2247_v12 = vsel %vm2096_vm4, %v4222_v46, 0.0  ;;  %v4224_v35 = vsel %vm1956_vm12, 1.0, %v5858_v21 }
 0x3ad   :  { %v1803_v38 = vrot.slane %v1084_v49, %v4589_v45  ;;  %v1807_v28 = vrot.slane %v1086_v0, %v4589_v45  ;;  %vm1943_vm1 = vcmp.gt.f32.partialorder %v1743_v9, %v5038_v44  ;;  %v1811_v4 = vrot.slane %v5325_v16, %v4589_v45 }
 0x3ae   :  { %v1513_v48 = vpop.permute.xlu0 %1512  ;;  %vm1951_vm11 = vcmp.gt.f32.partialorder %v1775_v10, %v5870_v54  ;;  %v1134_v54 = vcombine.high %v5332_v57, %v5332_v57  ;;  %v1117_v16 = vrot.slane %v5312_v63, %v4585_v40  ;;  %v1831_v63 = vrot.slane %v5346_v5, %v4589_v45 }
 0x3af   :  { %2218 = vadd.xlane.f32.xlu0 %v2217_v51  ;;  %v2241_v51 = vsel %vm2096_vm4, %v4220_v20, 0.0  ;;  %vm1957_vm14 = vcmp.gt.f32.partialorder %v1799_v50, %v1513_v48  ;;  %v2253_v20 = vsel %vm2096_vm4, %v4224_v35, 0.0  ;;  %vm1960_vm5 = vcmp.gt.f32.partialorder %v1811_v4, %v5192_v34 }
 0x3b0   :  { %2272 = vadd.xlane.f32.xlu1 %v2271_v30  ;;  %v1719_v30 = vrot.slane %v977_v22, %v4589_v45  ;;  %v4225_v10 = vsel %vm1957_vm14, 1.0, %v5858_v21  ;;  %v5441_v22 = vpop.permute.xlu1 %2708  ;;  %v1823_v50 = vrot.slane %v1134_v54, %v4589_v45  ;;  %v1827_v34 = vrot.slane %v1117_v16, %v4589_v45 }
 0x3b1   :  { %v2256_v61 = vsel %vm2096_vm4, %v4225_v10, 0.0  ;;  %v1133_v39 = vcombine.high %v1117_v16, %v1117_v16  ;;  %vm1965_vm8 = vcmp.gt.f32.partialorder %v1831_v63, %v5273_v31 }
 0x3b2   :  { %vm1937_vm13 = vcmp.gt.f32.partialorder %v1719_v30, %v5064_v23  ;;  %v1520_v60 = vpop.permute.xlu0 %1519  ;;  %vm1963_vm6 = vcmp.gt.f32.partialorder %v1823_v50, %v5218_v7  ;;  %vm1964_vm7 = vcmp.gt.f32.partialorder %v1827_v34, %v5250_v52  ;;  %v4233_v5 = vsel %vm1965_vm8, 1.0, %v5858_v21  ;;  %v5871_v50 = vld [vmem:[#allocation17_spill] sm:$0xff]  ;;  %v5873_v34 = vld [vmem:[#allocation19_spill] sm:$0xff] }
 0x3b3   :  { %2227 = vadd.xlane.f32.xlu0 %v2226_v37  ;;  %v4219_v37 = vsel %vm1951_vm11, 1.0, %v5858_v21  ;;  %v4205_v23 = vsel %vm1937_vm13, 1.0, %v5858_v21  ;;  %vm1958_vm0 = vcmp.gt.f32.partialorder %v1803_v38, %v1520_v60  ;;  %v4231_v35 = vsel %vm1963_vm6, 1.0, %v5858_v21 }
 0x3b4   :  { %2287 = vadd.xlane.f32.xlu1 %v2286_v25  ;;  %v1727_v25 = vrot.slane %v987_v13, %v4589_v45  ;;  %v2238_v27 = vsel %vm2096_vm4, %v4219_v37, 0.0  ;;  %v5455_v30 = vpop.permute.xlu1 %2722  ;;  %v2274_v7 = vsel %vm2096_vm4, %v4231_v35, 0.0  ;;  %v4232_v38 = vsel %vm1964_vm7, 1.0, %v5858_v21  ;;  %v5874_v35 = vld [vmem:[#allocation23_spill] sm:$0xff] }
 0x3b5   :  { %v1835_v0 = vrot.slane %v1133_v39, %v4589_v45  ;;  %v2280_v9 = vsel %vm2096_vm4, %v4233_v5, 0.0 }
 0x3b6   :  { %vm1939_vm15 = vcmp.gt.f32.partialorder %v1727_v25, %v5083_v59  ;;  %v1527_v48 = vpop.permute.xlu0 %1526  ;;  %v4226_v59 = vsel %vm1958_vm0, 1.0, %v5858_v21  ;;  %v1053_v25 = vcombine.high %v5363_v58, %v5363_v58 }
 0x3b7   :  { %2230 = vadd.xlane.f32.xlu0 %v2229_v56  ;;  %v2196_v56 = vsel %vm2096_vm4, %v4205_v23, 0.0  ;;  %vm1959_vm3 = vcmp.gt.f32.partialorder %v1807_v28, %v1527_v48  ;;  %v2259_v13 = vsel %vm2096_vm4, %v4226_v59, 0.0  ;;  %vm1966_vm9 = vcmp.gt.f32.partialorder %v1835_v0, %v5298_v41  ;;  %v5876_v0 = vld [vmem:[#allocation25_spill] sm:$0xff] }
 0x3b8   :  { %2242 = vadd.xlane.f32.xlu1 %v2241_v51  ;;  %v4207_v51 = vsel %vm1939_vm15, 1.0, %v5858_v21  ;;  %v4227_v44 = vsel %vm1959_vm3, 1.0, %v5858_v21  ;;  %v5468_v37 = vpop.permute.xlu1 %2729  ;;  %v1075_v52 = vrot.slane %v1053_v25, %v4585_v40  ;;  %v4234_v31 = vsel %vm1966_vm9, 1.0, %v5858_v21 }
 0x3b9   :  { %v2202_v46 = vsel %vm2096_vm4, %v4207_v51, 0.0  ;;  %v2262_v49 = vsel %vm2096_vm4, %v4227_v44, 0.0 }
 0x3ba   :  { %v1783_v23 = vrot.slane %v1075_v52, %v4589_v45  ;;  %v1085_v10 = vcombine.high %v1075_v52, %v1075_v52 }
 0x3bb   :  { %2233 = vadd.xlane.f32.xlu0 %v2232_v36  ;;  %v4211_v36 = vsel %vm1943_vm1, 1.0, %v5858_v21 }
 0x3bc   :  { %2248 = vadd.xlane.f32.xlu1 %v2247_v12  ;;  %v2214_v57 = vsel %vm2096_vm4, %v4211_v36, 0.0  ;;  %v4228_v12 = vsel %vm1960_vm5, 1.0, %v5858_v21  ;;  %vm1953_vm10 = vcmp.gt.f32.partialorder %v1783_v23, %v5395_v33  ;;  %v1791_v48 = vrot.slane %v1085_v10, %v4589_v45  ;;  %v5501_v45 = vpop.permute.xlu0 %2701  ;;  %v5877_v23 = vld [vmem:[#allocation20_spill] sm:$0xff] }
 0x3bd   :  { %v2265_v60 = vsel %vm2096_vm4, %v4228_v12, 0.0  ;;  %v4221_v41 = vsel %vm1953_vm10, 1.0, %v5858_v21 }
 0x3be   :  { %vm1955_vm11 = vcmp.gt.f32.partialorder %v1791_v48, %v5412_v55 }
 0x3bf   :  { %2239 = vadd.xlane.f32.xlu0 %v2238_v27  ;;  %v5479_v27 = vpop.permute.xlu1 %2736  ;;  %v4223_v51 = vsel %vm1955_vm11, 1.0, %v5858_v21  ;;  %v5872_v21 = vld [vmem:[#allocation18_spill] sm:$0xff] }
 0x3c0   :  { %2254 = vadd.xlane.f32.xlu1 %v2253_v20  ;;  %v2277_v20 = vsel %vm2096_vm4, %v4232_v38, 0.0  ;;  %v2250_v4 = vsel %vm2096_vm4, %v4223_v51, 0.0 }
 0x3c3   :  { %2197 = vadd.xlane.f32.xlu0 %v2196_v56  ;;  %v5488_v58 = vpop.permute.xlu1 %2743  ;;  %v2283_v56 = vsel %vm2096_vm4, %v4234_v31, 0.0 }
 0x3c4   :  { %2257 = vadd.xlane.f32.xlu1 %v2256_v61  ;;  %v2244_v61 = vsel %vm2096_vm4, %v4221_v41, 0.0 }
 0x3c7   :  { %2203 = vadd.xlane.f32.xlu0 %v2202_v46 }
 0x3c8   :  { %2260 = vadd.xlane.f32.xlu1 %v2259_v13  ;;  %v5503_v13 = vpop.permute.xlu0 %2715 }
 0x3cb   :  { %2215 = vadd.xlane.f32.xlu0 %v2214_v57 }
 0x3cc   :  { %2263 = vadd.xlane.f32.xlu1 %v2262_v49 }
 0x3cf   :  { %2266 = vadd.xlane.f32.xlu0 %v2265_v60 }
 0x3d3   :  { %2275 = vadd.xlane.f32.xlu0 %v2274_v7  ;;  %v5875_v7 = vld [vmem:[#allocation21_spill] sm:$0xff] }
 0x3d7   :  { %2278 = vadd.xlane.f32.xlu0 %v2277_v20 }
 0x3db   :  { %2281 = vadd.xlane.f32.xlu0 %v2280_v9  ;;  %v5878_v9 = vld [vmem:[#allocation28_spill] sm:$0xff] }
 0x3dd   :  { %v2123_v40 = vpop.xlane.xlu1 %2122 }
 0x3de   :  { %vm2297_vm12 = vcmp.le.f32.partialorder %v2123_v40, 3.0 }
 0x3df   :  { %2284 = vadd.xlane.f32.xlu0 %v2283_v56  ;;  %v2873_v57 = vsel %vm2297_vm12, %v5872_v21, inf  ;;  %v5879_v56 = vld [vmem:[#allocation22_spill] sm:$0xff] }
 0x3e0   :  { %v5883_v21 = vld [vmem:[#allocation26_spill] sm:$0xff] }
 0x3e1   :  { %v2141_v28 = vpop.xlane.xlu1 %2140 }
 0x3e2   :  { %vm2303_vm14 = vcmp.le.f32.partialorder %v2141_v28, 3.0  ;;  %v5880_v28 = vld [vmem:[#allocation30_spill] sm:$0xff] }
 0x3e3   :  { %2245 = vadd.xlane.f32.xlu0 %v2244_v61  ;;  %v2879_v63 = vsel %vm2303_vm14, %v5874_v35, inf  ;;  %v5885_v35 = vld [vmem:[#allocation27_spill] sm:$0xff] }
 0x3e5   :  { %v2099_v59 = vpop.xlane.xlu1 %2098 }
 0x3e6   :  { %vm2289_vm0 = vcmp.le.f32.partialorder %v2099_v59, 3.0 }
 0x3e7   :  { %2251 = vadd.xlane.f32.xlu0 %v2250_v4  ;;  %v2865_v52 = vsel %vm2289_vm0, %v5876_v0, inf  ;;  %v5881_v4 = vld [vmem:[#allocation24_spill] sm:$0xff]  ;;  %v5887_v0 = vld [vmem:[#allocation29_spill] sm:$0xff] }
 0x3e9   :  { %v2108_v33 = vpop.xlane.xlu1 %2107 }
 0x3ea   :  { %vm2292_vm3 = vcmp.le.f32.partialorder %v2108_v33, 3.0 }
 0x3eb   :  { %v2868_v31 = vsel %vm2292_vm3, %v5878_v9, inf  ;;  %v5889_v9 = vld [vmem:[#allocation34_spill] sm:$0xff] }
 0x3ed   :  { %v2111_v54 = vpop.xlane.xlu1 %2110 }
 0x3ee   :  { %vm2293_vm6 = vcmp.le.f32.partialorder %v2111_v54, 3.0 }
 0x3ef   :  { %v2869_v61 = vsel %vm2293_vm6, %v5880_v28, inf  ;;  %v5891_v28 = vld [vmem:[#allocation38_spill] sm:$0xff] }
 0x3f1   :  { %v2114_v46 = vpop.xlane.xlu1 %2113 }
 0x3f2   :  { %vm2294_vm8 = vcmp.le.f32.partialorder %v2114_v46, 3.0 }
 0x3f5   :  { %v2117_v36 = vpop.xlane.xlu1 %2116 }
 0x3f6   :  { %vm2295_vm10 = vcmp.le.f32.partialorder %v2117_v36, 3.0 }
 0x3f8   :  { %v2126_v44 = vpop.xlane.xlu0 %2125 }
 0x3f9   :  { %vm2298_vm13 = vcmp.le.f32.partialorder %v2126_v44, 3.0  ;;  %v2174_v55 = vpop.xlane.xlu1 %2173  ;;  %v5882_v44 = vld [vmem:[#allocation31_spill] sm:$0xff] }
 0x3fa   :  { %v2874_v16 = vsel %vm2298_vm13, %v5871_v50, inf  ;;  %v2870_v50 = vsel %vm2294_vm8, %v5882_v44, inf  ;;  %vm2314_vm12 = vcmp.le.f32.partialorder %v2174_v55, 3.0  ;;  %v5893_v44 = vld [vmem:[#allocation40_spill] sm:$0xff] }
 0x3fb   :  { %3021 = vperm.xlu1 %4397, %v2874_v16  }
 0x3fc   :  { %v2129_v49 = vpop.xlane.xlu0 %2128 }
 0x3fd   :  { %vm2299_vm15 = vcmp.le.f32.partialorder %v2129_v49, 3.0  ;;  %v2177_v12 = vpop.xlane.xlu1 %2176  ;;  %3018 = vperm.xlu0 %4396, %v2873_v57   ;;  %v5884_v49 = vld [vmem:[#allocation32_spill] sm:$0xff] }
 0x3fe   :  { %v2875_v60 = vsel %vm2299_vm15, %v5873_v34, inf  ;;  %v2871_v34 = vsel %vm2295_vm10, %v5884_v49, inf  ;;  %vm2315_vm14 = vcmp.le.f32.partialorder %v2177_v12, 3.0  ;;  %v5895_v49 = vld [vmem:[#allocation42_spill] sm:$0xff] }
 0x3ff   :  { %3024 = vperm.xlu1 %4397, %v2875_v60  }
 0x400   :  { %v2132_v39 = vpop.xlane.xlu0 %2131 }
 0x401   :  { %vm2300_vm1 = vcmp.le.f32.partialorder %v2132_v39, 3.0  ;;  %v2189_v25 = vpop.xlane.xlu1 %2188  ;;  %3036 = vperm.xlu0 %4396, %v2879_v63   ;;  %v5886_v39 = vld [vmem:[#allocation35_spill] sm:$0xff] }
 0x402   :  { %v2876_v38 = vsel %vm2300_vm1, %v5875_v7, inf  ;;  %v2890_v7 = vsel %vm2314_vm12, %v5886_v39, inf  ;;  %vm2319_vm0 = vcmp.le.f32.partialorder %v2189_v25, 3.0  ;;  %v5897_v39 = vld [vmem:[#allocation43_spill] sm:$0xff] }
 0x403   :  { %3027 = vperm.xlu1 %4397, %v2876_v38  }
 0x404   :  { %v2135_v20 = vpop.xlane.xlu0 %2134 }
 0x405   :  { %vm2301_vm5 = vcmp.le.f32.partialorder %v2135_v20, 3.0  ;;  %v2147_v5 = vpop.xlane.xlu1 %2146  ;;  %2994 = vperm.xlu0 %4396, %v2865_v52   ;;  %v5888_v20 = vld [vmem:[#allocation36_spill] sm:$0xff] }
 0x406   :  { %v2877_v10 = vsel %vm2301_vm5, %v5877_v23, inf  ;;  %v2891_v23 = vsel %vm2315_vm14, %v5888_v20, inf  ;;  %vm2305_vm3 = vcmp.le.f32.partialorder %v2147_v5, 3.0 }
 0x407   :  { %3030 = vperm.xlu1 %4397, %v2877_v10  }
 0x408   :  { %v2138_v40 = vpop.xlane.xlu0 %2137 }
 0x409   :  { %vm2302_vm7 = vcmp.le.f32.partialorder %v2138_v40, 3.0  ;;  %v2153_v48 = vpop.xlane.xlu1 %2152  ;;  %3003 = vperm.xlu0 %4396, %v2868_v31   ;;  %v5890_v40 = vld [vmem:[#allocation33_spill] sm:$0xff] }
 0x40a   :  { %v2878_v41 = vsel %vm2302_vm7, %v5879_v56, inf  ;;  %v2895_v56 = vsel %vm2319_vm0, %v5890_v40, inf  ;;  %vm2307_vm6 = vcmp.le.f32.partialorder %v2153_v48, 3.0 }
 0x40b   :  { %3033 = vperm.xlu1 %4397, %v2878_v41  }
 0x40c   :  { %v2144_v51 = vpop.xlane.xlu0 %2143 }
 0x40d   :  { %vm2304_vm9 = vcmp.le.f32.partialorder %v2144_v51, 3.0  ;;  %v2159_v59 = vpop.xlane.xlu1 %2158  ;;  %3006 = vperm.xlu0 %4396, %v2869_v61   ;;  %v5892_v51 = vld [vmem:[#allocation46_spill] sm:$0xff] }
 0x40e   :  { %v2880_v33 = vsel %vm2304_vm9, %v5881_v4, inf  ;;  %v2881_v4 = vsel %vm2305_vm3, %v5892_v51, inf  ;;  %vm2309_vm8 = vcmp.le.f32.partialorder %v2159_v59, 3.0  ;;  %v5899_v59 = vld [vmem:[#allocation47_spill] sm:$0xff] }
 0x40f   :  { %3039 = vperm.xlu1 %4397, %v2880_v33  }
 0x410   :  { %v2102_v16 = vpop.xlane.xlu0 %2101 }
 0x411   :  { %vm2290_vm11 = vcmp.le.f32.partialorder %v2102_v16, 3.0  ;;  %v2162_v54 = vpop.xlane.xlu1 %2161  ;;  %3009 = vperm.xlu0 %4396, %v2870_v50   ;;  %v5894_v16 = vld [vmem:[#allocation49_spill] sm:$0xff] }
 0x412   :  { %v2866_v57 = vsel %vm2290_vm11, %v5883_v21, inf  ;;  %v2883_v21 = vsel %vm2307_vm6, %v5894_v16, inf  ;;  %vm2310_vm10 = vcmp.le.f32.partialorder %v2162_v54, 3.0  ;;  %v5901_v54 = vld [vmem:[#allocation51_spill] sm:$0xff] }
 0x413   :  { %2997 = vperm.xlu1 %4397, %v2866_v57  }
 0x414   :  { %v2105_v60 = vpop.xlane.xlu0 %2104 }
 0x415   :  { %vm2291_vm13 = vcmp.le.f32.partialorder %v2105_v60, 3.0  ;;  %v2165_v46 = vpop.xlane.xlu1 %2164  ;;  %3012 = vperm.xlu0 %4396, %v2871_v34   ;;  %v5896_v60 = vld [vmem:[#allocation37_spill] sm:$0xff] }
 0x416   :  { %v2867_v63 = vsel %vm2291_vm13, %v5885_v35, inf  ;;  %v2885_v35 = vsel %vm2309_vm8, %v5896_v60, inf  ;;  %vm2311_vm12 = vcmp.le.f32.partialorder %v2165_v46, 3.0  ;;  %v5903_v46 = vld [vmem:[#allocation52_spill] sm:$0xff] }
 0x417   :  { %3000 = vperm.xlu1 %4397, %v2867_v63   ;;  %v5908_v60 = vld [vmem:[#allocation60_spill] sm:$0xff] }
 0x418   :  { %v2120_v38 = vpop.xlane.xlu0 %2119 }
 0x419   :  { %vm2296_vm15 = vcmp.le.f32.partialorder %v2120_v38, 3.0  ;;  %v2222_v36 = vpop.xlane.xlu1 %2221  ;;  %3069 = vperm.xlu0 %4396, %v2890_v7   ;;  %v5898_v38 = vld [vmem:[#allocation39_spill] sm:$0xff] }
 0x41a   :  { %v2872_v52 = vsel %vm2296_vm15, %v5887_v0, inf  ;;  %v2886_v0 = vsel %vm2310_vm10, %v5898_v38, inf  ;;  %vm2330_vm14 = vcmp.le.f32.partialorder %v2222_v36, 3.0  ;;  %v5910_v38 = vld [vmem:[#allocation61_spill] sm:$0xff] }
 0x41b   :  { %3015 = vperm.xlu1 %4397, %v2872_v52  }
 0x41c   :  { %v2171_v10 = vpop.xlane.xlu0 %2170 }
 0x41d   :  { %vm2313_vm1 = vcmp.le.f32.partialorder %v2171_v10, 3.0  ;;  %v2225_v55 = vpop.xlane.xlu1 %2224  ;;  %3072 = vperm.xlu0 %4396, %v2891_v23   ;;  %v5900_v10 = vld [vmem:[#allocation41_spill] sm:$0xff] }
 0x41e   :  { %v2889_v31 = vsel %vm2313_vm1, %v5889_v9, inf  ;;  %v2887_v9 = vsel %vm2311_vm12, %v5900_v10, inf  ;;  %vm2331_vm0 = vcmp.le.f32.partialorder %v2225_v55, 3.0  ;;  %v5907_v55 = vld [vmem:[#allocation56_spill] sm:$0xff] }
 0x41f   :  { %3066 = vperm.xlu1 %4397, %v2889_v31  }
 0x420   :  { %v2180_v41 = vpop.xlane.xlu0 %2179 }
 0x421   :  { %vm2316_vm5 = vcmp.le.f32.partialorder %v2180_v41, 3.0  ;;  %v2237_v12 = vpop.xlane.xlu1 %2236  ;;  %3084 = vperm.xlu0 %4396, %v2895_v56   ;;  %v5902_v56 = vld [vmem:[#allocation50_spill] sm:$0xff] }
 0x422   :  { %v2892_v61 = vsel %vm2316_vm5, %v5891_v28, inf  ;;  %v2906_v41 = vsel %vm2330_vm14, %v5902_v56, inf  ;;  %vm2335_vm3 = vcmp.le.f32.partialorder %v2237_v12, 3.0  ;;  %v5909_v12 = vld [vmem:[#allocation57_spill] sm:$0xff] }
 0x423   :  { %3075 = vperm.xlu1 %4397, %v2892_v61  }
 0x424   :  { %v2183_v33 = vpop.xlane.xlu0 %2182 }
 0x425   :  { %vm2317_vm7 = vcmp.le.f32.partialorder %v2183_v33, 3.0  ;;  %v2195_v25 = vpop.xlane.xlu1 %2194  ;;  %3042 = vperm.xlu0 %4396, %v2881_v4   ;;  %v5904_v4 = vld [vmem:[#allocation53_spill] sm:$0xff] }
 0x426   :  { %v2893_v50 = vsel %vm2317_vm7, %v5893_v44, inf  ;;  %v2907_v33 = vsel %vm2331_vm0, %v5904_v4, inf  ;;  %vm2321_vm6 = vcmp.le.f32.partialorder %v2195_v25, 3.0 }
 0x427   :  { %3078 = vperm.xlu1 %4397, %v2893_v50   ;;  %v5905_v50 = vld [vmem:[#allocation55_spill] sm:$0xff] }
 0x428   :  { %v2186_v57 = vpop.xlane.xlu0 %2185 }
 0x429   :  { %vm2318_vm9 = vcmp.le.f32.partialorder %v2186_v57, 3.0  ;;  %v2201_v5 = vpop.xlane.xlu1 %2200  ;;  %3048 = vperm.xlu0 %4396, %v2883_v21   ;;  %v5906_v21 = vld [vmem:[#allocation54_spill] sm:$0xff] }
 0x42a   :  { %v2894_v34 = vsel %vm2318_vm9, %v5895_v49, inf  ;;  %v2911_v57 = vsel %vm2335_vm3, %v5906_v21, inf  ;;  %vm2323_vm8 = vcmp.le.f32.partialorder %v2201_v5, 3.0  ;;  %v5912_v5 = vld [vmem:[#allocation59_spill] sm:$0xff] }
 0x42b   :  { %3081 = vperm.xlu1 %4397, %v2894_v34  }
 0x42c   :  { %v2192_v63 = vpop.xlane.xlu0 %2191 }
 0x42d   :  { %vm2320_vm11 = vcmp.le.f32.partialorder %v2192_v63, 3.0  ;;  %v2207_v48 = vpop.xlane.xlu1 %2206  ;;  %3054 = vperm.xlu0 %4396, %v2885_v35   ;;  %v2897_v35 = vsel %vm2321_vm6, %v5908_v60, inf }
 0x42e   :  { %v2896_v7 = vsel %vm2320_vm11, %v5897_v39, inf  ;;  %vm2325_vm10 = vcmp.le.f32.partialorder %v2207_v48, 3.0 }
 0x42f   :  { %3087 = vperm.xlu1 %4397, %v2896_v7   ;;  %v2901_v10 = vsel %vm2325_vm10, %v5111_v6, inf }
 0x430   :  { %v2150_v52 = vpop.xlane.xlu0 %2149 }
 0x431   :  { %vm2306_vm13 = vcmp.le.f32.partialorder %v2150_v52, 3.0  ;;  %3057 = vperm.xlu0 %4396, %v2886_v0   ;;  %v2210_v23 = vpop.xlane.xlu1 %2209  ;;  %v2899_v0 = vsel %vm2323_vm8, %v5910_v38, inf }
 0x432   :  { %v2882_v20 = vsel %vm2306_vm13, %v5899_v59, inf  ;;  %v5911_v59 = vld [vmem:[#allocation58_spill] sm:$0xff]  ;;  %vm2326_vm12 = vcmp.le.f32.partialorder %v2210_v23, 3.0 }
 0x433   :  { %3045 = vperm.xlu1 %4397, %v2882_v20  }
 0x434   :  { %v2156_v31 = vpop.xlane.xlu0 %2155 }
 0x435   :  { %vm2308_vm15 = vcmp.le.f32.partialorder %v2156_v31, 3.0  ;;  %3060 = vperm.xlu0 %4396, %v2887_v9   ;;  %v2213_v28 = vpop.xlane.xlu1 %2212 }
 0x436   :  { %v2884_v40 = vsel %vm2308_vm15, %v5901_v54, inf  ;;  %v2902_v54 = vsel %vm2326_vm12, %v5132_v26, inf  ;;  %vm2327_vm14 = vcmp.le.f32.partialorder %v2213_v28, 3.0 }
 0x437   :  { %3051 = vperm.xlu1 %4397, %v2884_v40  }
 0x438   :  { %v2168_v61 = vpop.xlane.xlu0 %2167 }
 0x439   :  { %vm2312_vm1 = vcmp.le.f32.partialorder %v2168_v61, 3.0  ;;  %3117 = vperm.xlu0 %4396, %v2906_v41   ;;  %v2270_v36 = vpop.xlane.xlu1 %2269  ;;  %v2903_v41 = vsel %vm2327_vm14, %v5158_v2, inf }
 0x43a   :  { %v2888_v51 = vsel %vm2312_vm1, %v5903_v46, inf  ;;  %vm2346_vm0 = vcmp.le.f32.partialorder %v2270_v36, 3.0 }
 0x43b   :  { %3063 = vperm.xlu1 %4397, %v2888_v51   ;;  %v2922_v26 = vsel %vm2346_vm0, %v5320_v42, inf }
 0x43c   :  { %v2219_v44 = vpop.xlane.xlu0 %2218 }
 0x43d   :  { %vm2329_vm5 = vcmp.le.f32.partialorder %v2219_v44, 3.0  ;;  %3120 = vperm.xlu0 %4396, %v2907_v33   ;;  %v2273_v63 = vpop.xlane.xlu1 %2272 }
 0x43e   :  { %v2905_v16 = vsel %vm2329_vm5, %v5905_v50, inf  ;;  %vm2347_vm3 = vcmp.le.f32.partialorder %v2273_v63, 3.0 }
 0x43f   :  { %3114 = vperm.xlu1 %4397, %v2905_v16  }
 0x440   :  { %v2228_v49 = vpop.xlane.xlu0 %2227 }
 0x441   :  { %vm2332_vm7 = vcmp.le.f32.partialorder %v2228_v49, 3.0  ;;  %3132 = vperm.xlu0 %4396, %v2911_v57   ;;  %v5545_v25 = vpop.xlane.xlu1 %2287 }
 0x442   :  { %v2908_v34 = vsel %vm2332_vm7, %v5907_v55, inf }
 0x443   :  { %3123 = vperm.xlu1 %4397, %v2908_v34  }
 0x444   :  { %v2231_v39 = vpop.xlane.xlu0 %2230 }
 0x445   :  { %vm2333_vm9 = vcmp.le.f32.partialorder %v2231_v39, 3.0  ;;  %3090 = vperm.xlu0 %4396, %v2897_v35   ;;  %v2243_v40 = vpop.xlane.xlu1 %2242  ;;  %v5913_v35 = vlaneseq }
 0x446   :  { %v2909_v7 = vsel %vm2333_vm9, %v5909_v12, inf  ;;  %vm2337_vm6 = vcmp.le.f32.partialorder %v2243_v40, 3.0  ;;  %v5914_v12 = vld [vmem:[#allocation5_spill] sm:$0xff] }
 0x447   :  { %3126 = vperm.xlu1 %4397, %v2909_v7  }
 0x448   :  { %v2234_v52 = vpop.xlane.xlu0 %2233 }
 0x449   :  { %vm2334_vm11 = vcmp.le.f32.partialorder %v2234_v52, 3.0  ;;  %3096 = vperm.xlu0 %4396, %v2899_v0   ;;  %v2249_v23 = vpop.xlane.xlu1 %2248 }
 0x44a   :  { %v2910_v20 = vsel %vm2334_vm11, %v5911_v59, inf  ;;  %vm2339_vm8 = vcmp.le.f32.partialorder %v2249_v23, 3.0 }
 0x44b   :  { %3129 = vperm.xlu1 %4397, %v2910_v20  }
 0x44c   :  { %v2240_v9 = vpop.xlane.xlu0 %2239 }
 0x44d   :  { %vm2336_vm13 = vcmp.le.f32.partialorder %v2240_v9, 3.0  ;;  %3102 = vperm.xlu0 %4396, %v2901_v10   ;;  %v2255_v2 = vpop.xlane.xlu1 %2254 }
 0x44e   :  { %v2912_v31 = vsel %vm2336_vm13, %v5912_v5, inf  ;;  %vm2341_vm10 = vcmp.le.f32.partialorder %v2255_v2, 3.0 }
 0x44f   :  { %3135 = vperm.xlu1 %4397, %v2912_v31  }
 0x450   :  { %v2198_v48 = vpop.xlane.xlu0 %2197 }
 0x451   :  { %vm2322_vm15 = vcmp.le.f32.partialorder %v2198_v48, 3.0  ;;  %3105 = vperm.xlu0 %4396, %v2902_v54   ;;  %v2258_v33 = vpop.xlane.xlu1 %2257 }
 0x452   :  { %v2898_v56 = vsel %vm2322_vm15, %v5142_v17, inf  ;;  %v2923_v17 = vsel %vm2347_vm3, %v5348_v53, inf  ;;  %v2915_v53 = vsel %vm2339_vm8, %v5441_v22, inf  ;;  %vm2342_vm12 = vcmp.le.f32.partialorder %v2258_v33, 3.0 }
 0x453   :  { %3093 = vperm.xlu1 %4397, %v2898_v56   ;;  %vm3447_vm8 = vcmask 1043459  }
 0x454   :  { %v2204_v6 = vpop.xlane.xlu0 %2203 }
 0x455   :  { %vm2324_vm1 = vcmp.le.f32.partialorder %v2204_v6, 3.0  ;;  %3108 = vperm.xlu0 %4396, %v2903_v41  }
 0x456   :  { %v2900_v61 = vsel %vm2324_vm1, %v5162_v11, inf  ;;  %v2913_v11 = vsel %vm2337_vm6, %v5425_v1, inf  ;;  %v2261_v1 = vpop.xlane.xlu1 %2260  ;;  %vm2352_vm1 = vcmp.le.f32.partialorder %v5545_v25, 3.0  ;;  %vm3443_vm6 = vcmask 1041409  }
 0x457   :  { %3099 = vperm.xlu1 %4397, %v2900_v61   ;;  %vm2343_vm14 = vcmp.le.f32.partialorder %v2261_v1, 3.0 }
 0x458   :  { %v2216_v46 = vpop.xlane.xlu0 %2215  ;;  %v2919_v57 = vsel %vm2343_vm14, %v5479_v27, inf }
 0x459   :  { %vm2328_vm5 = vcmp.le.f32.partialorder %v2216_v46, 3.0  ;;  %3165 = vperm.xlu0 %4396, %v2922_v26  }
 0x45a   :  { %v2904_v28 = vsel %vm2328_vm5, %v5185_v43, inf  ;;  %v2264_v21 = vpop.xlane.xlu1 %2263 }
 0x45b   :  { %3111 = vperm.xlu1 %4397, %v2904_v28   ;;  %vm2344_vm15 = vcmp.le.f32.partialorder %v2264_v21, 3.0 }
 0x45c   :  { %v2267_v51 = vpop.xlane.xlu0 %2266  ;;  %v2920_v49 = vsel %vm2344_vm15, %v5488_v58, inf  ;;  %v3186_v58 = vand.u32 127, %v5913_v35 }
 0x45d   :  { %vm2345_vm7 = vcmp.le.f32.partialorder %v2267_v51, 3.0  ;;  %3168 = vperm.xlu0 %4396, %v2923_v17  }
 0x45e   :  { %v2921_v4 = vsel %vm2345_vm7, %v5261_v47, inf  ;;  %v2917_v47 = vsel %vm2341_vm10, %v5455_v30, inf  ;;  %v5574_v7 = vsub.s32 %v3186_v58, %v5914_v12  ;;  %vm3445_vm7 = vcmask 1042434  }
 0x45f   :  { %3162 = vperm.xlu1 %4397, %v2921_v4   ;;  %vm3451_vm10 = vcmask 1045509  }
 0x460   :  { %v2276_v42 = vpop.xlane.xlu0 %2275 }
 0x461   :  { %vm2348_vm9 = vcmp.le.f32.partialorder %v2276_v42, 3.0  ;;  %3138 = vperm.xlu0 %4396, %v2913_v11  }
 0x462   :  { %v2924_v43 = vsel %vm2348_vm9, %v5276_v8, inf  ;;  %v2918_v8 = vsel %vm2342_vm12, %v5468_v37, inf  ;;  %v2928_v37 = vsel %vm2352_vm1, %v5373_v62, inf  ;;  %vm3449_vm9 = vcmask 1044484  }
 0x463   :  { %3171 = vperm.xlu1 %4397, %v2924_v43   ;;  %vm3455_vm12 = vcmask 1047559  }
 0x464   :  { %v2279_v44 = vpop.xlane.xlu0 %2278 }
 0x465   :  { %vm2349_vm11 = vcmp.le.f32.partialorder %v2279_v44, 3.0  ;;  %3144 = vperm.xlu0 %4396, %v2915_v53  }
 0x466   :  { %v2925_v36 = vsel %vm2349_vm11, %v5291_v32, inf  ;;  %vm3453_vm11 = vcmask 1046534  }
 0x467   :  { %3174 = vperm.xlu1 %4397, %v2925_v36  }
 0x468   :  { %v2282_v50 = vpop.xlane.xlu0 %2281 }
 0x469   :  { %vm2350_vm13 = vcmp.le.f32.partialorder %v2282_v50, 3.0  ;;  %3150 = vperm.xlu0 %4396, %v2917_v47  }
 0x46a   :  { %v2926_v16 = vsel %vm2350_vm13, %v5308_v29, inf }
 0x46b   :  { %3177 = vperm.xlu1 %4397, %v2926_v16  }
 0x46c   :  { %v2285_v22 = vpop.xlane.xlu0 %2284 }
 0x46d   :  { %3153 = vperm.xlu0 %4396, %v2918_v8   ;;  %vm2351_vm5 = vcmp.le.f32.partialorder %v2285_v22, 3.0 }
 0x46e   :  { %v2927_v27 = vsel %vm2351_vm5, %v5328_v24, inf }
 0x470   :  { %v2246_v32 = vpop.xlane.xlu0 %2245 }
 0x471   :  { %vm2338_vm0 = vcmp.le.f32.partialorder %v2246_v32, 3.0  ;;  %3156 = vperm.xlu0 %4396, %v2919_v57  }
 0x472   :  { %v2914_v30 = vsel %vm2338_vm0, %v5501_v45, inf }
 0x473   :  { %3141 = vperm.xlu1 %4397, %v2914_v30  }
 0x474   :  { %v2252_v55 = vpop.xlane.xlu0 %2251 }
 0x475   :  { %vm2340_vm3 = vcmp.le.f32.partialorder %v2252_v55, 3.0  ;;  %3159 = vperm.xlu0 %4396, %v2920_v49  }
 0x476   :  { %v2916_v29 = vsel %vm2340_vm3, %v5503_v13, inf }
 0x477   :  { %3147 = vperm.xlu1 %4397, %v2916_v29  }
 0x479   :  { %3183 = vperm.xlu0 %4396, %v2928_v37  }
 0x47a   :  { %v3022_v34 = vpop.permute.xlu1 %3021 }
 0x47b   :  { %3180 = vperm.xlu1 %4397, %v2927_v27   ;;  %v3226_v62 = vrot.slane %v3022_v34, %v5574_v7 }
 0x47c   :  { %v3019_v45 = vpop.permute.xlu0 %3018 }
 0x47d   :  { %v3222_v13 = vrot.slane %v3019_v45, %v5574_v7 }
 0x47e   :  { %v3025_v60 = vpop.permute.xlu1 %3024 }
 0x47f   :  { %v3230_v24 = vrot.slane %v3025_v60, %v5574_v7  ;;  %v3457_v25 = vsel %vm3443_vm6, %v3226_v62, %v3222_v13 }
 0x480   :  { %v3037_v63 = vpop.permute.xlu0 %3036 }
 0x481   :  { %v3458_v31 = vsel %vm3445_vm7, %v3230_v24, %v3457_v25  ;;  %v3246_v23 = vrot.slane %v3037_v63, %v5574_v7 }
 0x482   :  { %v3028_v39 = vpop.permute.xlu1 %3027 }
 0x483   :  { %v3234_v59 = vrot.slane %v3028_v39, %v5574_v7 }
 0x484   :  { %v2995_v38 = vpop.permute.xlu0 %2994 }
 0x485   :  { %v3459_v54 = vsel %vm3447_vm8, %v3234_v59, %v3458_v31  ;;  %v3190_v2 = vrot.slane %v2995_v38, %v5574_v7 }
 0x486   :  { %v3031_v0 = vpop.permute.xlu1 %3030 }
 0x487   :  { %v3238_v10 = vrot.slane %v3031_v0, %v5574_v7 }
 0x488   :  { %v3004_v52 = vpop.permute.xlu0 %3003 }
 0x489   :  { %v3460_v48 = vsel %vm3449_vm9, %v3238_v10, %v3459_v54  ;;  %v3202_v42 = vrot.slane %v3004_v52, %v5574_v7 }
 0x48a   :  { %v3034_v20 = vpop.permute.xlu1 %3033 }
 0x48b   :  { %v3242_v9 = vrot.slane %v3034_v20, %v5574_v7 }
 0x48c   :  { %v3007_v5 = vpop.permute.xlu0 %3006 }
 0x48d   :  { %v3461_v56 = vsel %vm3451_vm10, %v3242_v9, %v3460_v48  ;;  %v3206_v53 = vrot.slane %v3007_v5, %v5574_v7 }
 0x48e   :  { %v3040_v40 = vpop.permute.xlu1 %3039  ;;  %v3462_v26 = vsel %vm3453_vm11, %v3246_v23, %v3461_v56 }
 0x48f   :  { %v3250_v41 = vrot.slane %v3040_v40, %v5574_v7 }
 0x490   :  { %v3010_v6 = vpop.permute.xlu0 %3009 }
 0x491   :  { %v3463_v17 = vsel %vm3455_vm12, %v3250_v41, %v3462_v26  ;;  %v3210_v36 = vrot.slane %v3010_v6, %v5574_v7 }
 0x492   :  { %v2998_v61 = vpop.permute.xlu1 %2997  ;;  %v3517_v11 = vsel %vm2096_vm4, %v3463_v17, inf }
 0x493   :  { %v3194_v46 = vrot.slane %v2998_v61, %v5574_v7 }
 0x494   :  { %v3013_v28 = vpop.permute.xlu0 %3012 }
 0x495   :  { %v3444_v33 = vsel %vm3443_vm6, %v3194_v46, %v3190_v2  ;;  %v3214_v50 = vrot.slane %v3013_v28, %v5574_v7 }
 0x496   :  { %v3001_v51 = vpop.permute.xlu1 %3000 }
 0x497   :  { %v3198_v4 = vrot.slane %v3001_v51, %v5574_v7 }
 0x498   :  { %3518 = vmin.xlane.f32.xlu0 %v3517_v11  ;;  %v3070_v43 = vpop.permute.xlu0 %3069 }
 0x499   :  { %v3446_v44 = vsel %vm3445_vm7, %v3198_v4, %v3444_v33  ;;  %v3290_v34 = vrot.slane %v3070_v43, %v5574_v7 }
 0x49a   :  { %v3448_v47 = vsel %vm3447_vm8, %v3202_v42, %v3446_v44  ;;  %v3016_v1 = vpop.permute.xlu1 %3015 }
 0x49b   :  { %v3218_v16 = vrot.slane %v3016_v1, %v5574_v7  ;;  %v3450_v8 = vsel %vm3449_vm9, %v3206_v53, %v3448_v47 }
 0x49c   :  { %v3073_v22 = vpop.permute.xlu0 %3072  ;;  %v3452_v21 = vsel %vm3451_vm10, %v3210_v36, %v3450_v8 }
 0x49d   :  { %v3454_v57 = vsel %vm3453_vm11, %v3214_v50, %v3452_v21  ;;  %v3294_v58 = vrot.slane %v3073_v22, %v5574_v7 }
 0x49e   :  { %v3067_v32 = vpop.permute.xlu1 %3066  ;;  %v3456_v30 = vsel %vm3455_vm12, %v3218_v16, %v3454_v57 }
 0x49f   :  { %v3514_v49 = vsel %vm2096_vm4, %v3456_v30, inf  ;;  %v3286_v37 = vrot.slane %v3067_v32, %v5574_v7 }
 0x4a0   :  { %3515 = vmin.xlane.f32.xlu1 %v3514_v49  ;;  %v3085_v55 = vpop.permute.xlu0 %3084 }
 0x4a1   :  { %v3471_v60 = vsel %vm3443_vm6, %v3290_v34, %v3286_v37  ;;  %v3310_v25 = vrot.slane %v3085_v55, %v5574_v7 }
 0x4a2   :  { %v3076_v29 = vpop.permute.xlu1 %3075  ;;  %v3472_v12 = vsel %vm3445_vm7, %v3294_v58, %v3471_v60 }
 0x4a3   :  { %v3298_v35 = vrot.slane %v3076_v29, %v5574_v7 }
 0x4a4   :  { %v3043_v27 = vpop.permute.xlu0 %3042 }
 0x4a5   :  { %v3473_v13 = vsel %vm3447_vm8, %v3298_v35, %v3472_v12  ;;  %v3254_v40 = vrot.slane %v3043_v27, %v5574_v7 }
 0x4a6   :  { %v3079_v45 = vpop.permute.xlu1 %3078 }
 0x4a7   :  { %v3302_v63 = vrot.slane %v3079_v45, %v5574_v7 }
 0x4a8   :  { %v3049_v39 = vpop.permute.xlu0 %3048 }
 0x4a9   :  { %v3474_v62 = vsel %vm3449_vm9, %v3302_v63, %v3473_v13  ;;  %v3262_v6 = vrot.slane %v3049_v39, %v5574_v7 }
 0x4aa   :  { %v3082_v38 = vpop.permute.xlu1 %3081 }
 0x4ab   :  { %v3306_v0 = vrot.slane %v3082_v38, %v5574_v7 }
 0x4ac   :  { %v3055_v52 = vpop.permute.xlu0 %3054 }
 0x4ad   :  { %v3475_v24 = vsel %vm3451_vm10, %v3306_v0, %v3474_v62  ;;  %v3270_v26 = vrot.slane %v3055_v52, %v5574_v7 }
 0x4ae   :  { %v3088_v59 = vpop.permute.xlu1 %3087  ;;  %v3476_v9 = vsel %vm3453_vm11, %v3310_v25, %v3475_v24 }
 0x4af   :  { %v3314_v20 = vrot.slane %v3088_v59, %v5574_v7 }
 0x4b0   :  { %v3058_v10 = vpop.permute.xlu0 %3057 }
 0x4b1   :  { %v3477_v5 = vsel %vm3455_vm12, %v3314_v20, %v3476_v9  ;;  %v3274_v17 = vrot.slane %v3058_v10, %v5574_v7 }
 0x4b2   :  { %v3046_v31 = vpop.permute.xlu1 %3045  ;;  %v3523_v54 = vsel %vm2096_vm4, %v3477_v5, inf }
 0x4b3   :  { %v3258_v48 = vrot.slane %v3046_v31, %v5574_v7  ;;  %3524 = vmin.xlane.f32.xlu1 %v3523_v54 }
 0x4b4   :  { %v3061_v56 = vpop.permute.xlu0 %3060 }
 0x4b5   :  { %v3464_v41 = vsel %vm3443_vm6, %v3258_v48, %v3254_v40  ;;  %v3278_v51 = vrot.slane %v3061_v56, %v5574_v7 }
 0x4b6   :  { %v3052_v23 = vpop.permute.xlu1 %3051  ;;  %v3465_v46 = vsel %vm3445_vm7, %v3262_v6, %v3464_v41 }
 0x4b7   :  { %v3266_v61 = vrot.slane %v3052_v23, %v5574_v7 }
 0x4b8   :  { %v3118_v28 = vpop.permute.xlu0 %3117 }
 0x4b9   :  { %v3466_v2 = vsel %vm3447_vm8, %v3266_v61, %v3465_v46  ;;  %v3354_v22 = vrot.slane %v3118_v28, %v5574_v7 }
 0x4ba   :  { %v3467_v4 = vsel %vm3449_vm9, %v3270_v26, %v3466_v2  ;;  %v3064_v11 = vpop.permute.xlu1 %3063 }
 0x4bb   :  { %v3282_v42 = vrot.slane %v3064_v11, %v5574_v7  ;;  %v3468_v33 = vsel %vm3451_vm10, %v3274_v17, %v3467_v4 }
 0x4bc   :  { %v3121_v43 = vpop.permute.xlu0 %3120  ;;  %v3469_v53 = vsel %vm3453_vm11, %v3278_v51, %v3468_v33 }
 0x4bd   :  { %v3470_v44 = vsel %vm3455_vm12, %v3282_v42, %v3469_v53  ;;  %v3358_v30 = vrot.slane %v3121_v43, %v5574_v7 }
 0x4be   :  { %v3115_v36 = vpop.permute.xlu1 %3114  ;;  %v3520_v47 = vsel %vm2096_vm4, %v3470_v44, inf }
 0x4bf   :  { %3521 = vmin.xlane.f32.xlu0 %v3520_v47  ;;  %v3350_v16 = vrot.slane %v3115_v36, %v5574_v7 }
 0x4c0   :  { %v3133_v1 = vpop.permute.xlu0 %3132 }
 0x4c1   :  { %v3485_v57 = vsel %vm3443_vm6, %v3354_v22, %v3350_v16  ;;  %v3374_v58 = vrot.slane %v3133_v1, %v5574_v7 }
 0x4c2   :  { %v3124_v50 = vpop.permute.xlu1 %3123  ;;  %v3486_v29 = vsel %vm3445_vm7, %v3358_v30, %v3485_v57 }
 0x4c3   :  { %v3362_v32 = vrot.slane %v3124_v50, %v5574_v7 }
 0x4c4   :  { %v3091_v8 = vpop.permute.xlu0 %3090 }
 0x4c5   :  { %v3487_v27 = vsel %vm3447_vm8, %v3362_v32, %v3486_v29  ;;  %v3318_v52 = vrot.slane %v3091_v8, %v5574_v7 }
 0x4c6   :  { %v3127_v21 = vpop.permute.xlu1 %3126 }
 0x4c7   :  { %v3366_v49 = vrot.slane %v3127_v21, %v5574_v7 }
 0x4c8   :  { %v3097_v55 = vpop.permute.xlu0 %3096 }
 0x4c9   :  { %v3488_v45 = vsel %vm3449_vm9, %v3366_v49, %v3487_v27  ;;  %v3326_v20 = vrot.slane %v3097_v55, %v5574_v7 }
 0x4ca   :  { %v3130_v37 = vpop.permute.xlu1 %3129 }
 0x4cb   :  { %v3370_v34 = vrot.slane %v3130_v37, %v5574_v7 }
 0x4cc   :  { %v3103_v60 = vpop.permute.xlu0 %3102 }
 0x4cd   :  { %v3489_v35 = vsel %vm3451_vm10, %v3370_v34, %v3488_v45  ;;  %v3334_v5 = vrot.slane %v3103_v60, %v5574_v7 }
 0x4ce   :  { %v3136_v63 = vpop.permute.xlu1 %3135  ;;  %v3490_v38 = vsel %vm3453_vm11, %v3374_v58, %v3489_v35 }
 0x4cf   :  { %v3378_v39 = vrot.slane %v3136_v63, %v5574_v7 }
 0x4d0   :  { %v3106_v12 = vpop.permute.xlu0 %3105 }
 0x4d1   :  { %v3491_v13 = vsel %vm3455_vm12, %v3378_v39, %v3490_v38  ;;  %v3338_v40 = vrot.slane %v3106_v12, %v5574_v7 }
 0x4d2   :  { %v3094_v0 = vpop.permute.xlu1 %3093  ;;  %v3529_v62 = vsel %vm2096_vm4, %v3491_v13, inf }
 0x4d3   :  { %v3322_v24 = vrot.slane %v3094_v0, %v5574_v7  ;;  %3530 = vmin.xlane.f32.xlu1 %v3529_v62 }
 0x4d4   :  { %v3109_v25 = vpop.permute.xlu0 %3108 }
 0x4d5   :  { %v3478_v59 = vsel %vm3443_vm6, %v3322_v24, %v3318_v52  ;;  %v3342_v56 = vrot.slane %v3109_v25, %v5574_v7 }
 0x4d6   :  { %v3100_v10 = vpop.permute.xlu1 %3099  ;;  %v3479_v31 = vsel %vm3445_vm7, %v3326_v20, %v3478_v59 }
 0x4d7   :  { %v3330_v9 = vrot.slane %v3100_v10, %v5574_v7 }
 0x4d8   :  { %v3166_v54 = vpop.permute.xlu0 %3165 }
 0x4d9   :  { %v3480_v48 = vsel %vm3447_vm8, %v3330_v9, %v3479_v31  ;;  %v3418_v16 = vrot.slane %v3166_v54, %v5574_v7 }
 0x4da   :  { %v3481_v41 = vsel %vm3449_vm9, %v3334_v5, %v3480_v48  ;;  %v3112_v6 = vpop.permute.xlu1 %3111 }
 0x4db   :  { %v3346_v23 = vrot.slane %v3112_v6, %v5574_v7  ;;  %v3482_v61 = vsel %vm3451_vm10, %v3338_v40, %v3481_v41  ;;  %v5915_v40 = vld [vmem:[#allocation14_spill] sm:$0xff]  ;;  %v5916_v41 = vld [vmem:[#allocation15_spill] sm:$0xff] }
 0x4dc   :  { %v3169_v26 = vpop.permute.xlu0 %3168  ;;  %v3483_v46 = vsel %vm3453_vm11, %v3342_v56, %v3482_v61 }
 0x4dd   :  { %v3484_v28 = vsel %vm3455_vm12, %v3346_v23, %v3483_v46  ;;  %v3422_v49 = vrot.slane %v3169_v26, %v5574_v7  ;;  %v5917_v26 = vld [vmem:[#allocation16_spill] sm:$0xff] }
 0x4de   :  { %v3163_v17 = vpop.permute.xlu1 %3162  ;;  %v3526_v2 = vsel %vm2096_vm4, %v3484_v28, inf }
 0x4df   :  { %3527 = vmin.xlane.f32.xlu0 %v3526_v2  ;;  %v3414_v36 = vrot.slane %v3163_v17, %v5574_v7 }
 0x4e0   :  { %v3139_v51 = vpop.permute.xlu0 %3138 }
 0x4e1   :  { %v3382_v1 = vrot.slane %v3139_v51, %v5574_v7  ;;  %v3499_v21 = vsel %vm3443_vm6, %v3418_v16, %v3414_v36 }
 0x4e2   :  { %v3172_v4 = vpop.permute.xlu1 %3171  ;;  %v3500_v45 = vsel %vm3445_vm7, %v3422_v49, %v3499_v21 }
 0x4e3   :  { %v3426_v57 = vrot.slane %v3172_v4, %v5574_v7 }
 0x4e4   :  { %v3145_v11 = vpop.permute.xlu0 %3144 }
 0x4e5   :  { %v3390_v32 = vrot.slane %v3145_v11, %v5574_v7  ;;  %v3501_v63 = vsel %vm3447_vm8, %v3426_v57, %v3500_v45 }
 0x4e6   :  { %v3175_v42 = vpop.permute.xlu1 %3174 }
 0x4e7   :  { %v3430_v55 = vrot.slane %v3175_v42, %v5574_v7 }
 0x4e8   :  { %v3151_v33 = vpop.permute.xlu0 %3150 }
 0x4e9   :  { %v3398_v37 = vrot.slane %v3151_v33, %v5574_v7  ;;  %v3502_v13 = vsel %vm3449_vm9, %v3430_v55, %v3501_v63 }
 0x4ea   :  { %v3178_v53 = vpop.permute.xlu1 %3177 }
 0x4eb   :  { %v3434_v27 = vrot.slane %v3178_v53, %v5574_v7 }
 0x4ec   :  { %v3154_v43 = vpop.permute.xlu0 %3153 }
 0x4ed   :  { %v3402_v60 = vrot.slane %v3154_v43, %v5574_v7  ;;  %v3503_v24 = vsel %vm3451_vm10, %v3434_v27, %v3502_v13 }
 0x4f0   :  { %v3157_v44 = vpop.permute.xlu0 %3156 }
 0x4f1   :  { %v3406_v39 = vrot.slane %v3157_v44, %v5574_v7 }
 0x4f2   :  { %v3142_v47 = vpop.permute.xlu1 %3141 }
 0x4f3   :  { %v3386_v50 = vrot.slane %v3142_v47, %v5574_v7 }
 0x4f4   :  { %v3160_v8 = vpop.permute.xlu0 %3159 }
 0x4f5   :  { %v3492_v22 = vsel %vm3443_vm6, %v3386_v50, %v3382_v1  ;;  %v3410_v0 = vrot.slane %v3160_v8, %v5574_v7 }
 0x4f6   :  { %v3148_v30 = vpop.permute.xlu1 %3147  ;;  %v3493_v34 = vsel %vm3445_vm7, %v3390_v32, %v3492_v22 }
 0x4f7   :  { %v3394_v29 = vrot.slane %v3148_v30, %v5574_v7 }
 0x4f8   :  { %v3184_v58 = vpop.permute.xlu0 %3183 }
 0x4f9   :  { %v3494_v35 = vsel %vm3447_vm8, %v3394_v29, %v3493_v34  ;;  %v3442_v25 = vrot.slane %v3184_v58, %v5574_v7 }
 0x4fa   :  { %v3495_v12 = vsel %vm3449_vm9, %v3398_v37, %v3494_v35  ;;  %v3181_v38 = vpop.permute.xlu1 %3180 }
 0x4fb   :  { %v3438_v62 = vrot.slane %v3181_v38, %v5574_v7  ;;  %v3496_v52 = vsel %vm3451_vm10, %v3402_v60, %v3495_v12 }
 0x4fc   :  { %v3497_v59 = vsel %vm3453_vm11, %v3406_v39, %v3496_v52 }
 0x4fd   :  { %v3498_v20 = vsel %vm3455_vm12, %v3410_v0, %v3497_v59  ;;  %v3504_v10 = vsel %vm3453_vm11, %v3438_v62, %v3503_v24 }
 0x4fe   :  { %v3532_v9 = vsel %vm2096_vm4, %v3498_v20, inf  ;;  %v3505_v5 = vsel %vm3455_vm12, %v3442_v25, %v3504_v10 }
 0x4ff   :  { %3533 = vmin.xlane.f32.xlu0 %v3532_v9  ;;  %v3535_v31 = vsel %vm2096_vm4, %v3505_v5, inf }
 0x500   :  { %3536 = vmin.xlane.f32.xlu1 %v3535_v31 }
 0x525   :  { %v3519_v54 = vpop.xlane.xlu0 %3518 }
 0x526   :  { %vm3539_vm13 = vcmp.ge.f32.partialorder %v5915_v40, %v3519_v54 }
 0x527   :  { %v3547_v48 = vsel %vm3539_vm13, %v5915_v40, 0.0 }
 0x528   :  { %v3557_v7 = vsel %vm2096_vm4, %v3547_v48, -inf }
 0x529   :  { %3558 = vmax.xlane.f32.xlu1 %v3557_v7 }
 0x52d   :  { %v3516_v56 = vpop.xlane.xlu1 %3515 }
 0x52e   :  { %vm3538_vm14 = vcmp.ge.f32.partialorder %v5916_v41, %v3516_v56 }
 0x52f   :  { %v3546_v6 = vsel %vm3538_vm14, %v5916_v41, 0.0 }
 0x530   :  { %v3554_v23 = vsel %vm2096_vm4, %v3546_v6, -inf }
 0x531   :  { %3555 = vmax.xlane.f32.xlu0 %v3554_v23 }
 0x540   :  { %v3525_v61 = vpop.xlane.xlu1 %3524 }
 0x541   :  { %vm3541_vm15 = vcmp.ge.f32.partialorder %v5917_v26, %v3525_v61 }
 0x542   :  { %v3549_v46 = vsel %vm3541_vm15, %v5917_v26, 0.0  ;;  %v3898_v26 = vld [vmem:[%s5788_s5] sm:$0xff]  ;;  %s4459_s5 = smov 64  }
 0x543   :  { %v3563_v28 = vsel %vm2096_vm4, %v3549_v46, -inf  ;;  %4345 = vmatprep.subr.mxu1 %v3898_v26 }
 0x544   :  { %3564 = vmax.xlane.f32.xlu1 %v3563_v28  ;;  %4346 = vmatpush3.msra.mxu1 %v3898_v26 }
 0x54c   :  { %v3522_v17 = vpop.xlane.xlu0 %3521 }
 0x54d   :  { %vm3540_vm0 = vcmp.ge.f32.partialorder %v4707_v3, %v3522_v17 }
 0x54e   :  { %v3548_v2 = vsel %vm3540_vm0, %v4707_v3, 0.0 }
 0x54f   :  { %v3560_v51 = vsel %vm2096_vm4, %v3548_v2, -inf }
 0x550   :  { %3561 = vmax.xlane.f32.xlu0 %v3560_v51 }
 0x560   :  { %v3531_v4 = vpop.xlane.xlu1 %3530 }
 0x561   :  { %vm3543_vm1 = vcmp.ge.f32.partialorder %v4723_v14, %v3531_v4 }
 0x562   :  { %v3551_v11 = vsel %vm3543_vm1, %v4723_v14, 0.0 }
 0x563   :  { %v3569_v42 = vsel %vm2096_vm4, %v3551_v11, -inf }
 0x564   :  { %3570 = vmax.xlane.f32.xlu1 %v3569_v42 }
 0x56c   :  { %v3528_v33 = vpop.xlane.xlu0 %3527 }
 0x56d   :  { %vm3542_vm3 = vcmp.ge.f32.partialorder %v4725_v15, %v3528_v33 }
 0x56e   :  { %v3550_v43 = vsel %vm3542_vm3, %v4725_v15, 0.0 }
 0x56f   :  { %v3566_v53 = vsel %vm2096_vm4, %v3550_v43, -inf }
 0x570   :  { %3567 = vmax.xlane.f32.xlu0 %v3566_v53 }
 0x58c   :  { %v3534_v3 = vpop.xlane.xlu0 %3533 }
 0x58d   :  { %vm3544_vm5 = vcmp.ge.f32.partialorder %v4731_v19, %v3534_v3  ;;  %v3537_v44 = vpop.xlane.xlu1 %3536 }
 0x58e   :  { %v3552_v36 = vsel %vm3544_vm5, %v4731_v19, 0.0  ;;  %vm3545_vm13 = vcmp.ge.f32.partialorder %v4729_v18, %v3537_v44 }
 0x58f   :  { %v3553_v14 = vsel %vm3545_vm13, %v4729_v18, 0.0  ;;  %v3572_v47 = vsel %vm2096_vm4, %v3552_v36, -inf }
 0x590   :  { %3573 = vmax.xlane.f32.xlu0 %v3572_v47  ;;  %v3575_v1 = vsel %vm2096_vm4, %v3553_v14, -inf }
 0x591   :  { %3576 = vmax.xlane.f32.xlu1 %v3575_v1 }
 0x5b6   :  { %v3559_v15 = vpop.xlane.xlu1 %3558 }
 0x5b7   :  { %v3579_v50 = vsub.f32 %v3547_v48, %v3559_v15 }
 0x5b9   :  { %v3588_v16 = vmul.f32 1.442695, %v3579_v50  ;;  %v5918_v50 = vld [vmem:[#allocation6_spill] sm:$0xff] }
 0x5bb   :  { %4398 = vpow2.f32 %v3588_v16 }
 0x5be   :  { %v3556_v8 = vpop.xlane.xlu0 %3555 }
 0x5bf   :  { %v3578_v22 = vsub.f32 %v3546_v6, %v3556_v8 }
 0x5c1   :  { %v3586_v21 = vmul.f32 1.442695, %v3578_v22  ;;  %v5919_v22 = vld [vmem:[#allocation9_spill] sm:$0xff] }
 0x5c3   :  { %4400 = vpow2.f32 %v3586_v21  ;;  %v5920_v21 = vld [vmem:[#allocation8_spill] sm:$0xff] }
 0x5c5   :  { %v4399_v57 = vpop.eup %4398 }
 0x5c6   :  { %v3605_v19 = vsel %vm2096_vm4, %v4399_v57, 0.0 }
 0x5c7   :  { %3606 = vadd.xlane.f32.xlu1 %v3605_v19  ;;  %v5922_v19 = vld [vmem:[#allocation11_spill] sm:$0xff] }
 0x5cd   :  { %v4401_v32 = vpop.eup %4400 }
 0x5ce   :  { %v3602_v18 = vsel %vm2096_vm4, %v4401_v32, 0.0 }
 0x5cf   :  { %3603 = vadd.xlane.f32.xlu0 %v3602_v18  ;;  %v5924_v18 = vld [vmem:[#allocation13_spill] sm:$0xff] }
 0x5d1   :  { %v3565_v30 = vpop.xlane.xlu1 %3564 }
 0x5d2   :  { %v3581_v49 = vsub.f32 %v3549_v46, %v3565_v30  ;;  %v5925_v30 = vld [vmem:[#allocation12_spill] sm:$0xff] }
 0x5d4   :  { %v3592_v55 = vmul.f32 1.442695, %v3581_v49 }
 0x5d6   :  { %4402 = vpow2.f32 %v3592_v55 }
 0x5dd   :  { %v3562_v29 = vpop.xlane.xlu0 %3561 }
 0x5de   :  { %v3580_v37 = vsub.f32 %v3548_v2, %v3562_v29 }
 0x5e0   :  { %v4403_v27 = vpop.eup %4402  ;;  %v3590_v34 = vmul.f32 1.442695, %v3580_v37 }
 0x5e1   :  { %v3611_v45 = vsel %vm2096_vm4, %v4403_v27, 0.0 }
 0x5e2   :  { %4404 = vpow2.f32 %v3590_v34  ;;  %3612 = vadd.xlane.f32.xlu1 %v3611_v45 }
 0x5ec   :  { %v4405_v60 = vpop.eup %4404 }
 0x5ed   :  { %v3608_v35 = vsel %vm2096_vm4, %v4405_v60, 0.0 }
 0x5ee   :  { %3609 = vadd.xlane.f32.xlu0 %v3608_v35 }
 0x5f1   :  { %v3571_v58 = vpop.xlane.xlu1 %3570 }
 0x5f2   :  { %v3583_v63 = vsub.f32 %v3551_v11, %v3571_v58 }
 0x5f4   :  { %v3596_v39 = vmul.f32 1.442695, %v3583_v63 }
 0x5f6   :  { %4406 = vpow2.f32 %v3596_v39 }
 0x5fd   :  { %v3568_v12 = vpop.xlane.xlu0 %3567 }
 0x5fe   :  { %v3582_v38 = vsub.f32 %v3550_v43, %v3568_v12 }
 0x600   :  { %v4407_v13 = vpop.eup %4406  ;;  %v3594_v0 = vmul.f32 1.442695, %v3582_v38 }
 0x601   :  { %v3617_v62 = vsel %vm2096_vm4, %v4407_v13, 0.0 }
 0x602   :  { %4408 = vpow2.f32 %v3594_v0  ;;  %3618 = vadd.xlane.f32.xlu1 %v3617_v62 }
 0x60c   :  { %v4409_v52 = vpop.eup %4408 }
 0x60d   :  { %v3614_v24 = vsel %vm2096_vm4, %v4409_v52, 0.0 }
 0x60e   :  { %3615 = vadd.xlane.f32.xlu0 %v3614_v24 }
 0x61d   :  { %v3574_v25 = vpop.xlane.xlu0 %3573 }
 0x61e   :  { %v3584_v59 = vsub.f32 %v3552_v36, %v3574_v25  ;;  %v3577_v20 = vpop.xlane.xlu1 %3576 }
 0x61f   :  { %v3585_v10 = vsub.f32 %v3553_v14, %v3577_v20 }
 0x620   :  { %v3598_v9 = vmul.f32 1.442695, %v3584_v59 }
 0x621   :  { %v3600_v5 = vmul.f32 1.442695, %v3585_v10 }
 0x622   :  { %4410 = vpow2.f32 %v3598_v9 }
 0x623   :  { %4412 = vpow2.f32 %v3600_v5 }
 0x62c   :  { %v4411_v31 = vpop.eup %4410 }
 0x62d   :  { %v4413_v54 = vpop.eup %4412  ;;  %v3620_v40 = vsel %vm2096_vm4, %v4411_v31, 0.0 }
 0x62e   :  { %3621 = vadd.xlane.f32.xlu0 %v3620_v40  ;;  %v3623_v48 = vsel %vm2096_vm4, %v4413_v54, 0.0 }
 0x62f   :  { %3624 = vadd.xlane.f32.xlu1 %v3623_v48 }
 0x654   :  { %v3607_v7 = vpop.xlane.xlu1 %3606 }
 0x655   :  { %4414 = vrcp.f32 %v3607_v7 }
 0x65c   :  { %v3604_v56 = vpop.xlane.xlu0 %3603 }
 0x65d   :  { %4416 = vrcp.f32 %v3604_v56 }
 0x65f   :  { %v4415_v41 = vpop.eup %4414 }
 0x660   :  { %v3635_v6 = vmul.f32 %v4415_v41, %v4399_v57  ;;  %v5921_v57 = vld [vmem:[#allocation7_spill] sm:$0xff] }
 0x662   :  { %3674 = vxpose.xlu1.b32.start.end [1/1] (short) (narrow) %v3635_v6, 8 }
 0x667   :  { %v4417_v23 = vpop.eup %4416 }
 0x668   :  { %v3634_v61 = vmul.f32 %v4417_v23, %v4401_v32  ;;  %v5923_v32 = vld [vmem:[#allocation10_spill] sm:$0xff] }
 0x66a   :  { %3642 = vxpose.xlu0.b32.start.end [1/1] (short) (narrow) %v3634_v61, 8 }
 0x66f   :  { %v3613_v46 = vpop.xlane.xlu1 %3612 }
 0x670   :  { %4418 = vrcp.f32 %v3613_v46 }
 0x67a   :  { %v4419_v28 = vpop.eup %4418 }
 0x67b   :  { %v3610_v17 = vpop.xlane.xlu0 %3609  ;;  %v3637_v2 = vmul.f32 %v4419_v28, %v4403_v27 }
 0x67c   :  { %4420 = vrcp.f32 %v3610_v17 }
 0x67d   :  { %3738 = vxpose.xlu0.b32.start.end [1/1] (short) (narrow) %v3637_v2, 8 }
 0x686   :  { %v4421_v51 = vpop.eup %4420 }
 0x687   :  { %v3636_v4 = vmul.f32 %v4421_v51, %v4405_v60 }
 0x689   :  { %3706 = vxpose.xlu0.b32.start.end [1/1] (short) (narrow) %v3636_v4, 8 }
 0x68f   :  { %v3619_v11 = vpop.xlane.xlu1 %3618 }
 0x690   :  { %4422 = vrcp.f32 %v3619_v11 }
 0x69a   :  { %v4423_v42 = vpop.eup %4422 }
 0x69b   :  { %v3616_v33 = vpop.xlane.xlu0 %3615  ;;  %v3639_v43 = vmul.f32 %v4423_v42, %v4407_v13 }
 0x69c   :  { %4424 = vrcp.f32 %v3616_v33 }
 0x69d   :  { %3802 = vxpose.xlu1.b32.start.end [1/1] (short) (narrow) %v3639_v43, 8 }
 0x6a6   :  { %v4425_v53 = vpop.eup %4424 }
 0x6a7   :  { %v3638_v3 = vmul.f32 %v4425_v53, %v4409_v52 }
 0x6a9   :  { %3770 = vxpose.xlu0.b32.start.end [1/1] (short) (narrow) %v3638_v3, 8 }
 0x6bb   :  { %v3622_v44 = vpop.xlane.xlu0 %3621 }
 0x6bc   :  { %4426 = vrcp.f32 %v3622_v44  ;;  %v3625_v36 = vpop.xlane.xlu1 %3624 }
 0x6bd   :  { %4428 = vrcp.f32 %v3625_v36 }
 0x6c6   :  { %v4427_v14 = vpop.eup %4426 }
 0x6c7   :  { %v4429_v47 = vpop.eup %4428  ;;  %v3640_v1 = vmul.f32 %v4427_v14, %v4411_v31 }
 0x6c8   :  { %v3641_v15 = vmul.f32 %v4429_v47, %v4413_v54 }
 0x6c9   :  { %3834 = vxpose.xlu0.b32.start.end [1/1] (short) (narrow) %v3640_v1, 8 }
 0x6ca   :  { %3866 = vxpose.xlu1.b32.start.end [1/1] (short) (narrow) %v3641_v15, 8 }
 0x6e2   :  { %v3690_v16 = vpop.trf.xlu1 }
 0x6e8   :  { %4038 = vrot.lane.b32.xlu1 %v5918_v50, %s4459_s5 }
 0x6ea   :  { %v3658_v8 = vpop.trf.xlu0 }
 0x6eb   :  { %4347 = vmatprep.mubr.msk.f32.mxu1 %vm2096_vm4, %v3658_v8 }
 0x6ec   :  { %4040 = vrot.lane.b32.xlu1 %v5919_v22, %s4459_s5  ;;  %4348 = vmatmul.mubr.msk.f32.vlgmr.msra.gmra.mrb[8].mxu1 %vm2096_vm4, %v3690_v16 }
 0x6f0   :  { %4042 = vrot.lane.b32.xlu1 %v5920_v21, %s4459_s5 }
 0x6f2   :  { %4036 = vrot.lane.b32.xlu0 %v5921_v57, %s4459_s5 }
 0x6f4   :  { %4044 = vrot.lane.b32.xlu1 %v5922_v19, %s4459_s5 }
 0x6f6   :  { %4046 = vrot.lane.b32.xlu0 %v5923_v32, %s4459_s5 }
 0x6f8   :  { %4048 = vrot.lane.b32.xlu1 %v5924_v18, %s4459_s5 }
 0x6fa   :  { %4050 = vrot.lane.b32.xlu0 %v5925_v30, %s4459_s5 }
 0x6fd   :  { %v3754_v49 = vpop.trf.xlu0 }
 0x709   :  { %v3722_v55 = vpop.trf.xlu0 }
 0x70a   :  { %4350 = vmatprep.mubr.msk.f32.mxu1 %vm2096_vm4, %v3722_v55 }
 0x70b   :  { %4351 = vmatmul.mubr.msk.f32.gmra.mrb[10].mxu1 %vm2096_vm4, %v3754_v49 }
 0x71d   :  { %v3818_v29 = vpop.trf.xlu1 }
 0x729   :  { %v3786_v37 = vpop.trf.xlu0 }
 0x72a   :  { %4353 = vmatprep.mubr.msk.f32.mxu1 %vm2096_vm4, %v3786_v37 }
 0x72b   :  { %4354 = vmatmul.mubr.msk.f32.gmra.mrb[12].mxu1 %vm2096_vm4, %v3818_v29 }
 0x749   :  { %v3850_v27 = vpop.trf.xlu0 }
 0x74a   :  { %v3882_v34 = vpop.trf.xlu1  ;;  %4356 = vmatprep.mubr.msk.f32.mxu1 %vm2096_vm4, %v3850_v27 }
 0x74b   :  { %4357 = vmatmul.mubr.msk.f32.gmra.mrb[14].mxu1 %vm2096_vm4, %v3882_v34 }
 0x75a   :  { %v4039_v45 = vpop.permute.xlu1 %4038 }
 0x75e   :  { %v4041_v40 = vpop.permute.xlu1 %4040 }
 0x762   :  { %v4043_v48 = vpop.permute.xlu1 %4042 }
 0x764   :  { %v4037_v35 = vpop.permute.xlu0 %4036 }
 0x766   :  { %v4045_v47 = vpop.permute.xlu1 %4044 }
 0x768   :  { %v4047_v36 = vpop.permute.xlu0 %4046 }
 0x7bf   :  { %v4349_v60 = vpop.f32.mrb[8].mxu1 }
 0x7c0   :  { %v4061_v58 = vmul.f32 %v4349_v60, %v4039_v45  ;;  %v3989_v63 = vpop.f32.mrb[9].mxu1  ;;  %v4051_v60 = vpop.permute.xlu0 %4050 }
 0x7c1   :  { %v4060_v39 = vmul.f32 %v4037_v35, %v3989_v63 }
 0x7c2   :  { %v4075_v12 = vsel %vm350_vm2, %v4061_v58, 0.0  ;;  %v4049_v58 = vpop.permute.xlu1 %4048 }
 0x7c3   :  { %v4076_v38 = vrot.slane %v4075_v12, 4  ;;  %v4068_v13 = vsel %vm350_vm2, %v4060_v39, 0.0 }
 0x7c4   :  { %v4069_v0 = vrot.slane %v4068_v13, 4 }
 0x7c5   :  { %v4077_v62 = vadd.f32 %v4076_v38, %v4075_v12 }
 0x7c6   :  { %v4070_v52 = vadd.f32 %v4069_v0, %v4068_v13 }
 0x7c7   :  { %v4078_v24 = vrot.slane %v4077_v62, 2 }
 0x7c8   :  { %v4071_v25 = vrot.slane %v4070_v52, 2 }
 0x7c9   :  { %v4079_v59 = vadd.f32 %v4078_v24, %v4077_v62 }
 0x7ca   :  { %v4072_v20 = vadd.f32 %v4071_v25, %v4070_v52 }
 0x7cb   :  { %v4080_v10 = vrot.slane %v4079_v59, 1 }
 0x7cc   :  { %v4073_v9 = vrot.slane %v4072_v20, 1 }
 0x7cd   :  { %v4081_v5 = vadd.f32 %v4080_v10, %v4079_v59 }
 0x7ce   :  { %v4074_v31 = vadd.f32 %v4073_v9, %v4072_v20 }
 0x7d0   :  { %v4132_v54 = vsel %vm3443_vm6, %v4081_v5, %v4074_v31 }
 0x7de   :  { %v4352_v7 = vpop.f32.mrb[10].mxu1 }
 0x7df   :  { %v4063_v56 = vmul.f32 %v4352_v7, %v4043_v48  ;;  %v3999_v41 = vpop.f32.mrb[11].mxu1 }
 0x7e0   :  { %v4062_v6 = vmul.f32 %v4041_v40, %v3999_v41 }
 0x7e1   :  { %v4089_v23 = vsel %vm350_vm2, %v4063_v56, 0.0 }
 0x7e2   :  { %v4090_v61 = vrot.slane %v4089_v23, 4  ;;  %v4082_v26 = vsel %vm350_vm2, %v4062_v6, 0.0 }
 0x7e3   :  { %v4083_v46 = vrot.slane %v4082_v26, 4 }
 0x7e4   :  { %v4091_v28 = vadd.f32 %v4090_v61, %v4089_v23 }
 0x7e5   :  { %v4084_v17 = vadd.f32 %v4083_v46, %v4082_v26 }
 0x7e6   :  { %v4092_v2 = vrot.slane %v4091_v28, 2 }
 0x7e7   :  { %v4085_v51 = vrot.slane %v4084_v17, 2 }
 0x7e8   :  { %v4093_v4 = vadd.f32 %v4092_v2, %v4091_v28 }
 0x7e9   :  { %v4086_v11 = vadd.f32 %v4085_v51, %v4084_v17 }
 0x7ea   :  { %v4094_v42 = vrot.slane %v4093_v4, 1 }
 0x7eb   :  { %v4087_v33 = vrot.slane %v4086_v11, 1 }
 0x7ec   :  { %v4095_v53 = vadd.f32 %v4094_v42, %v4093_v4 }
 0x7ed   :  { %v4088_v43 = vadd.f32 %v4087_v33, %v4086_v11 }
 0x7ef   :  { %v4133_v3 = vsel %vm3445_vm7, %v4088_v43, %v4132_v54 }
 0x7f0   :  { %v4134_v44 = vsel %vm3447_vm8, %v4095_v53, %v4133_v3 }
 0x7fe   :  { %v4355_v14 = vpop.f32.mrb[12].mxu1 }
 0x7ff   :  { %v4065_v1 = vmul.f32 %v4355_v14, %v4047_v36  ;;  %v4009_v15 = vpop.f32.mrb[13].mxu1 }
 0x800   :  { %v4064_v50 = vmul.f32 %v4045_v47, %v4009_v15 }
 0x801   :  { %v4103_v16 = vsel %vm350_vm2, %v4065_v1, 0.0 }
 0x802   :  { %v4104_v8 = vrot.slane %v4103_v16, 4  ;;  %v4096_v22 = vsel %vm350_vm2, %v4064_v50, 0.0 }
 0x803   :  { %v4097_v21 = vrot.slane %v4096_v22, 4 }
 0x804   :  { %v4105_v57 = vadd.f32 %v4104_v8, %v4103_v16 }
 0x805   :  { %v4098_v19 = vadd.f32 %v4097_v21, %v4096_v22 }
 0x806   :  { %v4106_v32 = vrot.slane %v4105_v57, 2 }
 0x807   :  { %v4099_v18 = vrot.slane %v4098_v19, 2 }
 0x808   :  { %v4107_v30 = vadd.f32 %v4106_v32, %v4105_v57 }
 0x809   :  { %v4100_v49 = vadd.f32 %v4099_v18, %v4098_v19 }
 0x80a   :  { %v4108_v55 = vrot.slane %v4107_v30, 1 }
 0x80b   :  { %v4101_v29 = vrot.slane %v4100_v49, 1 }
 0x80c   :  { %v4109_v27 = vadd.f32 %v4108_v55, %v4107_v30 }
 0x80d   :  { %v4102_v37 = vadd.f32 %v4101_v29, %v4100_v49 }
 0x80f   :  { %v4135_v34 = vsel %vm3449_vm9, %v4102_v37, %v4134_v44 }
 0x810   :  { %v4136_v45 = vsel %vm3451_vm10, %v4109_v27, %v4135_v34 }
 0x81e   :  { %v4358_v35 = vpop.f32.mrb[14].mxu1 }
 0x81f   :  { %v4067_v63 = vmul.f32 %v4358_v35, %v4051_v60  ;;  %v4019_v39 = vpop.f32.mrb[15].mxu1 }
 0x820   :  { %v4066_v12 = vmul.f32 %v4049_v58, %v4019_v39 }
 0x821   :  { %v4117_v38 = vsel %vm350_vm2, %v4067_v63, 0.0 }
 0x822   :  { %v4118_v13 = vrot.slane %v4117_v38, 4  ;;  %v4110_v0 = vsel %vm350_vm2, %v4066_v12, 0.0 }
 0x823   :  { %v4111_v62 = vrot.slane %v4110_v0, 4 }
 0x824   :  { %v4119_v52 = vadd.f32 %v4118_v13, %v4117_v38 }
 0x825   :  { %v4112_v24 = vadd.f32 %v4111_v62, %v4110_v0 }
 0x826   :  { %v4120_v25 = vrot.slane %v4119_v52, 2 }
 0x827   :  { %v4113_v59 = vrot.slane %v4112_v24, 2 }
 0x828   :  { %v4121_v20 = vadd.f32 %v4120_v25, %v4119_v52 }
 0x829   :  { %v4114_v10 = vadd.f32 %v4113_v59, %v4112_v24 }
 0x82a   :  { %v4122_v9 = vrot.slane %v4121_v20, 1 }
 0x82b   :  { %v4115_v5 = vrot.slane %v4114_v10, 1 }
 0x82c   :  { %v4123_v54 = vadd.f32 %v4122_v9, %v4121_v20 }
 0x82d   :  { %v4116_v31 = vadd.f32 %v4115_v5, %v4114_v10 }
 0x82f   :  { %v4137_v40 = vsel %vm3453_vm11, %v4116_v31, %v4136_v45 }
 0x830   :  { %v4138_v48 = vsel %vm3455_vm12, %v4123_v54, %v4137_v40 }
 0x831   :  { %4140 = vst.msk [vmem:[#allocation2] sm:$0xff] %vm350_vm2, %v4138_v48 }
 0x832   :  { %4441 = shalt.err (!%p4438_p4)
}
 0x833   :  { %s4442_s23 = scalar_lea.hbm %s5789_s6, 128 }
 0x834   :  { %p4443_p5 = scmp.ne.s32.totalorder %s5789_s6, %s4442_s23  ;;  %p4446_p6 = scmp.lt.u32.totalorder %s4442_s23, %s5789_s6 }
 0x836   :  { %p4448_p7 = pnand %p4446_p6, %p4443_p5 }
 0x838   :  { %4451 = shalt.err (!%p4448_p7)
}
 0x839   :  { %4150 = dma.vmem_to_hbm [thread:$0]  %s4148_s19, 128, %s5789_s6, [#allocation3]  }
 0x83a   :  { %4452 = dma.done.wait [#allocation3], 128  }
 0x83b   :  { %4453 = vsyncadd [#allocation3], 4294967168 }
 0x83c   :  { %4154 = vsyncpa [#allocation3], 1 }

// kernel: tpu_custom_call.1
= control target key start
LH: loop header
LB: loop body
LE: loop exit
PB: predicated region body
PF: predicated region fallthrough
CT: control target
= control target key end

     0   :  { %v4454_v3 = vmov 0.0|0.0   ;;  %vm4455_vm0 = vmmov 0   ;;  %v5791_v8 = vmov 0.0   ;;  %vm29_vm1 = vcmask 261120   ;;  %s5783_s0 = inlined_call_operand.vmem [shape: f32[8,32], index: 0, kind: input, shape index: {}]   ;;  %s5784_s1 = inlined_call_operand.vmem [shape: f32[64,32], index: 1, kind: input, shape index: {}]   ;;  %s5785_s2 = inlined_call_operand.vmem [shape: f32[32,64], index: 2, kind: input, shape index: {}]   ;;  %s5786_s3 = inlined_call_operand.vmem [shape: f32[32,128], index: 3, kind: input, shape index: {}]   ;;  %s5787_s4 = inlined_call_operand.vmem [shape: f32[64,8], index: 4, kind: input, shape index: {}]   ;;  %s5788_s5 = inlined_call_operand.vmem [shape: f32[8,64], index: 5, kind: input, shape index: {}]   ;;  %s5789_s6 = inlined_call_operand.hbm [shape: f32[8,64], index: 6, kind: output, shape index: {}]  }
   0x1   :  { %v25_v0 = vld [vmem:[%s5785_s2] sm:$0xff]  ;;  %v26_v1 = vld [vmem:[%s5785_s2 + $0x8] sm:$0xff]  ;;  %4359 = vmatprep.subr.bf16.mxu0 %v4454_v3  ;;  %v27_v6 = vld [vmem:[%s5785_s2 + $0x10] sm:$0xff]  ;;  %4294 = vmatprep.mubr.msk.f32.mxu0 %vm4455_vm0, %v5791_v8 }
   0x2   :  { %v111_v2 = vld [vmem:[%s5786_s3] sm:$0xff]  ;;  %v4360_v4 = vpack.c.bf16 %v26_v1, %v25_v0  ;;  %v112_v5 = vld [vmem:[%s5786_s3 + $0x8] sm:$0xff]  ;;  %v28_v7 = vld [vmem:[%s5785_s2 + $0x18] sm:$0xff] }
   0x3   :  { %v4365_v9 = vpack.c.bf16 %v112_v5, %v111_v2  ;;  %v113_v10 = vld [vmem:[%s5786_s3 + $0x10] sm:$0xff]  ;;  %v114_v11 = vld [vmem:[%s5786_s3 + $0x18] sm:$0xff]  ;;  %v4363_v12 = vpack.c.bf16 %v28_v7, %v27_v6  ;;  %v103_v14 = vld [vmem:[%s5784_s1] sm:$0xff] }
   0x4   :  { %4361 = vmatpush3.bf16.msra.mxu0 %v4360_v4  ;;  %v4369_v13 = vpack.c.bf16 %v114_v11, %v113_v10  ;;  %4305 = vmatprep.mubr.msk.f32.mxu1 %vm29_vm1, %v103_v14  ;;  %v342_v15 = vld [vmem:[%s5787_s4] sm:$0xff]  ;;  %v343_v16 = vld [vmem:[%s5787_s4 + $0x8] sm:$0xff]  ;;  %v344_v17 = vld [vmem:[%s5787_s4 + $0x10] sm:$0xff] }
   0x5   :  { %4366 = vmatprep.subr.bf16.mxu1 %v4365_v9  ;;  %4362 = vmatprep.subr.bf16.mxu0 %v4454_v3  ;;  %v345_v18 = vld [vmem:[%s5787_s4 + $0x18] sm:$0xff]  ;;  %v24_v19 = vld [vmem:[%s5783_s0] sm:$0xff]  ;;  %v4373_v20 = vpack.c.bf16 %v343_v16, %v342_v15 }
   0x6   :  { %4368 = vmatpush3.bf16.msra.mxu1 %v4365_v9 }
   0x7   :  { %4370 = vmatprep.subr.bf16.mxu1 %v4369_v13 }
   0x8   :  { %4364 = vmatpush3.bf16.msra.mxu0 %v4363_v12 }
   0x9   :  { %11 = vsyncpa [#allocation3], 0  ;;  %v4377_v21 = vpack.c.bf16 %v345_v18, %v344_v17  ;;  %v104_v22 = vld [vmem:[%s5784_s1 + $0x8] sm:$0xff]  ;;  %4374 = vmatprep.subr.bf16.mxu0 %v4373_v20  ;;  %v105_v23 = vld [vmem:[%s5784_s1 + $0x10] sm:$0xff]  ;;  %v4457_v35 = vmov 1966171168   ;;  %v5790_v37 = vlaneseq }
   0xa   :  { %4372 = vmatpush3.bf16.msra.mxu1 %v4369_v13  ;;  %v106_v24 = vld [vmem:[%s5784_s1 + $0x18] sm:$0xff]  ;;  %v107_v25 = vld [vmem:[%s5784_s1 + $0x20] sm:$0xff]  ;;  %v108_v26 = vld [vmem:[%s5784_s1 + $0x28] sm:$0xff]  ;;  %v247_v36 = vunpack.c.l.s4 %v4457_v35  ;;  %vm350_vm2 = vcmask 523264   ;;  %vm2096_vm4 = vcmask 64512   ;;  %s4460_s18 = smov [#allocation2]  }
   0xb   :  { %4295 = vmatmul.mubr.msk.f32.vlgmr.msra.gmra.mrb[0].mxu0 %vm29_vm1, %v24_v19  ;;  %v109_v27 = vld [vmem:[%s5784_s1 + $0x30] sm:$0xff]  ;;  %v110_v28 = vld [vmem:[%s5784_s1 + $0x38] sm:$0xff]  ;;  %v346_v29 = vld [vmem:[%s5787_s4 + $0x20] sm:$0xff]  ;;  %v4582_v39 = vshrl.u32 %v5790_v37, 7  ;;  %s4147_s19 = sshll.u32 %s4460_s18, 4  ;;  %s4148_s19 = int_to_ptr.vmem [resolvable:$true] %s4147_s19 }
   0xc   :  { %4376 = vmatpush3.bf16.msra.mxu0 %v4373_v20  ;;  %v347_v30 = vld [vmem:[%s5787_s4 + $0x28] sm:$0xff]  ;;  %v348_v32 = vld [vmem:[%s5787_s4 + $0x30] sm:$0xff]  ;;  %v349_v33 = vld [vmem:[%s5787_s4 + $0x38] sm:$0xff]  ;;  %v248_v38 = vunpack.c.0.s8 %v247_v36  ;;  %s4430_s20 = scalar_lea.vmem %s4148_s19, 128  ;;  %p4435_p1 = scmp.lt.s32.totalorder %s4148_s19, %s4148_s19 }
   0xd   :  { %4306 = vmatmul.mubr.msk.f32.vlgmr.msra.gmra.mrb[0].mxu1 %vm29_vm1, %v104_v22  ;;  %4378 = vmatprep.subr.bf16.mxu0 %v4377_v21  ;;  %v4381_v31 = vpack.c.bf16 %v347_v30, %v346_v29  ;;  %v4385_v34 = vpack.c.bf16 %v349_v33, %v348_v32  ;;  %5808 = vst [vmem:[#allocation5_spill] sm:$0xff] %v4582_v39  ;;  %v4589_v45 = vsub.s32 0, %v4582_v39  ;;  %v4646_v30 = vsub.s32 2, %v4582_v39  ;;  %p4431_p0 = scmp.ne.s32.totalorder %s4148_s19, %s4430_s20  ;;  %p4436_p2 = scmp.lt.s32.totalorder %s4430_s20, %s4430_s20 }
   0xe   :  { %4308 = vmatprep.mubr.msk.f32.mxu1 %vm29_vm1, %v105_v23  ;;  %v4585_v40 = vsub.s32 %v248_v38, %v4582_v39  ;;  %v4659_v35 = vsub.s32 5, %v4582_v39 }
   0xf   :  { %p4437_p3 = por %p4436_p2, %p4435_p1 }
  0x10   :  { %4380 = vmatpush3.bf16.msra.mxu0 %v4377_v21 }
  0x11   :  { %4309 = vmatmul.mubr.msk.f32.gmra.mrb[2].mxu1 %vm29_vm1, %v106_v24  ;;  %4382 = vmatprep.subr.bf16.mxu0 %v4381_v31  ;;  %p4438_p4 = pnand %p4437_p3, %p4431_p0 }
  0x12   :  { %4311 = vmatprep.mubr.msk.f32.mxu1 %vm29_vm1, %v107_v25 }
  0x14   :  { %4384 = vmatpush3.bf16.msra.mxu0 %v4381_v31  ;;  %v4649_v31 = vsub.s32 3, %v4582_v39 }
  0x15   :  { %4312 = vmatmul.mubr.msk.f32.gmra.mrb[4].mxu1 %vm29_vm1, %v108_v26  ;;  %4386 = vmatprep.subr.bf16.mxu0 %v4385_v34  ;;  %v4637_v26 = vsub.s32 1, %v4582_v39 }
  0x16   :  { %4314 = vmatprep.mubr.msk.f32.mxu1 %vm29_vm1, %v109_v27 }
  0x18   :  { %4388 = vmatpush3.bf16.msra.mxu0 %v4385_v34  ;;  %v4656_v34 = vsub.s32 4, %v4582_v39 }
  0x19   :  { %4315 = vmatmul.mubr.msk.f32.gmra.mrb[6].mxu1 %vm29_vm1, %v110_v28 }
  0xde   :  { %v99_v41 = vpop.f32.mrb[0].mxu0 }
  0xdf   :  { %v245_v42 = vcombine.high %v99_v41, %v99_v41  ;;  %v252_v43 = vrot.slane %v99_v41, %v4585_v40  ;;  %v4296_v44 = vpop.f32.mrb[1].mxu0  ;;  %v4666_v41 = vsub.s32 6, %v4582_v39 }
  0xe0   :  { %v4591_v46 = vpop.f32.mrb[0].mxu1 }
  0xe1   :  { %5809 = vst [vmem:[#allocation6_spill] sm:$0xff] %v4591_v46  ;;  %v259_v47 = vrot.slane %v245_v42, %v4585_v40  ;;  %v260_v48 = vcombine.high %v252_v43, %v252_v43  ;;  %v268_v49 = vrot.slane %v252_v43, %v4585_v40  ;;  %v4595_v50 = vpop.f32.mrb[1].mxu1  ;;  %v4669_v42 = vsub.s32 7, %v4582_v39 }
  0xe2   :  { %5810 = vst [vmem:[#allocation7_spill] sm:$0xff] %v4595_v50 }
  0xe3   :  { %v261_v51 = vcombine.high %v259_v47, %v259_v47  ;;  %v282_v52 = vrot.slane %v260_v48, %v4585_v40  ;;  %v297_v53 = vrot.slane %v268_v49, %v4589_v45  ;;  %v290_v54 = vcombine.high %v268_v49, %v268_v49 }
  0xe4   :  { %v4599_v55 = vpop.f32.mrb[2].mxu1  ;;  %v275_v56 = vrot.slane %v259_v47, %v4585_v40 }
  0xe5   :  { %5811 = vst [vmem:[#allocation8_spill] sm:$0xff] %v4599_v55  ;;  %v301_v57 = vrot.slane %v282_v52, %v4589_v45  ;;  %v334_v58 = vmul.f32 %v297_v53, %v4595_v50  ;;  %v292_v59 = vcombine.high %v282_v52, %v282_v52  ;;  %v4604_v60 = vpop.f32.mrb[3].mxu1  ;;  %v305_v61 = vrot.slane %v290_v54, %v4589_v45 }
  0xe6   :  { %5812 = vst [vmem:[#allocation9_spill] sm:$0xff] %v4604_v60  ;;  %v289_v62 = vrot.slane %v261_v51, %v4585_v40  ;;  %v313_v4 = vrot.slane %v275_v56, %v4589_v45  ;;  %v291_v6 = vcombine.high %v275_v56, %v275_v56 }
  0xe7   :  { %v335_v63 = vmul.f32 %v4591_v46, %v301_v57  ;;  %v309_v0 = vrot.slane %v292_v59, %v4589_v45  ;;  %v336_v1 = vmul.f32 %v305_v61, %v4604_v60  ;;  %4333 = vmatprep.mubr.msk.f32.mxu0 %vm350_vm2, %v334_v58 }
  0xe8   :  { %v4612_v2 = vpop.f32.mrb[4].mxu1  ;;  %v317_v3 = vrot.slane %v289_v62, %v4589_v45  ;;  %v293_v5 = vcombine.high %v289_v62, %v289_v62  ;;  %v321_v14 = vrot.slane %v291_v6, %v4589_v45 }
  0xe9   :  { %5813 = vst [vmem:[#allocation10_spill] sm:$0xff] %v4612_v2  ;;  %v337_v7 = vmul.f32 %v4599_v55, %v309_v0  ;;  %v4617_v9 = vpop.f32.mrb[5].mxu1  ;;  %4334 = vmatmul.mubr.msk.f32.vlgmr.msra.gmra.mrb[2].mxu0 %vm350_vm2, %v335_v63 }
  0xea   :  { %5814 = vst [vmem:[#allocation11_spill] sm:$0xff] %v4617_v9  ;;  %v339_v10 = vmul.f32 %v4612_v2, %v317_v3  ;;  %v338_v11 = vmul.f32 %v313_v4, %v4617_v9  ;;  %4336 = vmatprep.mubr.msk.f32.mxu0 %vm350_vm2, %v336_v1  ;;  %v325_v12 = vrot.slane %v293_v5, %v4589_v45 }
  0xec   :  { %v4624_v13 = vpop.f32.mrb[6].mxu1 }
  0xed   :  { %5815 = vst [vmem:[#allocation12_spill] sm:$0xff] %v4624_v13  ;;  %v341_v15 = vmul.f32 %v4624_v13, %v325_v12  ;;  %v4628_v16 = vpop.f32.mrb[7].mxu1  ;;  %4337 = vmatmul.mubr.msk.f32.gmra.mrb[4].mxu0 %vm350_vm2, %v337_v7 }
  0xee   :  { %5816 = vst [vmem:[#allocation13_spill] sm:$0xff] %v4628_v16  ;;  %v340_v17 = vmul.f32 %v321_v14, %v4628_v16  ;;  %4339 = vmatprep.mubr.msk.f32.mxu0 %vm350_vm2, %v338_v11 }
  0xf1   :  { %4340 = vmatmul.mubr.msk.f32.gmra.mrb[6].mxu0 %vm350_vm2, %v339_v10 }
  0xf2   :  { %4342 = vmatprep.mubr.msk.f32.mxu0 %vm350_vm2, %v340_v17 }
  0xf5   :  { %4343 = vmatmul.mubr.msk.f32.gmra.mrb[8].mxu0 %vm350_vm2, %v341_v15 }
 0x1bc   :  { %v4335_v18 = vpop.f32.mrb[2].mxu0 }
 0x1bd   :  { %512 = vxpose.xlu0.b32.start.end [1/1] (short) (narrow) %v4335_v18, 8  ;;  %v441_v19 = vpop.f32.mrb[3].mxu0 }
 0x1c0   :  { %v4338_v20 = vpop.f32.mrb[4].mxu0 }
 0x1c1   :  { %480 = vxpose.xlu0.b32.start.end [1/1] (short) (narrow) %v441_v19, 8  ;;  %576 = vxpose.xlu1.b32.start.end [1/1] (short) (narrow) %v4338_v20, 8  ;;  %v451_v21 = vpop.f32.mrb[5].mxu0 }
 0x1c4   :  { %v4341_v22 = vpop.f32.mrb[6].mxu0 }
 0x1c5   :  { %544 = vxpose.xlu1.b32.start.end [1/1] (short) (narrow) %v451_v21, 8  ;;  %v461_v23 = vpop.f32.mrb[7].mxu0 }
 0x1c6   :  { %608 = vxpose.xlu0.b32.start.end [1/1] (short) (narrow) %v461_v23, 8 }
 0x1c8   :  { %v4344_v24 = vpop.f32.mrb[8].mxu0 }
 0x1c9   :  { %640 = vxpose.xlu1.b32.start.end [1/1] (short) (narrow) %v4341_v22, 8  ;;  %v471_v25 = vpop.f32.mrb[9].mxu0 }
 0x1ca   :  { %672 = vxpose.xlu0.b32.start.end [1/1] (short) (narrow) %v471_v25, 8 }
 0x1cd   :  { %704 = vxpose.xlu1.b32.start.end [1/1] (short) (narrow) %v4344_v24, 8 }
 0x23d   :  { %v4639_v27 = vpop.trf.xlu0 }
 0x23e   :  { %5817 = vst [vmem:[#allocation14_spill] sm:$0xff] %v4639_v27  ;;  %v1195_v28 = vrot.slane %v4639_v27, %v4589_v45  ;;  %v1202_v29 = vrot.slane %v4639_v27, %v4637_v26  ;;  %v1209_v32 = vrot.slane %v4639_v27, %v4646_v30  ;;  %v1216_v33 = vrot.slane %v4639_v27, %v4649_v31 }
 0x23f   :  { %v1223_v36 = vrot.slane %v4639_v27, %v4656_v34  ;;  %v1230_v38 = vrot.slane %v4639_v27, %v4659_v35  ;;  %v1237_v43 = vrot.slane %v4639_v27, %v4666_v41  ;;  %v1244_v44 = vrot.slane %v4639_v27, %v4669_v42 }
 0x240   :  { %1197 = vbcast.lane.b32.xlu1 %v1195_v28, 256  ;;  %1204 = vbcast.lane.b32.xlu0 %v1202_v29, 256 }
 0x241   :  { %v4675_v47 = vpop.trf.xlu0  ;;  %v4693_v58 = vpop.trf.xlu1 }
 0x242   :  { %5818 = vst [vmem:[#allocation15_spill] sm:$0xff] %v4675_v47  ;;  %v1146_v48 = vrot.slane %v4675_v47, %v4637_v26  ;;  %v1153_v49 = vrot.slane %v4675_v47, %v4646_v30  ;;  %v1160_v51 = vrot.slane %v4675_v47, %v4649_v31  ;;  %v1139_v52 = vrot.slane %v4675_v47, %v4589_v45 }
 0x243   :  { %v1167_v53 = vrot.slane %v4675_v47, %v4656_v34  ;;  %v1174_v54 = vrot.slane %v4675_v47, %v4659_v35  ;;  %v1181_v56 = vrot.slane %v4675_v47, %v4666_v41  ;;  %v1188_v57 = vrot.slane %v4675_v47, %v4669_v42  ;;  %5819 = vst [vmem:[#allocation16_spill] sm:$0xff] %v4693_v58 }
 0x244   :  { %1211 = vbcast.lane.b32.xlu1 %v1209_v32, 256  ;;  %1218 = vbcast.lane.b32.xlu0 %v1216_v33, 256  ;;  %v1307_v59 = vrot.slane %v4693_v58, %v4589_v45  ;;  %v1321_v61 = vrot.slane %v4693_v58, %v4646_v30  ;;  %v1335_v62 = vrot.slane %v4693_v58, %v4656_v34 }
 0x245   :  { %v1314_v63 = vrot.slane %v4693_v58, %v4637_v26  ;;  %v1349_v0 = vrot.slane %v4693_v58, %v4666_v41  ;;  %v1328_v1 = vrot.slane %v4693_v58, %v4649_v31  ;;  %v4707_v3 = vpop.trf.xlu1  ;;  %v1342_v4 = vrot.slane %v4693_v58, %v4659_v35 }
 0x246   :  { %v1251_v5 = vrot.slane %v4707_v3, %v4589_v45  ;;  %v1356_v6 = vrot.slane %v4693_v58, %v4669_v42  ;;  %v1265_v7 = vrot.slane %v4707_v3, %v4646_v30  ;;  %v1279_v10 = vrot.slane %v4707_v3, %v4656_v34  ;;  %v4725_v15 = vpop.trf.xlu0 }
 0x247   :  { %v1293_v11 = vrot.slane %v4707_v3, %v4666_v41  ;;  %v1286_v12 = vrot.slane %v4707_v3, %v4659_v35  ;;  %v1258_v21 = vrot.slane %v4707_v3, %v4637_v26  ;;  %v1272_v25 = vrot.slane %v4707_v3, %v4649_v31 }
 0x248   :  { %1225 = vbcast.lane.b32.xlu1 %v1223_v36, 256  ;;  %1232 = vbcast.lane.b32.xlu0 %v1230_v38, 256  ;;  %v1370_v16 = vrot.slane %v4725_v15, %v4637_v26 }
 0x249   :  { %v4723_v14 = vpop.trf.xlu1 }
 0x24a   :  { %v1426_v17 = vrot.slane %v4723_v14, %v4637_v26  ;;  %v4731_v19 = vpop.trf.xlu0  ;;  %v1433_v20 = vrot.slane %v4723_v14, %v4646_v30  ;;  %v1440_v22 = vrot.slane %v4723_v14, %v4649_v31 }
 0x24c   :  { %1239 = vbcast.lane.b32.xlu1 %v1237_v43, 256  ;;  %1246 = vbcast.lane.b32.xlu0 %v1244_v44, 256 }
 0x24d   :  { %v4729_v18 = vpop.trf.xlu1 }
 0x24e   :  { %v1559_v50 = vrot.slane %v4729_v18, %v4656_v34  ;;  %v1566_v46 = vrot.slane %v4729_v18, %v4659_v35 }
 0x250   :  { %2421 = vbcast.lane.b32.xlu1 %v1202_v29, 256  ;;  %2414 = vbcast.lane.b32.xlu0 %v1195_v28, 256  ;;  %v1447_v28 = vrot.slane %v4723_v14, %v4656_v34 }
 0x254   :  { %2428 = vbcast.lane.b32.xlu1 %v1209_v32, 256  ;;  %2442 = vbcast.lane.b32.xlu0 %v1223_v36, 256 }
 0x258   :  { %2435 = vbcast.lane.b32.xlu1 %v1216_v33, 256  ;;  %2449 = vbcast.lane.b32.xlu0 %v1230_v38, 256  ;;  %v1454_v33 = vrot.slane %v4723_v14, %v4659_v35 }
 0x25c   :  { %1148 = vbcast.lane.b32.xlu1 %v1146_v48, 256  ;;  %2456 = vbcast.lane.b32.xlu0 %v1237_v43, 256  ;;  %v1300_v43 = vrot.slane %v4707_v3, %v4669_v42 }
 0x260   :  { %1155 = vbcast.lane.b32.xlu1 %v1153_v49, 256  ;;  %2463 = vbcast.lane.b32.xlu0 %v1244_v44, 256  ;;  %v1468_v44 = vrot.slane %v4723_v14, %v4669_v42 }
 0x264   :  { %1162 = vbcast.lane.b32.xlu1 %v1160_v51, 256  ;;  %1141 = vbcast.lane.b32.xlu0 %v1139_v52, 256 }
 0x268   :  { %1169 = vbcast.lane.b32.xlu1 %v1167_v53, 256  ;;  %1176 = vbcast.lane.b32.xlu0 %v1174_v54, 256 }
 0x26c   :  { %1183 = vbcast.lane.b32.xlu1 %v1181_v56, 256  ;;  %1190 = vbcast.lane.b32.xlu0 %v1188_v57, 256 }
 0x270   :  { %2358 = vbcast.lane.b32.xlu1 %v1139_v52, 256  ;;  %2365 = vbcast.lane.b32.xlu0 %v1146_v48, 256 }
 0x274   :  { %2372 = vbcast.lane.b32.xlu1 %v1153_v49, 256  ;;  %2379 = vbcast.lane.b32.xlu0 %v1160_v51, 256 }
 0x278   :  { %2407 = vbcast.lane.b32.xlu1 %v1188_v57, 256  ;;  %2386 = vbcast.lane.b32.xlu0 %v1167_v53, 256 }
 0x27c   :  { %1309 = vbcast.lane.b32.xlu1 %v1307_v59, 256  ;;  %2393 = vbcast.lane.b32.xlu0 %v1174_v54, 256 }
 0x280   :  { %1323 = vbcast.lane.b32.xlu1 %v1321_v61, 256  ;;  %2400 = vbcast.lane.b32.xlu0 %v1181_v56, 256 }
 0x284   :  { %1337 = vbcast.lane.b32.xlu1 %v1335_v62, 256  ;;  %1316 = vbcast.lane.b32.xlu0 %v1314_v63, 256 }
 0x288   :  { %1351 = vbcast.lane.b32.xlu1 %v1349_v0, 256  ;;  %1330 = vbcast.lane.b32.xlu0 %v1328_v1, 256 }
 0x28c   :  { %2568 = vbcast.lane.b32.xlu1 %v1349_v0, 256  ;;  %1344 = vbcast.lane.b32.xlu0 %v1342_v4, 256  ;;  %v1377_v0 = vrot.slane %v4725_v15, %v4646_v30 }
 0x290   :  { %1253 = vbcast.lane.b32.xlu1 %v1251_v5, 256  ;;  %1358 = vbcast.lane.b32.xlu0 %v1356_v6, 256 }
 0x294   :  { %1267 = vbcast.lane.b32.xlu1 %v1265_v7, 256  ;;  %2526 = vbcast.lane.b32.xlu0 %v1307_v59, 256  ;;  %v1461_v59 = vrot.slane %v4723_v14, %v4666_v41 }
 0x298   :  { %1281 = vbcast.lane.b32.xlu1 %v1279_v10, 256  ;;  %2533 = vbcast.lane.b32.xlu0 %v1314_v63, 256 }
 0x29c   :  { %1295 = vbcast.lane.b32.xlu1 %v1293_v11, 256  ;;  %2540 = vbcast.lane.b32.xlu0 %v1321_v61, 256  ;;  %v1363_v61 = vrot.slane %v4725_v15, %v4589_v45 }
 0x2a0   :  { %2498 = vbcast.lane.b32.xlu1 %v1279_v10, 256  ;;  %2547 = vbcast.lane.b32.xlu0 %v1328_v1, 256 }
 0x2a4   :  { %2505 = vbcast.lane.b32.xlu1 %v1286_v12, 256  ;;  %2554 = vbcast.lane.b32.xlu0 %v1335_v62, 256 }
 0x2a8   :  { %2512 = vbcast.lane.b32.xlu1 %v1293_v11, 256  ;;  %2561 = vbcast.lane.b32.xlu0 %v1342_v4, 256 }
 0x2ac   :  { %1428 = vbcast.lane.b32.xlu1 %v1426_v17, 256  ;;  %2575 = vbcast.lane.b32.xlu0 %v1356_v6, 256  ;;  %v4795_v6 = vrot.slane %v4725_v15, %v4669_v42 }
 0x2b0   :  { %1435 = vbcast.lane.b32.xlu1 %v1433_v20, 256  ;;  %1260 = vbcast.lane.b32.xlu0 %v1258_v21, 256 }
 0x2b2   :  { %v4739_v23 = vpop.permute.xlu1 %1197  ;;  %v4741_v24 = vpop.permute.xlu0 %1204 }
 0x2b4   :  { %1442 = vbcast.lane.b32.xlu1 %v1440_v22, 256  ;;  %1274 = vbcast.lane.b32.xlu0 %v1272_v25, 256 }
 0x2b6   :  { %v4747_v29 = vpop.permute.xlu1 %1211  ;;  %v4749_v32 = vpop.permute.xlu0 %1218 }
 0x2b8   :  { %1449 = vbcast.lane.b32.xlu1 %v1447_v28, 256  ;;  %1288 = vbcast.lane.b32.xlu0 %v1286_v12, 256 }
 0x2ba   :  { %v4753_v36 = vpop.permute.xlu1 %1225  ;;  %v4755_v38 = vpop.permute.xlu0 %1232 }
 0x2bc   :  { %1456 = vbcast.lane.b32.xlu1 %v1454_v33, 256  ;;  %1302 = vbcast.lane.b32.xlu0 %v1300_v43, 256 }
 0x2be   :  { %v4761_v48 = vpop.permute.xlu1 %1239  ;;  %v4763_v49 = vpop.permute.xlu0 %1246 }
 0x2c0   :  { %1470 = vbcast.lane.b32.xlu1 %v1468_v44, 256  ;;  %2470 = vbcast.lane.b32.xlu0 %v1251_v5, 256  ;;  %v1419_v5 = vrot.slane %v4723_v14, %v4589_v45 }
 0x2c2   :  { %v4765_v51 = vpop.permute.xlu1 %2421  ;;  %v4767_v52 = vpop.permute.xlu0 %2414 }
 0x2c3   :  { %5820 = vst [vmem:[#allocation17_spill] sm:$0xff] %v4765_v51  ;;  %5821 = vst [vmem:[#allocation18_spill] sm:$0xff] %v4767_v52  ;;  %v744_v51 = vcombine.high %v4675_v47, %v4675_v47 }
 0x2c4   :  { %2645 = vbcast.lane.b32.xlu1 %v1426_v17, 256  ;;  %2477 = vbcast.lane.b32.xlu0 %v1258_v21, 256 }
 0x2c6   :  { %v4769_v53 = vpop.permute.xlu1 %2428  ;;  %v4771_v54 = vpop.permute.xlu0 %2442 }
 0x2c7   :  { %5822 = vst [vmem:[#allocation19_spill] sm:$0xff] %v4769_v53  ;;  %5823 = vst [vmem:[#allocation20_spill] sm:$0xff] %v4771_v54 }
 0x2c8   :  { %2652 = vbcast.lane.b32.xlu1 %v1433_v20, 256  ;;  %2484 = vbcast.lane.b32.xlu0 %v1265_v7, 256 }
 0x2ca   :  { %v4773_v56 = vpop.permute.xlu1 %2435  ;;  %v4775_v57 = vpop.permute.xlu0 %2449 }
 0x2cb   :  { %5824 = vst [vmem:[#allocation21_spill] sm:$0xff] %v4773_v56  ;;  %5825 = vst [vmem:[#allocation22_spill] sm:$0xff] %v4775_v57 }
 0x2cc   :  { %2680 = vbcast.lane.b32.xlu1 %v1461_v59, 256  ;;  %2491 = vbcast.lane.b32.xlu0 %v1272_v25, 256 }
 0x2ce   :  { %v4781_v62 = vpop.permute.xlu1 %1148  ;;  %v4783_v63 = vpop.permute.xlu0 %2456 }
 0x2cf   :  { %5826 = vst [vmem:[#allocation23_spill] sm:$0xff] %v4783_v63 }
 0x2d0   :  { %1365 = vbcast.lane.b32.xlu1 %v1363_v61, 256  ;;  %2519 = vbcast.lane.b32.xlu0 %v1300_v43, 256  ;;  %v1391_v43 = vrot.slane %v4725_v15, %v4656_v34 }
 0x2d2   :  { %v4787_v1 = vpop.permute.xlu1 %1155  ;;  %v4789_v4 = vpop.permute.xlu0 %2463 }
 0x2d3   :  { %5827 = vst [vmem:[#allocation24_spill] sm:$0xff] %v4789_v4 }
 0x2d4   :  { %1379 = vbcast.lane.b32.xlu1 %v1377_v0, 256  ;;  %1421 = vbcast.lane.b32.xlu0 %v1419_v5, 256 }
 0x2d6   :  { %v4797_v7 = vpop.permute.xlu1 %1162  ;;  %v4799_v10 = vpop.permute.xlu0 %1141 }
 0x2d8   :  { %1414 = vbcast.lane.b32.xlu1 %v4795_v6, 256  ;;  %1463 = vbcast.lane.b32.xlu0 %v1461_v59, 256 }
 0x2da   :  { %v4802_v11 = vpop.permute.xlu1 %1169  ;;  %v4804_v12 = vpop.permute.xlu0 %1176 }
 0x2dc   :  { %2582 = vbcast.lane.b32.xlu1 %v1363_v61, 256  ;;  %2638 = vbcast.lane.b32.xlu0 %v1419_v5, 256  ;;  %v1398_v61 = vrot.slane %v4725_v15, %v4659_v35  ;;  %v1405_v5 = vrot.slane %v4725_v15, %v4666_v41 }
 0x2de   :  { %v4806_v17 = vpop.permute.xlu1 %1183  ;;  %v4808_v20 = vpop.permute.xlu0 %1190 }
 0x2e0   :  { %2596 = vbcast.lane.b32.xlu1 %v1377_v0, 256  ;;  %2659 = vbcast.lane.b32.xlu0 %v1440_v22, 256 }
 0x2e2   :  { %v4810_v21 = vpop.permute.xlu1 %2358  ;;  %v4812_v25 = vpop.permute.xlu0 %2365 }
 0x2e3   :  { %5828 = vst [vmem:[#allocation25_spill] sm:$0xff] %v4810_v21  ;;  %5829 = vst [vmem:[#allocation26_spill] sm:$0xff] %v4812_v25  ;;  %v4887_v21 = vrot.slane %v4731_v19, %v4637_v26 }
 0x2e4   :  { %2610 = vbcast.lane.b32.xlu1 %v1391_v43, 256  ;;  %2666 = vbcast.lane.b32.xlu0 %v1447_v28, 256  ;;  %v1531_v28 = vrot.slane %v4729_v18, %v4589_v45 }
 0x2e6   :  { %v4816_v59 = vpop.permute.xlu1 %2372  ;;  %v4818_v37 = vpop.permute.xlu0 %2379 }
 0x2e7   :  { %5830 = vst [vmem:[#allocation27_spill] sm:$0xff] %v4816_v59  ;;  %5831 = vst [vmem:[#allocation28_spill] sm:$0xff] %v4818_v37  ;;  %v1573_v59 = vrot.slane %v4729_v18, %v4666_v41  ;;  %v1580_v37 = vrot.slane %v4729_v18, %v4669_v42 }
 0x2e8   :  { %2617 = vbcast.lane.b32.xlu1 %v1398_v61, 256  ;;  %2673 = vbcast.lane.b32.xlu0 %v1454_v33, 256  ;;  %v1552_v33 = vrot.slane %v4729_v18, %v4649_v31 }
 0x2ea   :  { %v4822_v0 = vpop.permute.xlu1 %2407  ;;  %v4824_v22 = vpop.permute.xlu0 %2386 }
 0x2eb   :  { %5832 = vst [vmem:[#allocation29_spill] sm:$0xff] %v4822_v0  ;;  %5833 = vst [vmem:[#allocation30_spill] sm:$0xff] %v4824_v22 }
 0x2ec   :  { %2624 = vbcast.lane.b32.xlu1 %v1405_v5, 256  ;;  %2687 = vbcast.lane.b32.xlu0 %v1468_v44, 256  ;;  %v1384_v44 = vrot.slane %v4725_v15, %v4649_v31 }
 0x2ee   :  { %v4830_v8 = vpop.permute.xlu1 %1309  ;;  %v4832_v13 = vpop.permute.xlu0 %2393 }
 0x2ef   :  { %5834 = vst [vmem:[#allocation31_spill] sm:$0xff] %v4832_v13 }
 0x2f0   :  { %1533 = vbcast.lane.b32.xlu1 %v1531_v28, 256  ;;  %1372 = vbcast.lane.b32.xlu0 %v1370_v16, 256 }
 0x2f2   :  { %v4838_v2 = vpop.permute.xlu1 %1323  ;;  %v4840_v9 = vpop.permute.xlu0 %2400 }
 0x2f3   :  { %5835 = vst [vmem:[#allocation32_spill] sm:$0xff] %v4840_v9 }
 0x2f4   :  { %1554 = vbcast.lane.b32.xlu1 %v1552_v33, 256  ;;  %1386 = vbcast.lane.b32.xlu0 %v1384_v44, 256 }
 0x2f6   :  { %v4846_v55 = vpop.permute.xlu1 %1337  ;;  %v4848_v60 = vpop.permute.xlu0 %1316 }
 0x2f8   :  { %1561 = vbcast.lane.b32.xlu1 %v1559_v50, 256  ;;  %1393 = vbcast.lane.b32.xlu0 %v1391_v43, 256  ;;  %v1538_v43 = vrot.slane %v4729_v18, %v4637_v26  ;;  %v1475_v26 = vrot.slane %v4731_v19, %v4589_v45 }
 0x2fa   :  { %v4852_v39 = vpop.permute.xlu1 %1351  ;;  %v4854_v0 = vpop.permute.xlu0 %1330 }
 0x2fc   :  { %1568 = vbcast.lane.b32.xlu1 %v1566_v46, 256  ;;  %1400 = vbcast.lane.b32.xlu0 %v1398_v61, 256  ;;  %v1545_v61 = vrot.slane %v4729_v18, %v4646_v30 }
 0x2fe   :  { %v4858_v9 = vpop.permute.xlu1 %2568  ;;  %v4860_v25 = vpop.permute.xlu0 %1344 }
 0x2ff   :  { %5836 = vst [vmem:[#allocation33_spill] sm:$0xff] %v4858_v9 }
 0x300   :  { %1575 = vbcast.lane.b32.xlu1 %v1573_v59, 256  ;;  %1407 = vbcast.lane.b32.xlu0 %v1405_v5, 256 }
 0x302   :  { %v4864_v13 = vpop.permute.xlu1 %1253  ;;  %v4866_v4 = vpop.permute.xlu0 %1358 }
 0x304   :  { %2757 = vbcast.lane.b32.xlu1 %v1538_v43, 256  ;;  %2589 = vbcast.lane.b32.xlu0 %v1370_v16, 256 }
 0x306   :  { %v4870_v22 = vpop.permute.xlu1 %1267  ;;  %v4872_v57 = vpop.permute.xlu0 %2526 }
 0x307   :  { %5837 = vst [vmem:[#allocation34_spill] sm:$0xff] %v4872_v57 }
 0x308   :  { %2764 = vbcast.lane.b32.xlu1 %v1545_v61, 256  ;;  %2603 = vbcast.lane.b32.xlu0 %v1384_v44, 256 }
 0x30a   :  { %v4874_v9 = vpop.permute.xlu1 %1281  ;;  %v4876_v5 = vpop.permute.xlu0 %2533 }
 0x30b   :  { %5838 = vst [vmem:[#allocation35_spill] sm:$0xff] %v4876_v5  ;;  %v4896_v5 = vrot.slane %v4731_v19, %v4649_v31  ;;  %v1489_v31 = vrot.slane %v4731_v19, %v4646_v30 }
 0x30c   :  { %2799 = vbcast.lane.b32.xlu1 %v1580_v37, 256  ;;  %2631 = vbcast.lane.b32.xlu0 %v4795_v6, 256 }
 0x30e   :  { %v4881_v16 = vpop.permute.xlu1 %1295  ;;  %v4883_v54 = vpop.permute.xlu0 %2540 }
 0x30f   :  { %5839 = vst [vmem:[#allocation36_spill] sm:$0xff] %v4883_v54 }
 0x310   :  { %1484 = vbcast.lane.b32.xlu1 %v4887_v21, 256  ;;  %1540 = vbcast.lane.b32.xlu0 %v1538_v43, 256 }
 0x312   :  { %v4890_v44 = vpop.permute.xlu1 %2498  ;;  %v4892_v57 = vpop.permute.xlu0 %2547 }
 0x313   :  { %5840 = vst [vmem:[#allocation37_spill] sm:$0xff] %v4890_v44  ;;  %5841 = vst [vmem:[#allocation38_spill] sm:$0xff] %v4892_v57 }
 0x314   :  { %1498 = vbcast.lane.b32.xlu1 %v4896_v5, 256  ;;  %1547 = vbcast.lane.b32.xlu0 %v1545_v61, 256 }
 0x316   :  { %v4899_v6 = vpop.permute.xlu1 %2505  ;;  %v4901_v54 = vpop.permute.xlu0 %2554 }
 0x317   :  { %5842 = vst [vmem:[#allocation39_spill] sm:$0xff] %v4899_v6  ;;  %5843 = vst [vmem:[#allocation40_spill] sm:$0xff] %v4901_v54  ;;  %v1503_v6 = vrot.slane %v4731_v19, %v4656_v34 }
 0x318   :  { %2694 = vbcast.lane.b32.xlu1 %v1475_v26, 256  ;;  %1582 = vbcast.lane.b32.xlu0 %v1580_v37, 256 }
 0x31a   :  { %v4905_v43 = vpop.permute.xlu1 %2512  ;;  %v4907_v44 = vpop.permute.xlu0 %2561 }
 0x31b   :  { %5844 = vst [vmem:[#allocation41_spill] sm:$0xff] %v4905_v43  ;;  %5845 = vst [vmem:[#allocation42_spill] sm:$0xff] %v4907_v44  ;;  %v1510_v43 = vrot.slane %v4731_v19, %v4659_v35 }
 0x31c   :  { %2708 = vbcast.lane.b32.xlu1 %v1489_v31, 256  ;;  %2750 = vbcast.lane.b32.xlu0 %v1531_v28, 256 }
 0x31e   :  { %v4911_v57 = vpop.permute.xlu1 %1428  ;;  %v4913_v61 = vpop.permute.xlu0 %2575 }
 0x31f   :  { %5846 = vst [vmem:[#allocation43_spill] sm:$0xff] %v4913_v61  ;;  %v1517_v61 = vrot.slane %v4731_v19, %v4666_v41 }
 0x320   :  { %2722 = vbcast.lane.b32.xlu1 %v1503_v6, 256  ;;  %2771 = vbcast.lane.b32.xlu0 %v1552_v33, 256  ;;  %v1524_v33 = vrot.slane %v4731_v19, %v4669_v42  ;;  %v793_v42 = vcombine.high %v4639_v27, %v4639_v27 }
 0x322   :  { %v4917_v54 = vpop.permute.xlu1 %1435  ;;  %v4919_v37 = vpop.permute.xlu0 %1260 }
 0x324   :  { %2729 = vbcast.lane.b32.xlu1 %v1510_v43, 256  ;;  %2778 = vbcast.lane.b32.xlu0 %v1559_v50, 256 }
 0x326   :  { %v4923_v30 = vpop.permute.xlu1 %1442  ;;  %v4925_v28 = vpop.permute.xlu0 %1274 }
 0x328   :  { %2736 = vbcast.lane.b32.xlu1 %v1517_v61, 256  ;;  %2785 = vbcast.lane.b32.xlu0 %v1566_v46, 256 }
 0x32a   :  { %v4929_v34 = vpop.permute.xlu0 %1288  ;;  %v4933_v44 = vpop.permute.xlu1 %1449 }
 0x32b   :  { %5847 = vst [vmem:[#allocation44_spill] sm:$0xff] %v4933_v44 }
 0x32c   :  { %2743 = vbcast.lane.b32.xlu1 %v1524_v33, 256  ;;  %2792 = vbcast.lane.b32.xlu0 %v1573_v59, 256 }
 0x32e   :  { %v4935_v35 = vpop.permute.xlu0 %1302  ;;  %v4937_v50 = vpop.permute.xlu1 %1456 }
 0x32f   :  { %5848 = vst [vmem:[#allocation45_spill] sm:$0xff] %v4937_v50 }
 0x330   :  { %1477 = vbcast.lane.b32.xlu0 %v1475_v26, 256  ;;  %v4955_v26 = vrot.slane %v4639_v27, %v4585_v40 }
 0x332   :  { %v4939_v56 = vpop.permute.xlu0 %2470  ;;  %v4943_v46 = vpop.permute.xlu1 %1470 }
 0x333   :  { %5849 = vst [vmem:[#allocation46_spill] sm:$0xff] %v4939_v56  ;;  %5851 = vst [vmem:[#allocation48_spill] sm:$0xff] %v4943_v46 }
 0x334   :  { %1491 = vbcast.lane.b32.xlu0 %v1489_v31, 256  ;;  %v4958_v31 = vrot.slane %v793_v42, %v4585_v40 }
 0x336   :  { %v4941_v41 = vpop.permute.xlu0 %2477  ;;  %v4949_v59 = vpop.permute.xlu1 %2645 }
 0x337   :  { %5850 = vst [vmem:[#allocation47_spill] sm:$0xff] %v4941_v41  ;;  %5853 = vst [vmem:[#allocation50_spill] sm:$0xff] %v4949_v59  ;;  %v751_v59 = vrot.slane %v4675_v47, %v4585_v40 }
 0x338   :  { %1505 = vbcast.lane.b32.xlu0 %v1503_v6, 256  ;;  %v4964_v6 = vrot.slane %v4955_v26, %v4585_v40 }
 0x339   :  { %v4991_v52 = vrot.slane %v751_v59, %v4585_v40 }
 0x33a   :  { %v4945_v63 = vpop.permute.xlu0 %2484 }
 0x33b   :  { %5852 = vst [vmem:[#allocation49_spill] sm:$0xff] %v4945_v63 }
 0x33c   :  { %1512 = vbcast.lane.b32.xlu0 %v1510_v43, 256  ;;  %v4968_v43 = vrot.slane %v4958_v31, %v4585_v40 }
 0x33e   :  { %v4951_v53 = vpop.permute.xlu0 %2491  ;;  %v839_v42 = vcombine.high %v4968_v43, %v4968_v43 }
 0x33f   :  { %5854 = vst [vmem:[#allocation51_spill] sm:$0xff] %v4951_v53  ;;  %v4972_v53 = vpop.permute.xlu1 %2652 }
 0x340   :  { %1519 = vbcast.lane.b32.xlu0 %v1517_v61, 256  ;;  %5856 = vst [vmem:[#allocation53_spill] sm:$0xff] %v4972_v53  ;;  %v1619_v61 = vrot.slane %v4964_v6, %v4589_v45  ;;  %v1643_v53 = vrot.slane %v839_v42, %v4589_v45 }
 0x342   :  { %v4960_v41 = vpop.permute.xlu0 %2519  ;;  %vm1912_vm3 = vcmp.gt.f32.partialorder %v1619_v61, %v4739_v23  ;;  %vm1918_vm5 = vcmp.gt.f32.partialorder %v1643_v53, %v4761_v48 }
 0x343   :  { %5855 = vst [vmem:[#allocation52_spill] sm:$0xff] %v4960_v41  ;;  %v759_v41 = vcombine.high %v751_v59, %v751_v59  ;;  %v4982_v63 = vpop.permute.xlu1 %2680  ;;  %v758_v59 = vrot.slane %v744_v51, %v4585_v40 }
 0x344   :  { %1526 = vbcast.lane.b32.xlu0 %v1524_v33, 256  ;;  %5857 = vst [vmem:[#allocation54_spill] sm:$0xff] %v4982_v63 }
 0x345   :  { %v4988_v33 = vrot.slane %v759_v41, %v4585_v40  ;;  %v1587_v41 = vrot.slane %v4991_v52, %v4589_v45  ;;  %v774_v63 = vrot.slane %v758_v59, %v4585_v40 }
 0x346   :  { %v4974_v27 = vpop.permute.xlu0 %1421 }
 0x347   :  { %v791_v61 = vcombine.high %v4988_v33, %v4988_v33  ;;  %v5005_v42 = vpop.permute.xlu1 %1365  ;;  %vm1904_vm6 = vcmp.gt.f32.partialorder %v1587_v41, %v4799_v10  ;;  %v1603_v10 = vrot.slane %v774_v63, %v4589_v45 }
 0x348   :  { %2701 = vbcast.lane.b32.xlu0 %v4887_v21, 256  ;;  %v5858_v21 = vmov 0.0  }
 0x349   :  { %v4180_v46 = vsel %vm1912_vm3, 1.0, %v5858_v21  ;;  %v1599_v53 = vrot.slane %v791_v61, %v4589_v45  ;;  %v4172_v51 = vsel %vm1904_vm6, 1.0, %v5858_v21  ;;  %v898_v61 = vrot.slane %v4693_v58, %v4585_v40 }
 0x34a   :  { %v4984_v56 = vpop.permute.xlu0 %1463  ;;  %v2121_v47 = vsel %vm2096_vm4, %v4180_v46, 0.0  ;;  %vm1908_vm8 = vcmp.gt.f32.partialorder %v1603_v10, %v4802_v11 }
 0x34b   :  { %vm1907_vm7 = vcmp.gt.f32.partialorder %v1599_v53, %v4797_v7  ;;  %v5017_v46 = vpop.permute.xlu1 %1379  ;;  %v808_v7 = vcombine.high %v4955_v26, %v4955_v26  ;;  %v4176_v11 = vsel %vm1908_vm8, 1.0, %v5858_v21  ;;  %v5045_v10 = vrot.slane %v898_v61, %v4585_v40 }
 0x34c   :  { %2715 = vbcast.lane.b32.xlu0 %v4896_v5, 256  ;;  %v4186_v5 = vsel %vm1918_vm5, 1.0, %v5858_v21 }
 0x34d   :  { %v2139_v50 = vsel %vm2096_vm4, %v4186_v5, 0.0  ;;  %v891_v5 = vcombine.high %v4693_v58, %v4693_v58  ;;  %v830_v26 = vrot.slane %v808_v7, %v4585_v40 }
 0x34e   :  { %v4998_v23 = vpop.permute.xlu0 %2638 }
 0x34f   :  { %5859 = vst [vmem:[#allocation55_spill] sm:$0xff] %v4998_v23  ;;  %v760_v23 = vcombine.high %v758_v59, %v758_v59  ;;  %v2097_v59 = vsel %vm2096_vm4, %v4172_v51, 0.0  ;;  %v5038_v44 = vpop.permute.xlu1 %1414 }
 0x350   :  { %2122 = vadd.xlane.f32.xlu1 %v2121_v47 }
 0x351   :  { %v5023_v41 = vrot.slane %v760_v23, %v4585_v40 }
 0x352   :  { %v5010_v48 = vpop.permute.xlu0 %2659 }
 0x353   :  { %5860 = vst [vmem:[#allocation56_spill] sm:$0xff] %v5010_v48  ;;  %v1607_v23 = vrot.slane %v5023_v41, %v4589_v45  ;;  %v906_v48 = vcombine.high %v898_v61, %v898_v61  ;;  %v5059_v7 = vpop.permute.xlu1 %2582  ;;  %v1623_v61 = vrot.slane %v830_v26, %v4589_v45 }
 0x354   :  { %2140 = vadd.xlane.f32.xlu1 %v2139_v50  ;;  %v4175_v50 = vsel %vm1907_vm7, 1.0, %v5858_v21  ;;  %5864 = vst [vmem:[#allocation60_spill] sm:$0xff] %v5059_v7 }
 0x355   :  { %v2106_v51 = vsel %vm2096_vm4, %v4175_v50, 0.0  ;;  %vm1909_vm9 = vcmp.gt.f32.partialorder %v1607_v23, %v4804_v12  ;;  %v2109_v50 = vsel %vm2096_vm4, %v4176_v11, 0.0  ;;  %vm1913_vm11 = vcmp.gt.f32.partialorder %v1623_v61, %v4741_v24 }
 0x356   :  { %v5019_v47 = vpop.permute.xlu0 %2666  ;;  %v4177_v12 = vsel %vm1909_vm9, 1.0, %v5858_v21  ;;  %v840_v11 = vcombine.high %v830_v26, %v830_v26 }
 0x357   :  { %5861 = vst [vmem:[#allocation57_spill] sm:$0xff] %v5019_v47  ;;  %v790_v47 = vcombine.high %v774_v63, %v774_v63  ;;  %v5051_v63 = vrot.slane %v891_v5, %v4585_v40  ;;  %v5088_v24 = vpop.permute.xlu1 %2596 }
 0x358   :  { %2098 = vadd.xlane.f32.xlu1 %v2097_v59  ;;  %5865 = vst [vmem:[#allocation61_spill] sm:$0xff] %v5088_v24 }
 0x359   :  { %v1611_v58 = vrot.slane %v790_v47, %v4589_v45  ;;  %v838_v47 = vcombine.high %v4964_v6, %v4964_v6  ;;  %v5070_v5 = vrot.slane %v5051_v63, %v4585_v40 }
 0x35a   :  { %v5034_v53 = vpop.permute.xlu0 %2673 }
 0x35b   :  { %5862 = vst [vmem:[#allocation58_spill] sm:$0xff] %v5034_v53  ;;  %v5054_v53 = vrot.slane %v906_v48, %v4585_v40  ;;  %vm1910_vm10 = vcmp.gt.f32.partialorder %v1611_v58, %v4806_v17  ;;  %v936_v48 = vcombine.high %v5045_v10, %v5045_v10  ;;  %v2112_v58 = vsel %vm2096_vm4, %v4177_v12, 0.0 }
 0x35c   :  { %2107 = vadd.xlane.f32.xlu1 %v2106_v51  ;;  %v4178_v17 = vsel %vm1910_vm10, 1.0, %v5858_v21  ;;  %v1627_v6 = vrot.slane %v838_v47, %v4589_v45  ;;  %v937_v12 = vcombine.high %v5070_v5, %v5070_v5  ;;  %v1631_v47 = vrot.slane %v840_v11, %v4589_v45 }
 0x35d   :  { %v1687_v51 = vrot.slane %v5054_v53, %v4589_v45  ;;  %v1691_v7 = vrot.slane %v936_v48, %v4589_v45  ;;  %v2115_v61 = vsel %vm2096_vm4, %v4178_v17, 0.0  ;;  %v809_v48 = vcombine.high %v4958_v31, %v4958_v31 }
 0x35e   :  { %v5047_v59 = vpop.permute.xlu0 %2687  ;;  %vm1914_vm13 = vcmp.gt.f32.partialorder %v1627_v6, %v4747_v29  ;;  %v1707_v24 = vrot.slane %v937_v12, %v4589_v45  ;;  %v842_v29 = vcombine.high %v4707_v3, %v4707_v3  ;;  %vm1915_vm15 = vcmp.gt.f32.partialorder %v1631_v47, %v4749_v32  ;;  %v5111_v6 = vpop.permute.xlu1 %2610 }
 0x35f   :  { %5863 = vst [vmem:[#allocation59_spill] sm:$0xff] %v5047_v59  ;;  %vm1929_vm12 = vcmp.gt.f32.partialorder %v1687_v51, %v4848_v60  ;;  %v4181_v60 = vsel %vm1913_vm11, 1.0, %v5858_v21  ;;  %vm1930_vm14 = vcmp.gt.f32.partialorder %v1691_v7, %v4838_v2  ;;  %v4182_v7 = vsel %vm1914_vm13, 1.0, %v5858_v21 }
 0x360   :  { %2110 = vadd.xlane.f32.xlu1 %v2109_v50  ;;  %v5081_v50 = vrot.slane %v4707_v3, %v4585_v40  ;;  %v4197_v26 = vsel %vm1929_vm12, 1.0, %v5858_v21  ;;  %v2124_v17 = vsel %vm2096_vm4, %v4181_v60, 0.0  ;;  %v4198_v31 = vsel %vm1930_vm14, 1.0, %v5858_v21 }
 0x361   :  { %v2172_v2 = vsel %vm2096_vm4, %v4197_v26, 0.0  ;;  %vm1934_vm0 = vcmp.gt.f32.partialorder %v1707_v24, %v4852_v39  ;;  %v1635_v11 = vrot.slane %v4968_v43, %v4589_v45  ;;  %v837_v12 = vrot.slane %v809_v48, %v4585_v40 }
 0x362   :  { %v5064_v23 = vpop.permute.xlu0 %1372  ;;  %v865_v51 = vrot.slane %v5081_v50, %v4585_v40  ;;  %v2127_v26 = vsel %vm2096_vm4, %v4182_v7, 0.0  ;;  %v856_v32 = vrot.slane %v842_v29, %v4585_v40  ;;  %v2175_v47 = vsel %vm2096_vm4, %v4198_v31, 0.0 }
 0x363   :  { %v4183_v39 = vsel %vm1915_vm15, 1.0, %v5858_v21  ;;  %vm1916_vm1 = vcmp.gt.f32.partialorder %v1635_v11, %v4753_v36  ;;  %v4202_v43 = vsel %vm1934_vm0, 1.0, %v5858_v21  ;;  %v1639_v24 = vrot.slane %v837_v12, %v4589_v45 }
 0x364   :  { %2113 = vadd.xlane.f32.xlu1 %v2112_v58  ;;  %v841_v48 = vcombine.high %v837_v12, %v837_v12  ;;  %v2130_v29 = vsel %vm2096_vm4, %v4183_v39, 0.0  ;;  %v872_v7 = vrot.slane %v856_v32, %v4585_v40  ;;  %v858_v31 = vcombine.high %v856_v32, %v856_v32 }
 0x365   :  { %v2187_v36 = vsel %vm2096_vm4, %v4202_v43, 0.0  ;;  %v4184_v11 = vsel %vm1916_vm1, 1.0, %v5858_v21  ;;  %vm1917_vm5 = vcmp.gt.f32.partialorder %v1639_v24, %v4755_v38  ;;  %v1591_v24 = vrot.slane %v4988_v33, %v4589_v45 }
 0x366   :  { %v5083_v59 = vpop.permute.xlu0 %1386  ;;  %v1647_v12 = vrot.slane %v841_v48, %v4589_v45  ;;  %v2133_v32 = vsel %vm2096_vm4, %v4184_v11, 0.0  ;;  %v5147_v39 = vrot.slane %v858_v31, %v4585_v40  ;;  %v4185_v43 = vsel %vm1917_vm5, 1.0, %v5858_v21 }
 0x367   :  { %v789_v48 = vcombine.high %v4991_v52, %v4991_v52  ;;  %vm5170_vm9 = vcmp.gt.f32.partialorder %v1591_v24, %v4781_v62 }
 0x368   :  { %2116 = vadd.xlane.f32.xlu1 %v2115_v61  ;;  %v887_v61 = vcombine.high %v865_v51, %v865_v51  ;;  %vm1919_vm7 = vcmp.gt.f32.partialorder %v1647_v12, %v4763_v49  ;;  %v2136_v49 = vsel %vm2096_vm4, %v4185_v43, 0.0  ;;  %v4458_v12 = vmov 0  }
 0x369   :  { %v4187_v52 = vsel %vm1919_vm7, 1.0, %v5858_v21  ;;  %4396 = vset.pattern.permute.xlu0 %v4458_v12  ;;  %4397 = vset.pattern.permute.xlu1 %v4458_v12  ;;  %v1683_v12 = vrot.slane %v5045_v10, %v4589_v45 }
 0x36a   :  { %v5100_v58 = vpop.permute.xlu0 %1393 }
 0x36b   :  { %2125 = vadd.xlane.f32.xlu0 %v2124_v17  ;;  %v1651_v17 = vrot.slane %v865_v51, %v4589_v45  ;;  %vm1928_vm15 = vcmp.gt.f32.partialorder %v1683_v12, %v4830_v8  ;;  %v1699_v12 = vrot.slane %v5070_v5, %v4589_v45 }
 0x36c   :  { %2173 = vadd.xlane.f32.xlu1 %v2172_v2  ;;  %v1659_v2 = vrot.slane %v887_v61, %v4589_v45  ;;  %v996_v61 = vrot.slane %v4723_v14, %v4585_v40 }
 0x36d   :  { %vm1920_vm3 = vcmp.gt.f32.partialorder %v1651_v17, %v4864_v13  ;;  %vm1932_vm5 = vcmp.gt.f32.partialorder %v1699_v12, %v4846_v55 }
 0x36e   :  { %v5116_v60 = vpop.permute.xlu0 %1400  ;;  %v4188_v13 = vsel %vm1920_vm3, 1.0, %v5858_v21  ;;  %vm1922_vm6 = vcmp.gt.f32.partialorder %v1659_v2, %v4870_v22  ;;  %v1004_v31 = vcombine.high %v996_v61, %v996_v61  ;;  %v5183_v62 = vrot.slane %v996_v61, %v4585_v40 }
 0x36f   :  { %2128 = vadd.xlane.f32.xlu0 %v2127_v26  ;;  %v5132_v26 = vpop.permute.xlu1 %2617  ;;  %v2145_v38 = vsel %vm2096_vm4, %v4188_v13, 0.0  ;;  %v4190_v22 = vsel %vm1922_vm6, 1.0, %v5858_v21  ;;  %v1671_v13 = vrot.slane %v5147_v39, %v4589_v45 }
 0x370   :  { %2176 = vadd.xlane.f32.xlu1 %v2175_v47  ;;  %v1667_v47 = vrot.slane %v872_v7, %v4589_v45  ;;  %v2151_v33 = vsel %vm2096_vm4, %v4190_v22, 0.0  ;;  %v2142_v22 = vsel %vm2096_vm4, %v4187_v52, 0.0 }
 0x371   :  { %vm1925_vm10 = vcmp.gt.f32.partialorder %v1671_v13, %v4929_v34 }
 0x372   :  { %v5128_v51 = vpop.permute.xlu0 %1407  ;;  %vm1924_vm8 = vcmp.gt.f32.partialorder %v1667_v47, %v4874_v9  ;;  %v792_v47 = vcombine.high %v5023_v41, %v5023_v41  ;;  %v4193_v61 = vsel %vm1925_vm10, 1.0, %v5858_v21 }
 0x373   :  { %2131 = vadd.xlane.f32.xlu0 %v2130_v29  ;;  %v5158_v2 = vpop.permute.xlu1 %2624  ;;  %v888_v29 = vcombine.high %v872_v7, %v872_v7  ;;  %v4192_v7 = vsel %vm1924_vm8, 1.0, %v5858_v21  ;;  %v2160_v52 = vsel %vm2096_vm4, %v4193_v61, 0.0 }
 0x374   :  { %2188 = vadd.xlane.f32.xlu1 %v2187_v36  ;;  %v989_v36 = vcombine.high %v4723_v14, %v4723_v14  ;;  %v2157_v41 = vsel %vm2096_vm4, %v4192_v7, 0.0 }
 0x375   :  { %v1675_v24 = vrot.slane %v888_v29, %v4589_v45  ;;  %v1615_v29 = vrot.slane %v792_v47, %v4589_v45 }
 0x376   :  { %v5142_v17 = vpop.permute.xlu0 %2589 }
 0x377   :  { %2134 = vadd.xlane.f32.xlu0 %v2133_v32  ;;  %v1595_v32 = vrot.slane %v789_v48, %v4589_v45  ;;  %v5190_v48 = vrot.slane %v989_v36, %v4585_v40  ;;  %v5192_v34 = vpop.permute.xlu1 %1533  ;;  %vm1926_vm12 = vcmp.gt.f32.partialorder %v1675_v24, %v4881_v16  ;;  %v1034_v36 = vcombine.high %v5183_v62, %v5183_v62 }
 0x378   :  { %2146 = vadd.xlane.f32.xlu1 %v2145_v38  ;;  %v5180_v38 = vrot.slane %v1004_v31, %v4585_v40  ;;  %v4173_v31 = vsel %vm5170_vm9, 1.0, %v5858_v21  ;;  %vm1911_vm13 = vcmp.gt.f32.partialorder %v1615_v29, %v4808_v20  ;;  %v4194_v9 = vsel %vm1926_vm12, 1.0, %v5858_v21 }
 0x379   :  { %vm1906_vm11 = vcmp.gt.f32.partialorder %v1595_v32, %v4787_v1  ;;  %v2100_v13 = vsel %vm2096_vm4, %v4173_v31, 0.0  ;;  %v5211_v1 = vrot.slane %v5190_v48, %v4585_v40  ;;  %v938_v32 = vcombine.high %v5054_v53, %v5054_v53 }
 0x37a   :  { %v5162_v11 = vpop.permute.xlu0 %2603  ;;  %v4174_v16 = vsel %vm1906_vm11, 1.0, %v5858_v21  ;;  %v1755_v47 = vrot.slane %v1034_v36, %v4589_v45  ;;  %v5230_v20 = vrot.slane %v4725_v15, %v4585_v40  ;;  %v4179_v10 = vsel %vm1911_vm13, 1.0, %v5858_v21 }
 0x37b   :  { %2137 = vadd.xlane.f32.xlu0 %v2136_v49  ;;  %v5218_v7 = vpop.permute.xlu1 %1554  ;;  %v2103_v24 = vsel %vm2096_vm4, %v4174_v16, 0.0  ;;  %v907_v31 = vcombine.high %v5051_v63, %v5051_v63  ;;  %v1695_v61 = vrot.slane %v938_v32, %v4589_v45  ;;  %v940_v29 = vcombine.high %v4725_v15, %v4725_v15 }
 0x37c   :  { %2152 = vadd.xlane.f32.xlu1 %v2151_v33  ;;  %v1751_v33 = vrot.slane %v5180_v38, %v4589_v45  ;;  %vm1946_vm0 = vcmp.gt.f32.partialorder %v1755_v47, %v4917_v54  ;;  %v963_v8 = vrot.slane %v5230_v20, %v4585_v40  ;;  %v4196_v54 = vsel %vm1928_vm15, 1.0, %v5858_v21 }
 0x37d   :  { %vm1931_vm1 = vcmp.gt.f32.partialorder %v1695_v61, %v4854_v0  ;;  %v4214_v16 = vsel %vm1946_vm0, 1.0, %v5858_v21  ;;  %v954_v32 = vrot.slane %v940_v29, %v4585_v40 }
 0x37e   :  { %v5185_v43 = vpop.permute.xlu0 %2631  ;;  %vm1945_vm14 = vcmp.gt.f32.partialorder %v1751_v33, %v4911_v57  ;;  %v1035_v57 = vcombine.high %v5211_v1, %v5211_v1  ;;  %v2223_v0 = vsel %vm2096_vm4, %v4214_v16, 0.0 }
 0x37f   :  { %2143 = vadd.xlane.f32.xlu0 %v2142_v22  ;;  %v4213_v53 = vsel %vm1945_vm14, 1.0, %v5858_v21  ;;  %v956_v29 = vcombine.high %v954_v32, %v954_v32 }
 0x380   :  { %2158 = vadd.xlane.f32.xlu1 %v2157_v41  ;;  %v2163_v41 = vsel %vm2096_vm4, %v4194_v9, 0.0  ;;  %v1771_v33 = vrot.slane %v1035_v57, %v4589_v45  ;;  %v2220_v63 = vsel %vm2096_vm4, %v4213_v53, 0.0  ;;  %v935_v9 = vrot.slane %v907_v31, %v4585_v40 }
 0x381   :  { %v1715_v57 = vrot.slane %v963_v8, %v4589_v45  ;;  %v857_v53 = vcombine.high %v5081_v50, %v5081_v50 }
 0x382   :  { %v5204_v49 = vpop.permute.xlu0 %1540  ;;  %vm1950_vm3 = vcmp.gt.f32.partialorder %v1771_v33, %v4984_v56  ;;  %v1703_v5 = vrot.slane %v935_v9, %v4589_v45  ;;  %v939_v61 = vcombine.high %v935_v9, %v935_v9  ;;  %v5288_v9 = vrot.slane %v956_v29, %v4585_v40 }
 0x383   :  { %2101 = vadd.xlane.f32.xlu0 %v2100_v13  ;;  %v2118_v13 = vsel %vm2096_vm4, %v4179_v10, 0.0  ;;  %v4199_v10 = vsel %vm1931_vm1, 1.0, %v5858_v21  ;;  %v4218_v56 = vsel %vm1950_vm3, 1.0, %v5858_v21  ;;  %vm1936_vm6 = vcmp.gt.f32.partialorder %v1715_v57, %v5005_v42 }
 0x384   :  { %2161 = vadd.xlane.f32.xlu1 %v2160_v52  ;;  %v5250_v52 = vpop.permute.xlu1 %1561  ;;  %v2178_v55 = vsel %vm2096_vm4, %v4199_v10, 0.0  ;;  %vm1933_vm7 = vcmp.gt.f32.partialorder %v1703_v5, %v4860_v25  ;;  %v4204_v42 = vsel %vm1936_vm6, 1.0, %v5858_v21  ;;  %v879_v50 = vrot.slane %v857_v53, %v4585_v40 }
 0x385   :  { %v1711_v16 = vrot.slane %v939_v61, %v4589_v45  ;;  %v1094_v25 = vrot.slane %v4729_v18, %v4585_v40  ;;  %v1087_v57 = vcombine.high %v4729_v18, %v4729_v18  ;;  %v1735_v53 = vrot.slane %v5288_v9, %v4589_v45 }
 0x386   :  { %v5225_v22 = vpop.permute.xlu0 %1547  ;;  %v1655_v5 = vrot.slane %v879_v50, %v4589_v45 }
 0x387   :  { %2104 = vadd.xlane.f32.xlu0 %v2103_v24  ;;  %v2169_v24 = vsel %vm2096_vm4, %v4196_v54, 0.0  ;;  %v4200_v54 = vsel %vm1932_vm5, 1.0, %v5858_v21  ;;  %vm1935_vm9 = vcmp.gt.f32.partialorder %v1711_v16, %v4866_v4  ;;  %vm1941_vm12 = vcmp.gt.f32.partialorder %v1735_v53, %v5116_v60 }
 0x388   :  { %2164 = vadd.xlane.f32.xlu1 %v2163_v41  ;;  %v985_v41 = vcombine.high %v963_v8, %v963_v8  ;;  %v5273_v31 = vpop.permute.xlu1 %1568  ;;  %vm1921_vm11 = vcmp.gt.f32.partialorder %v1655_v5, %v4919_v37  ;;  %v5325_v16 = vrot.slane %v1094_v25, %v4585_v40 }
 0x38a   :  { %v5244_v36 = vpop.permute.xlu0 %1582  ;;  %v1723_v33 = vrot.slane %v985_v41, %v4589_v45 }
 0x38b   :  { %2119 = vadd.xlane.f32.xlu0 %v2118_v13  ;;  %v970_v13 = vrot.slane %v954_v32, %v4585_v40 }
 0x38c   :  { %2221 = vadd.xlane.f32.xlu1 %v2220_v63  ;;  %v2235_v63 = vsel %vm2096_vm4, %v4218_v56, 0.0  ;;  %vm1938_vm8 = vcmp.gt.f32.partialorder %v1723_v33, %v5017_v46  ;;  %v5298_v41 = vpop.permute.xlu1 %1575  ;;  %v2193_v46 = vsel %vm2096_vm4, %v4204_v42, 0.0  ;;  %v889_v56 = vcombine.high %v879_v50, %v879_v50 }
 0x38d   :  { %v1731_v12 = vrot.slane %v970_v13, %v4589_v45  ;;  %v4206_v10 = vsel %vm1938_vm8, 1.0, %v5858_v21  ;;  %v986_v61 = vcombine.high %v970_v13, %v970_v13  ;;  %v1102_v33 = vcombine.high %v1094_v25, %v1094_v25 }
 0x38e   :  { %v5261_v47 = vpop.permute.xlu0 %2750  ;;  %v2199_v4 = vsel %vm2096_vm4, %v4206_v10, 0.0  ;;  %v1663_v13 = vrot.slane %v889_v56, %v4589_v45  ;;  %v890_v50 = vcombine.high %v5147_v39, %v5147_v39  ;;  %v4189_v39 = vsel %vm1921_vm11, 1.0, %v5858_v21 }
 0x38f   :  { %2170 = vadd.xlane.f32.xlu0 %v2169_v24  ;;  %v2181_v24 = vsel %vm2096_vm4, %v4200_v54, 0.0  ;;  %vm1940_vm10 = vcmp.gt.f32.partialorder %v1731_v12, %v5100_v58  ;;  %v4203_v54 = vsel %vm1935_vm9, 1.0, %v5858_v21  ;;  %v1739_v12 = vrot.slane %v986_v61, %v4589_v45 }
 0x390   :  { %2224 = vadd.xlane.f32.xlu1 %v2223_v0  ;;  %v4201_v0 = vsel %vm1933_vm7, 1.0, %v5858_v21  ;;  %v4208_v58 = vsel %vm1940_vm10, 1.0, %v5858_v21  ;;  %v5320_v42 = vpop.permute.xlu1 %2757  ;;  %v2190_v37 = vsel %vm2096_vm4, %v4203_v54, 0.0  ;;  %vm1923_vm13 = vcmp.gt.f32.partialorder %v1663_v13, %v4925_v28 }
 0x391   :  { %v4209_v25 = vsel %vm1941_vm12, 1.0, %v5858_v21  ;;  %vm1942_vm14 = vcmp.gt.f32.partialorder %v1739_v12, %v5128_v51  ;;  %v1132_v10 = vcombine.high %v5325_v16, %v5325_v16  ;;  %v2148_v56 = vsel %vm2096_vm4, %v4189_v39, 0.0 }
 0x392   :  { %v5276_v8 = vpop.permute.xlu0 %2771  ;;  %v2208_v61 = vsel %vm2096_vm4, %v4209_v25, 0.0  ;;  %v4191_v51 = vsel %vm1923_vm13, 1.0, %v5858_v21  ;;  %v1747_v54 = vrot.slane %v5183_v62, %v4589_v45  ;;  %v1038_v39 = vcombine.high %v4731_v19, %v4731_v19 }
 0x393   :  { %2179 = vadd.xlane.f32.xlu0 %v2178_v55  ;;  %v2184_v55 = vsel %vm2096_vm4, %v4201_v0, 0.0  ;;  %v1679_v0 = vrot.slane %v890_v50, %v4589_v45  ;;  %v2154_v13 = vsel %vm2096_vm4, %v4191_v51, 0.0 }
 0x394   :  { %2236 = vadd.xlane.f32.xlu1 %v2235_v63  ;;  %v5312_v63 = vrot.slane %v1087_v57, %v4585_v40  ;;  %v5332_v57 = vrot.slane %v1102_v33, %v4585_v40  ;;  %v5348_v53 = vpop.permute.xlu1 %2764  ;;  %v4210_v33 = vsel %vm1942_vm14, 1.0, %v5858_v21  ;;  %vm1944_vm1 = vcmp.gt.f32.partialorder %v1747_v54, %v4974_v27 }
 0x395   :  { %vm1927_vm15 = vcmp.gt.f32.partialorder %v1679_v0, %v4935_v35  ;;  %v1819_v35 = vrot.slane %v1132_v10, %v4589_v45 }
 0x396   :  { %v5291_v32 = vpop.permute.xlu0 %2778  ;;  %v1103_v60 = vcombine.high %v5312_v63, %v5312_v63  ;;  %v1815_v28 = vrot.slane %v5332_v57, %v4589_v45  ;;  %v4195_v12 = vsel %vm1927_vm15, 1.0, %v5858_v21 }
 0x397   :  { %2182 = vadd.xlane.f32.xlu0 %v2181_v24  ;;  %vm1962_vm3 = vcmp.gt.f32.partialorder %v1819_v35, %v5225_v22  ;;  %v2166_v25 = vsel %vm2096_vm4, %v4195_v12, 0.0  ;;  %v4212_v22 = vsel %vm1944_vm1, 1.0, %v5858_v21 }
 0x398   :  { %2194 = vadd.xlane.f32.xlu1 %v2193_v46  ;;  %v2205_v46 = vsel %vm2096_vm4, %v4208_v58, 0.0  ;;  %v5346_v5 = vrot.slane %v1103_v60, %v4585_v40  ;;  %vm1961_vm0 = vcmp.gt.f32.partialorder %v1815_v28, %v5204_v49  ;;  %v5363_v58 = vrot.slane %v4731_v19, %v4585_v40  ;;  %v5373_v62 = vpop.permute.xlu1 %2799 }
 0x399   :  { %v2211_v49 = vsel %vm2096_vm4, %v4210_v33, 0.0  ;;  %v1005_v60 = vcombine.high %v5190_v48, %v5190_v48  ;;  %v4230_v48 = vsel %vm1962_vm3, 1.0, %v5858_v21  ;;  %v2217_v51 = vsel %vm2096_vm4, %v4212_v22, 0.0 }
 0x39a   :  { %v5308_v29 = vpop.permute.xlu0 %2785  ;;  %v1135_v50 = vcombine.high %v5346_v5, %v5346_v5  ;;  %v1061_v0 = vrot.slane %v5363_v58, %v4585_v40 }
 0x39b   :  { %2185 = vadd.xlane.f32.xlu0 %v2184_v55  ;;  %v1033_v28 = vrot.slane %v1005_v60, %v4585_v40 }
 0x39c   :  { %2200 = vadd.xlane.f32.xlu1 %v2199_v4  ;;  %v1036_v4 = vcombine.high %v5180_v38, %v5180_v38  ;;  %v4229_v38 = vsel %vm1961_vm0, 1.0, %v5858_v21  ;;  %v1839_v27 = vrot.slane %v1135_v50, %v4589_v45  ;;  %v5395_v33 = vpop.permute.xlu1 %1484  ;;  %v1083_v54 = vcombine.high %v1061_v0, %v1061_v0 }
 0x39d   :  { %v2268_v10 = vsel %vm2096_vm4, %v4229_v38, 0.0  ;;  %v955_v50 = vcombine.high %v5230_v20, %v5230_v20  ;;  %v1037_v12 = vcombine.high %v1033_v28, %v1033_v28 }
 0x39e   :  { %v5328_v24 = vpop.permute.xlu0 %2792  ;;  %vm1967_vm6 = vcmp.gt.f32.partialorder %v1839_v27, %v5244_v36  ;;  %v5868_v36 = vld [vmem:[#allocation44_spill] sm:$0xff]  ;;  %v1787_v60 = vrot.slane %v1083_v54, %v4589_v45 }
 0x39f   :  { %2191 = vadd.xlane.f32.xlu0 %v2190_v37  ;;  %v1759_v37 = vrot.slane %v1036_v4, %v4589_v45  ;;  %v1779_v4 = vrot.slane %v1061_v0, %v4589_v45  ;;  %v5869_v0 = vld [vmem:[#allocation45_spill] sm:$0xff]  ;;  %v977_v22 = vrot.slane %v955_v50, %v4585_v40  ;;  %v5870_v54 = vld [vmem:[#allocation48_spill] sm:$0xff] }
 0x3a0   :  { %2206 = vadd.xlane.f32.xlu1 %v2205_v46 }
 0x3a1   :  { %vm1947_vm5 = vcmp.gt.f32.partialorder %v1759_v37, %v4923_v30  ;;  %v2271_v30 = vsel %vm2096_vm4, %v4230_v48, 0.0 }
 0x3a2   :  { %v1478_v55 = vpop.permute.xlu0 %1477 }
 0x3a3   :  { %2149 = vadd.xlane.f32.xlu0 %v2148_v56  ;;  %v1763_v56 = vrot.slane %v5211_v1, %v4589_v45  ;;  %v4235_v1 = vsel %vm1967_vm6, 1.0, %v5858_v21  ;;  %vm1952_vm8 = vcmp.gt.f32.partialorder %v1779_v4, %v1478_v55  ;;  %v5412_v55 = vpop.permute.xlu1 %1498 }
 0x3a4   :  { %2209 = vadd.xlane.f32.xlu1 %v2208_v61  ;;  %v1052_v61 = vrot.slane %v1038_v39, %v4585_v40  ;;  %v4220_v20 = vsel %vm1952_vm8, 1.0, %v5858_v21 }
 0x3a5   :  { %vm1948_vm7 = vcmp.gt.f32.partialorder %v1763_v56, %v5868_v36 }
 0x3a6   :  { %v1492_v46 = vpop.permute.xlu0 %1491  ;;  %v1068_v38 = vrot.slane %v1052_v61, %v4585_v40  ;;  %v1054_v39 = vcombine.high %v1052_v61, %v1052_v61  ;;  %v4216_v27 = vsel %vm1948_vm7, 1.0, %v5858_v21 }
 0x3a7   :  { %2155 = vadd.xlane.f32.xlu0 %v2154_v13  ;;  %v4215_v13 = vsel %vm1947_vm5, 1.0, %v5858_v21  ;;  %vm1954_vm10 = vcmp.gt.f32.partialorder %v1787_v60, %v1492_v46  ;;  %v2229_v56 = vsel %vm2096_vm4, %v4216_v27, 0.0 }
 0x3a8   :  { %2212 = vadd.xlane.f32.xlu1 %v2211_v49  ;;  %v1767_v49 = vrot.slane %v1033_v28, %v4589_v45  ;;  %v2226_v37 = vsel %vm2096_vm4, %v4215_v13, 0.0  ;;  %v1795_v28 = vrot.slane %v1068_v38, %v4589_v45  ;;  %v1082_v61 = vrot.slane %v1054_v39, %v4585_v40 }
 0x3a9   :  { %v4222_v46 = vsel %vm1954_vm10, 1.0, %v5858_v21  ;;  %v987_v13 = vcombine.high %v977_v22, %v977_v22  ;;  %v988_v39 = vcombine.high %v5288_v9, %v5288_v9 }
 0x3aa   :  { %v1506_v35 = vpop.permute.xlu0 %1505  ;;  %vm1949_vm9 = vcmp.gt.f32.partialorder %v1767_v49, %v5869_v0  ;;  %v1799_v50 = vrot.slane %v1082_v61, %v4589_v45  ;;  %v1084_v49 = vcombine.high %v1068_v38, %v1068_v38  ;;  %v1086_v0 = vcombine.high %v1082_v61, %v1082_v61 }
 0x3ab   :  { %2167 = vadd.xlane.f32.xlu0 %v2166_v25  ;;  %v2286_v25 = vsel %vm2096_vm4, %v4235_v1, 0.0  ;;  %v4217_v4 = vsel %vm1949_vm9, 1.0, %v5858_v21  ;;  %vm1956_vm12 = vcmp.gt.f32.partialorder %v1795_v28, %v1506_v35  ;;  %v5425_v1 = vpop.permute.xlu1 %2694  ;;  %v1743_v9 = vrot.slane %v988_v39, %v4589_v45 }
 0x3ac   :  { %2269 = vadd.xlane.f32.xlu1 %v2268_v10  ;;  %v1775_v10 = vrot.slane %v1037_v12, %v4589_v45  ;;  %v2232_v36 = vsel %vm2096_vm4, %v4217_v4, 0.0  ;;  %v2247_v12 = vsel %vm2096_vm4, %v4222_v46, 0.0  ;;  %v4224_v35 = vsel %vm1956_vm12, 1.0, %v5858_v21 }
 0x3ad   :  { %v1803_v38 = vrot.slane %v1084_v49, %v4589_v45  ;;  %v1807_v28 = vrot.slane %v1086_v0, %v4589_v45  ;;  %vm1943_vm1 = vcmp.gt.f32.partialorder %v1743_v9, %v5038_v44  ;;  %v1811_v4 = vrot.slane %v5325_v16, %v4589_v45 }
 0x3ae   :  { %v1513_v48 = vpop.permute.xlu0 %1512  ;;  %vm1951_vm11 = vcmp.gt.f32.partialorder %v1775_v10, %v5870_v54  ;;  %v1134_v54 = vcombine.high %v5332_v57, %v5332_v57  ;;  %v1117_v16 = vrot.slane %v5312_v63, %v4585_v40  ;;  %v1831_v63 = vrot.slane %v5346_v5, %v4589_v45 }
 0x3af   :  { %2218 = vadd.xlane.f32.xlu0 %v2217_v51  ;;  %v2241_v51 = vsel %vm2096_vm4, %v4220_v20, 0.0  ;;  %vm1957_vm14 = vcmp.gt.f32.partialorder %v1799_v50, %v1513_v48  ;;  %v2253_v20 = vsel %vm2096_vm4, %v4224_v35, 0.0  ;;  %vm1960_vm5 = vcmp.gt.f32.partialorder %v1811_v4, %v5192_v34 }
 0x3b0   :  { %2272 = vadd.xlane.f32.xlu1 %v2271_v30  ;;  %v1719_v30 = vrot.slane %v977_v22, %v4589_v45  ;;  %v4225_v10 = vsel %vm1957_vm14, 1.0, %v5858_v21  ;;  %v5441_v22 = vpop.permute.xlu1 %2708  ;;  %v1823_v50 = vrot.slane %v1134_v54, %v4589_v45  ;;  %v1827_v34 = vrot.slane %v1117_v16, %v4589_v45 }
 0x3b1   :  { %v2256_v61 = vsel %vm2096_vm4, %v4225_v10, 0.0  ;;  %v1133_v39 = vcombine.high %v1117_v16, %v1117_v16  ;;  %vm1965_vm8 = vcmp.gt.f32.partialorder %v1831_v63, %v5273_v31 }
 0x3b2   :  { %vm1937_vm13 = vcmp.gt.f32.partialorder %v1719_v30, %v5064_v23  ;;  %v1520_v60 = vpop.permute.xlu0 %1519  ;;  %vm1963_vm6 = vcmp.gt.f32.partialorder %v1823_v50, %v5218_v7  ;;  %vm1964_vm7 = vcmp.gt.f32.partialorder %v1827_v34, %v5250_v52  ;;  %v4233_v5 = vsel %vm1965_vm8, 1.0, %v5858_v21  ;;  %v5871_v50 = vld [vmem:[#allocation17_spill] sm:$0xff]  ;;  %v5873_v34 = vld [vmem:[#allocation19_spill] sm:$0xff] }
 0x3b3   :  { %2227 = vadd.xlane.f32.xlu0 %v2226_v37  ;;  %v4219_v37 = vsel %vm1951_vm11, 1.0, %v5858_v21  ;;  %v4205_v23 = vsel %vm1937_vm13, 1.0, %v5858_v21  ;;  %vm1958_vm0 = vcmp.gt.f32.partialorder %v1803_v38, %v1520_v60  ;;  %v4231_v35 = vsel %vm1963_vm6, 1.0, %v5858_v21 }
 0x3b4   :  { %2287 = vadd.xlane.f32.xlu1 %v2286_v25  ;;  %v1727_v25 = vrot.slane %v987_v13, %v4589_v45  ;;  %v2238_v27 = vsel %vm2096_vm4, %v4219_v37, 0.0  ;;  %v5455_v30 = vpop.permute.xlu1 %2722  ;;  %v2274_v7 = vsel %vm2096_vm4, %v4231_v35, 0.0  ;;  %v4232_v38 = vsel %vm1964_vm7, 1.0, %v5858_v21  ;;  %v5874_v35 = vld [vmem:[#allocation23_spill] sm:$0xff] }
 0x3b5   :  { %v1835_v0 = vrot.slane %v1133_v39, %v4589_v45  ;;  %v2280_v9 = vsel %vm2096_vm4, %v4233_v5, 0.0 }
 0x3b6   :  { %vm1939_vm15 = vcmp.gt.f32.partialorder %v1727_v25, %v5083_v59  ;;  %v1527_v48 = vpop.permute.xlu0 %1526  ;;  %v4226_v59 = vsel %vm1958_vm0, 1.0, %v5858_v21  ;;  %v1053_v25 = vcombine.high %v5363_v58, %v5363_v58 }
 0x3b7   :  { %2230 = vadd.xlane.f32.xlu0 %v2229_v56  ;;  %v2196_v56 = vsel %vm2096_vm4, %v4205_v23, 0.0  ;;  %vm1959_vm3 = vcmp.gt.f32.partialorder %v1807_v28, %v1527_v48  ;;  %v2259_v13 = vsel %vm2096_vm4, %v4226_v59, 0.0  ;;  %vm1966_vm9 = vcmp.gt.f32.partialorder %v1835_v0, %v5298_v41  ;;  %v5876_v0 = vld [vmem:[#allocation25_spill] sm:$0xff] }
 0x3b8   :  { %2242 = vadd.xlane.f32.xlu1 %v2241_v51  ;;  %v4207_v51 = vsel %vm1939_vm15, 1.0, %v5858_v21  ;;  %v4227_v44 = vsel %vm1959_vm3, 1.0, %v5858_v21  ;;  %v5468_v37 = vpop.permute.xlu1 %2729  ;;  %v1075_v52 = vrot.slane %v1053_v25, %v4585_v40  ;;  %v4234_v31 = vsel %vm1966_vm9, 1.0, %v5858_v21 }
 0x3b9   :  { %v2202_v46 = vsel %vm2096_vm4, %v4207_v51, 0.0  ;;  %v2262_v49 = vsel %vm2096_vm4, %v4227_v44, 0.0 }
 0x3ba   :  { %v1783_v23 = vrot.slane %v1075_v52, %v4589_v45  ;;  %v1085_v10 = vcombine.high %v1075_v52, %v1075_v52 }
 0x3bb   :  { %2233 = vadd.xlane.f32.xlu0 %v2232_v36  ;;  %v4211_v36 = vsel %vm1943_vm1, 1.0, %v5858_v21 }
 0x3bc   :  { %2248 = vadd.xlane.f32.xlu1 %v2247_v12  ;;  %v2214_v57 = vsel %vm2096_vm4, %v4211_v36, 0.0  ;;  %v4228_v12 = vsel %vm1960_vm5, 1.0, %v5858_v21  ;;  %vm1953_vm10 = vcmp.gt.f32.partialorder %v1783_v23, %v5395_v33  ;;  %v1791_v48 = vrot.slane %v1085_v10, %v4589_v45  ;;  %v5501_v45 = vpop.permute.xlu0 %2701  ;;  %v5877_v23 = vld [vmem:[#allocation20_spill] sm:$0xff] }
 0x3bd   :  { %v2265_v60 = vsel %vm2096_vm4, %v4228_v12, 0.0  ;;  %v4221_v41 = vsel %vm1953_vm10, 1.0, %v5858_v21 }
 0x3be   :  { %vm1955_vm11 = vcmp.gt.f32.partialorder %v1791_v48, %v5412_v55 }
 0x3bf   :  { %2239 = vadd.xlane.f32.xlu0 %v2238_v27  ;;  %v5479_v27 = vpop.permute.xlu1 %2736  ;;  %v4223_v51 = vsel %vm1955_vm11, 1.0, %v5858_v21  ;;  %v5872_v21 = vld [vmem:[#allocation18_spill] sm:$0xff] }
 0x3c0   :  { %2254 = vadd.xlane.f32.xlu1 %v2253_v20  ;;  %v2277_v20 = vsel %vm2096_vm4, %v4232_v38, 0.0  ;;  %v2250_v4 = vsel %vm2096_vm4, %v4223_v51, 0.0 }
 0x3c3   :  { %2197 = vadd.xlane.f32.xlu0 %v2196_v56  ;;  %v5488_v58 = vpop.permute.xlu1 %2743  ;;  %v2283_v56 = vsel %vm2096_vm4, %v4234_v31, 0.0 }
 0x3c4   :  { %2257 = vadd.xlane.f32.xlu1 %v2256_v61  ;;  %v2244_v61 = vsel %vm2096_vm4, %v4221_v41, 0.0 }
 0x3c7   :  { %2203 = vadd.xlane.f32.xlu0 %v2202_v46 }
 0x3c8   :  { %2260 = vadd.xlane.f32.xlu1 %v2259_v13  ;;  %v5503_v13 = vpop.permute.xlu0 %2715 }
 0x3cb   :  { %2215 = vadd.xlane.f32.xlu0 %v2214_v57 }
 0x3cc   :  { %2263 = vadd.xlane.f32.xlu1 %v2262_v49 }
 0x3cf   :  { %2266 = vadd.xlane.f32.xlu0 %v2265_v60 }
 0x3d3   :  { %2275 = vadd.xlane.f32.xlu0 %v2274_v7  ;;  %v5875_v7 = vld [vmem:[#allocation21_spill] sm:$0xff] }
 0x3d7   :  { %2278 = vadd.xlane.f32.xlu0 %v2277_v20 }
 0x3db   :  { %2281 = vadd.xlane.f32.xlu0 %v2280_v9  ;;  %v5878_v9 = vld [vmem:[#allocation28_spill] sm:$0xff] }
 0x3dd   :  { %v2123_v40 = vpop.xlane.xlu1 %2122 }
 0x3de   :  { %vm2297_vm12 = vcmp.le.f32.partialorder %v2123_v40, 3.0 }
 0x3df   :  { %2284 = vadd.xlane.f32.xlu0 %v2283_v56  ;;  %v2873_v57 = vsel %vm2297_vm12, %v5872_v21, inf  ;;  %v5879_v56 = vld [vmem:[#allocation22_spill] sm:$0xff] }
 0x3e0   :  { %v5883_v21 = vld [vmem:[#allocation26_spill] sm:$0xff] }
 0x3e1   :  { %v2141_v28 = vpop.xlane.xlu1 %2140 }
 0x3e2   :  { %vm2303_vm14 = vcmp.le.f32.partialorder %v2141_v28, 3.0  ;;  %v5880_v28 = vld [vmem:[#allocation30_spill] sm:$0xff] }
 0x3e3   :  { %2245 = vadd.xlane.f32.xlu0 %v2244_v61  ;;  %v2879_v63 = vsel %vm2303_vm14, %v5874_v35, inf  ;;  %v5885_v35 = vld [vmem:[#allocation27_spill] sm:$0xff] }
 0x3e5   :  { %v2099_v59 = vpop.xlane.xlu1 %2098 }
 0x3e6   :  { %vm2289_vm0 = vcmp.le.f32.partialorder %v2099_v59, 3.0 }
 0x3e7   :  { %2251 = vadd.xlane.f32.xlu0 %v2250_v4  ;;  %v2865_v52 = vsel %vm2289_vm0, %v5876_v0, inf  ;;  %v5881_v4 = vld [vmem:[#allocation24_spill] sm:$0xff]  ;;  %v5887_v0 = vld [vmem:[#allocation29_spill] sm:$0xff] }
 0x3e9   :  { %v2108_v33 = vpop.xlane.xlu1 %2107 }
 0x3ea   :  { %vm2292_vm3 = vcmp.le.f32.partialorder %v2108_v33, 3.0 }
 0x3eb   :  { %v2868_v31 = vsel %vm2292_vm3, %v5878_v9, inf  ;;  %v5889_v9 = vld [vmem:[#allocation34_spill] sm:$0xff] }
 0x3ed   :  { %v2111_v54 = vpop.xlane.xlu1 %2110 }
 0x3ee   :  { %vm2293_vm6 = vcmp.le.f32.partialorder %v2111_v54, 3.0 }
 0x3ef   :  { %v2869_v61 = vsel %vm2293_vm6, %v5880_v28, inf  ;;  %v5891_v28 = vld [vmem:[#allocation38_spill] sm:$0xff] }
 0x3f1   :  { %v2114_v46 = vpop.xlane.xlu1 %2113 }
 0x3f2   :  { %vm2294_vm8 = vcmp.le.f32.partialorder %v2114_v46, 3.0 }
 0x3f5   :  { %v2117_v36 = vpop.xlane.xlu1 %2116 }
 0x3f6   :  { %vm2295_vm10 = vcmp.le.f32.partialorder %v2117_v36, 3.0 }
 0x3f8   :  { %v2126_v44 = vpop.xlane.xlu0 %2125 }
 0x3f9   :  { %vm2298_vm13 = vcmp.le.f32.partialorder %v2126_v44, 3.0  ;;  %v2174_v55 = vpop.xlane.xlu1 %2173  ;;  %v5882_v44 = vld [vmem:[#allocation31_spill] sm:$0xff] }
 0x3fa   :  { %v2874_v16 = vsel %vm2298_vm13, %v5871_v50, inf  ;;  %v2870_v50 = vsel %vm2294_vm8, %v5882_v44, inf  ;;  %vm2314_vm12 = vcmp.le.f32.partialorder %v2174_v55, 3.0  ;;  %v5893_v44 = vld [vmem:[#allocation40_spill] sm:$0xff] }
 0x3fb   :  { %3021 = vperm.xlu1 %4397, %v2874_v16  }
 0x3fc   :  { %v2129_v49 = vpop.xlane.xlu0 %2128 }
 0x3fd   :  { %vm2299_vm15 = vcmp.le.f32.partialorder %v2129_v49, 3.0  ;;  %v2177_v12 = vpop.xlane.xlu1 %2176  ;;  %3018 = vperm.xlu0 %4396, %v2873_v57   ;;  %v5884_v49 = vld [vmem:[#allocation32_spill] sm:$0xff] }
 0x3fe   :  { %v2875_v60 = vsel %vm2299_vm15, %v5873_v34, inf  ;;  %v2871_v34 = vsel %vm2295_vm10, %v5884_v49, inf  ;;  %vm2315_vm14 = vcmp.le.f32.partialorder %v2177_v12, 3.0  ;;  %v5895_v49 = vld [vmem:[#allocation42_spill] sm:$0xff] }
 0x3ff   :  { %3024 = vperm.xlu1 %4397, %v2875_v60  }
 0x400   :  { %v2132_v39 = vpop.xlane.xlu0 %2131 }
 0x401   :  { %vm2300_vm1 = vcmp.le.f32.partialorder %v2132_v39, 3.0  ;;  %v2189_v25 = vpop.xlane.xlu1 %2188  ;;  %3036 = vperm.xlu0 %4396, %v2879_v63   ;;  %v5886_v39 = vld [vmem:[#allocation35_spill] sm:$0xff] }
 0x402   :  { %v2876_v38 = vsel %vm2300_vm1, %v5875_v7, inf  ;;  %v2890_v7 = vsel %vm2314_vm12, %v5886_v39, inf  ;;  %vm2319_vm0 = vcmp.le.f32.partialorder %v2189_v25, 3.0  ;;  %v5897_v39 = vld [vmem:[#allocation43_spill] sm:$0xff] }
 0x403   :  { %3027 = vperm.xlu1 %4397, %v2876_v38  }
 0x404   :  { %v2135_v20 = vpop.xlane.xlu0 %2134 }
 0x405   :  { %vm2301_vm5 = vcmp.le.f32.partialorder %v2135_v20, 3.0  ;;  %v2147_v5 = vpop.xlane.xlu1 %2146  ;;  %2994 = vperm.xlu0 %4396, %v2865_v52   ;;  %v5888_v20 = vld [vmem:[#allocation36_spill] sm:$0xff] }
 0x406   :  { %v2877_v10 = vsel %vm2301_vm5, %v5877_v23, inf  ;;  %v2891_v23 = vsel %vm2315_vm14, %v5888_v20, inf  ;;  %vm2305_vm3 = vcmp.le.f32.partialorder %v2147_v5, 3.0 }
 0x407   :  { %3030 = vperm.xlu1 %4397, %v2877_v10  }
 0x408   :  { %v2138_v40 = vpop.xlane.xlu0 %2137 }
 0x409   :  { %vm2302_vm7 = vcmp.le.f32.partialorder %v2138_v40, 3.0  ;;  %v2153_v48 = vpop.xlane.xlu1 %2152  ;;  %3003 = vperm.xlu0 %4396, %v2868_v31   ;;  %v5890_v40 = vld [vmem:[#allocation33_spill] sm:$0xff] }
 0x40a   :  { %v2878_v41 = vsel %vm2302_vm7, %v5879_v56, inf  ;;  %v2895_v56 = vsel %vm2319_vm0, %v5890_v40, inf  ;;  %vm2307_vm6 = vcmp.le.f32.partialorder %v2153_v48, 3.0 }
 0x40b   :  { %3033 = vperm.xlu1 %4397, %v2878_v41  }
 0x40c   :  { %v2144_v51 = vpop.xlane.xlu0 %2143 }
 0x40d   :  { %vm2304_vm9 = vcmp.le.f32.partialorder %v2144_v51, 3.0  ;;  %v2159_v59 = vpop.xlane.xlu1 %2158  ;;  %3006 = vperm.xlu0 %4396, %v2869_v61   ;;  %v5892_v51 = vld [vmem:[#allocation46_spill] sm:$0xff] }
 0x40e   :  { %v2880_v33 = vsel %vm2304_vm9, %v5881_v4, inf  ;;  %v2881_v4 = vsel %vm2305_vm3, %v5892_v51, inf  ;;  %vm2309_vm8 = vcmp.le.f32.partialorder %v2159_v59, 3.0  ;;  %v5899_v59 = vld [vmem:[#allocation47_spill] sm:$0xff] }
 0x40f   :  { %3039 = vperm.xlu1 %4397, %v2880_v33  }
 0x410   :  { %v2102_v16 = vpop.xlane.xlu0 %2101 }
 0x411   :  { %vm2290_vm11 = vcmp.le.f32.partialorder %v2102_v16, 3.0  ;;  %v2162_v54 = vpop.xlane.xlu1 %2161  ;;  %3009 = vperm.xlu0 %4396, %v2870_v50   ;;  %v5894_v16 = vld [vmem:[#allocation49_spill] sm:$0xff] }
 0x412   :  { %v2866_v57 = vsel %vm2290_vm11, %v5883_v21, inf  ;;  %v2883_v21 = vsel %vm2307_vm6, %v5894_v16, inf  ;;  %vm2310_vm10 = vcmp.le.f32.partialorder %v2162_v54, 3.0  ;;  %v5901_v54 = vld [vmem:[#allocation51_spill] sm:$0xff] }
 0x413   :  { %2997 = vperm.xlu1 %4397, %v2866_v57  }
 0x414   :  { %v2105_v60 = vpop.xlane.xlu0 %2104 }
 0x415   :  { %vm2291_vm13 = vcmp.le.f32.partialorder %v2105_v60, 3.0  ;;  %v2165_v46 = vpop.xlane.xlu1 %2164  ;;  %3012 = vperm.xlu0 %4396, %v2871_v34   ;;  %v5896_v60 = vld [vmem:[#allocation37_spill] sm:$0xff] }
 0x416   :  { %v2867_v63 = vsel %vm2291_vm13, %v5885_v35, inf  ;;  %v2885_v35 = vsel %vm2309_vm8, %v5896_v60, inf  ;;  %vm2311_vm12 = vcmp.le.f32.partialorder %v2165_v46, 3.0  ;;  %v5903_v46 = vld [vmem:[#allocation52_spill] sm:$0xff] }
 0x417   :  { %3000 = vperm.xlu1 %4397, %v2867_v63   ;;  %v5908_v60 = vld [vmem:[#allocation60_spill] sm:$0xff] }
 0x418   :  { %v2120_v38 = vpop.xlane.xlu0 %2119 }
 0x419   :  { %vm2296_vm15 = vcmp.le.f32.partialorder %v2120_v38, 3.0  ;;  %v2222_v36 = vpop.xlane.xlu1 %2221  ;;  %3069 = vperm.xlu0 %4396, %v2890_v7   ;;  %v5898_v38 = vld [vmem:[#allocation39_spill] sm:$0xff] }
 0x41a   :  { %v2872_v52 = vsel %vm2296_vm15, %v5887_v0, inf  ;;  %v2886_v0 = vsel %vm2310_vm10, %v5898_v38, inf  ;;  %vm2330_vm14 = vcmp.le.f32.partialorder %v2222_v36, 3.0  ;;  %v5910_v38 = vld [vmem:[#allocation61_spill] sm:$0xff] }
 0x41b   :  { %3015 = vperm.xlu1 %4397, %v2872_v52  }
 0x41c   :  { %v2171_v10 = vpop.xlane.xlu0 %2170 }
 0x41d   :  { %vm2313_vm1 = vcmp.le.f32.partialorder %v2171_v10, 3.0  ;;  %v2225_v55 = vpop.xlane.xlu1 %2224  ;;  %3072 = vperm.xlu0 %4396, %v2891_v23   ;;  %v5900_v10 = vld [vmem:[#allocation41_spill] sm:$0xff] }
 0x41e   :  { %v2889_v31 = vsel %vm2313_vm1, %v5889_v9, inf  ;;  %v2887_v9 = vsel %vm2311_vm12, %v5900_v10, inf  ;;  %vm2331_vm0 = vcmp.le.f32.partialorder %v2225_v55, 3.0  ;;  %v5907_v55 = vld [vmem:[#allocation56_spill] sm:$0xff] }
 0x41f   :  { %3066 = vperm.xlu1 %4397, %v2889_v31  }
 0x420   :  { %v2180_v41 = vpop.xlane.xlu0 %2179 }
 0x421   :  { %vm2316_vm5 = vcmp.le.f32.partialorder %v2180_v41, 3.0  ;;  %v2237_v12 = vpop.xlane.xlu1 %2236  ;;  %3084 = vperm.xlu0 %4396, %v2895_v56   ;;  %v5902_v56 = vld [vmem:[#allocation50_spill] sm:$0xff] }
 0x422   :  { %v2892_v61 = vsel %vm2316_vm5, %v5891_v28, inf  ;;  %v2906_v41 = vsel %vm2330_vm14, %v5902_v56, inf  ;;  %vm2335_vm3 = vcmp.le.f32.partialorder %v2237_v12, 3.0  ;;  %v5909_v12 = vld [vmem:[#allocation57_spill] sm:$0xff] }
 0x423   :  { %3075 = vperm.xlu1 %4397, %v2892_v61  }
 0x424   :  { %v2183_v33 = vpop.xlane.xlu0 %2182 }
 0x425   :  { %vm2317_vm7 = vcmp.le.f32.partialorder %v2183_v33, 3.0  ;;  %v2195_v25 = vpop.xlane.xlu1 %2194  ;;  %3042 = vperm.xlu0 %4396, %v2881_v4   ;;  %v5904_v4 = vld [vmem:[#allocation53_spill] sm:$0xff] }
 0x426   :  { %v2893_v50 = vsel %vm2317_vm7, %v5893_v44, inf  ;;  %v2907_v33 = vsel %vm2331_vm0, %v5904_v4, inf  ;;  %vm2321_vm6 = vcmp.le.f32.partialorder %v2195_v25, 3.0 }
 0x427   :  { %3078 = vperm.xlu1 %4397, %v2893_v50   ;;  %v5905_v50 = vld [vmem:[#allocation55_spill] sm:$0xff] }
 0x428   :  { %v2186_v57 = vpop.xlane.xlu0 %2185 }
 0x429   :  { %vm2318_vm9 = vcmp.le.f32.partialorder %v2186_v57, 3.0  ;;  %v2201_v5 = vpop.xlane.xlu1 %2200  ;;  %3048 = vperm.xlu0 %4396, %v2883_v21   ;;  %v5906_v21 = vld [vmem:[#allocation54_spill] sm:$0xff] }
 0x42a   :  { %v2894_v34 = vsel %vm2318_vm9, %v5895_v49, inf  ;;  %v2911_v57 = vsel %vm2335_vm3, %v5906_v21, inf  ;;  %vm2323_vm8 = vcmp.le.f32.partialorder %v2201_v5, 3.0  ;;  %v5912_v5 = vld [vmem:[#allocation59_spill] sm:$0xff] }
 0x42b   :  { %3081 = vperm.xlu1 %4397, %v2894_v34  }
 0x42c   :  { %v2192_v63 = vpop.xlane.xlu0 %2191 }
 0x42d   :  { %vm2320_vm11 = vcmp.le.f32.partialorder %v2192_v63, 3.0  ;;  %v2207_v48 = vpop.xlane.xlu1 %2206  ;;  %3054 = vperm.xlu0 %4396, %v2885_v35   ;;  %v2897_v35 = vsel %vm2321_vm6, %v5908_v60, inf }
 0x42e   :  { %v2896_v7 = vsel %vm2320_vm11, %v5897_v39, inf  ;;  %vm2325_vm10 = vcmp.le.f32.partialorder %v2207_v48, 3.0 }
 0x42f   :  { %3087 = vperm.xlu1 %4397, %v2896_v7   ;;  %v2901_v10 = vsel %vm2325_vm10, %v5111_v6, inf }
 0x430   :  { %v2150_v52 = vpop.xlane.xlu0 %2149 }
 0x431   :  { %vm2306_vm13 = vcmp.le.f32.partialorder %v2150_v52, 3.0  ;;  %3057 = vperm.xlu0 %4396, %v2886_v0   ;;  %v2210_v23 = vpop.xlane.xlu1 %2209  ;;  %v2899_v0 = vsel %vm2323_vm8, %v5910_v38, inf }
 0x432   :  { %v2882_v20 = vsel %vm2306_vm13, %v5899_v59, inf  ;;  %v5911_v59 = vld [vmem:[#allocation58_spill] sm:$0xff]  ;;  %vm2326_vm12 = vcmp.le.f32.partialorder %v2210_v23, 3.0 }
 0x433   :  { %3045 = vperm.xlu1 %4397, %v2882_v20  }
 0x434   :  { %v2156_v31 = vpop.xlane.xlu0 %2155 }
 0x435   :  { %vm2308_vm15 = vcmp.le.f32.partialorder %v2156_v31, 3.0  ;;  %3060 = vperm.xlu0 %4396, %v2887_v9   ;;  %v2213_v28 = vpop.xlane.xlu1 %2212 }
 0x436   :  { %v2884_v40 = vsel %vm2308_vm15, %v5901_v54, inf  ;;  %v2902_v54 = vsel %vm2326_vm12, %v5132_v26, inf  ;;  %vm2327_vm14 = vcmp.le.f32.partialorder %v2213_v28, 3.0 }
 0x437   :  { %3051 = vperm.xlu1 %4397, %v2884_v40  }
 0x438   :  { %v2168_v61 = vpop.xlane.xlu0 %2167 }
 0x439   :  { %vm2312_vm1 = vcmp.le.f32.partialorder %v2168_v61, 3.0  ;;  %3117 = vperm.xlu0 %4396, %v2906_v41   ;;  %v2270_v36 = vpop.xlane.xlu1 %2269  ;;  %v2903_v41 = vsel %vm2327_vm14, %v5158_v2, inf }
 0x43a   :  { %v2888_v51 = vsel %vm2312_vm1, %v5903_v46, inf  ;;  %vm2346_vm0 = vcmp.le.f32.partialorder %v2270_v36, 3.0 }
 0x43b   :  { %3063 = vperm.xlu1 %4397, %v2888_v51   ;;  %v2922_v26 = vsel %vm2346_vm0, %v5320_v42, inf }
 0x43c   :  { %v2219_v44 = vpop.xlane.xlu0 %2218 }
 0x43d   :  { %vm2329_vm5 = vcmp.le.f32.partialorder %v2219_v44, 3.0  ;;  %3120 = vperm.xlu0 %4396, %v2907_v33   ;;  %v2273_v63 = vpop.xlane.xlu1 %2272 }
 0x43e   :  { %v2905_v16 = vsel %vm2329_vm5, %v5905_v50, inf  ;;  %vm2347_vm3 = vcmp.le.f32.partialorder %v2273_v63, 3.0 }
 0x43f   :  { %3114 = vperm.xlu1 %4397, %v2905_v16  }
 0x440   :  { %v2228_v49 = vpop.xlane.xlu0 %2227 }
 0x441   :  { %vm2332_vm7 = vcmp.le.f32.partialorder %v2228_v49, 3.0  ;;  %3132 = vperm.xlu0 %4396, %v2911_v57   ;;  %v5545_v25 = vpop.xlane.xlu1 %2287 }
 0x442   :  { %v2908_v34 = vsel %vm2332_vm7, %v5907_v55, inf }
 0x443   :  { %3123 = vperm.xlu1 %4397, %v2908_v34  }
 0x444   :  { %v2231_v39 = vpop.xlane.xlu0 %2230 }
 0x445   :  { %vm2333_vm9 = vcmp.le.f32.partialorder %v2231_v39, 3.0  ;;  %3090 = vperm.xlu0 %4396, %v2897_v35   ;;  %v2243_v40 = vpop.xlane.xlu1 %2242  ;;  %v5913_v35 = vlaneseq }
 0x446   :  { %v2909_v7 = vsel %vm2333_vm9, %v5909_v12, inf  ;;  %vm2337_vm6 = vcmp.le.f32.partialorder %v2243_v40, 3.0  ;;  %v5914_v12 = vld [vmem:[#allocation5_spill] sm:$0xff] }
 0x447   :  { %3126 = vperm.xlu1 %4397, %v2909_v7  }
 0x448   :  { %v2234_v52 = vpop.xlane.xlu0 %2233 }
 0x449   :  { %vm2334_vm11 = vcmp.le.f32.partialorder %v2234_v52, 3.0  ;;  %3096 = vperm.xlu0 %4396, %v2899_v0   ;;  %v2249_v23 = vpop.xlane.xlu1 %2248 }
 0x44a   :  { %v2910_v20 = vsel %vm2334_vm11, %v5911_v59, inf  ;;  %vm2339_vm8 = vcmp.le.f32.partialorder %v2249_v23, 3.0 }
 0x44b   :  { %3129 = vperm.xlu1 %4397, %v2910_v20  }
 0x44c   :  { %v2240_v9 = vpop.xlane.xlu0 %2239 }
 0x44d   :  { %vm2336_vm13 = vcmp.le.f32.partialorder %v2240_v9, 3.0  ;;  %3102 = vperm.xlu0 %4396, %v2901_v10   ;;  %v2255_v2 = vpop.xlane.xlu1 %2254 }
 0x44e   :  { %v2912_v31 = vsel %vm2336_vm13, %v5912_v5, inf  ;;  %vm2341_vm10 = vcmp.le.f32.partialorder %v2255_v2, 3.0 }
 0x44f   :  { %3135 = vperm.xlu1 %4397, %v2912_v31  }
 0x450   :  { %v2198_v48 = vpop.xlane.xlu0 %2197 }
 0x451   :  { %vm2322_vm15 = vcmp.le.f32.partialorder %v2198_v48, 3.0  ;;  %3105 = vperm.xlu0 %4396, %v2902_v54   ;;  %v2258_v33 = vpop.xlane.xlu1 %2257 }
 0x452   :  { %v2898_v56 = vsel %vm2322_vm15, %v5142_v17, inf  ;;  %v2923_v17 = vsel %vm2347_vm3, %v5348_v53, inf  ;;  %v2915_v53 = vsel %vm2339_vm8, %v5441_v22, inf  ;;  %vm2342_vm12 = vcmp.le.f32.partialorder %v2258_v33, 3.0 }
 0x453   :  { %3093 = vperm.xlu1 %4397, %v2898_v56   ;;  %vm3447_vm8 = vcmask 1043459  }
 0x454   :  { %v2204_v6 = vpop.xlane.xlu0 %2203 }
 0x455   :  { %vm2324_vm1 = vcmp.le.f32.partialorder %v2204_v6, 3.0  ;;  %3108 = vperm.xlu0 %4396, %v2903_v41  }
 0x456   :  { %v2900_v61 = vsel %vm2324_vm1, %v5162_v11, inf  ;;  %v2913_v11 = vsel %vm2337_vm6, %v5425_v1, inf  ;;  %v2261_v1 = vpop.xlane.xlu1 %2260  ;;  %vm2352_vm1 = vcmp.le.f32.partialorder %v5545_v25, 3.0  ;;  %vm3443_vm6 = vcmask 1041409  }
 0x457   :  { %3099 = vperm.xlu1 %4397, %v2900_v61   ;;  %vm2343_vm14 = vcmp.le.f32.partialorder %v2261_v1, 3.0 }
 0x458   :  { %v2216_v46 = vpop.xlane.xlu0 %2215  ;;  %v2919_v57 = vsel %vm2343_vm14, %v5479_v27, inf }
 0x459   :  { %vm2328_vm5 = vcmp.le.f32.partialorder %v2216_v46, 3.0  ;;  %3165 = vperm.xlu0 %4396, %v2922_v26  }
 0x45a   :  { %v2904_v28 = vsel %vm2328_vm5, %v5185_v43, inf  ;;  %v2264_v21 = vpop.xlane.xlu1 %2263 }
 0x45b   :  { %3111 = vperm.xlu1 %4397, %v2904_v28   ;;  %vm2344_vm15 = vcmp.le.f32.partialorder %v2264_v21, 3.0 }
 0x45c   :  { %v2267_v51 = vpop.xlane.xlu0 %2266  ;;  %v2920_v49 = vsel %vm2344_vm15, %v5488_v58, inf  ;;  %v3186_v58 = vand.u32 127, %v5913_v35 }
 0x45d   :  { %vm2345_vm7 = vcmp.le.f32.partialorder %v2267_v51, 3.0  ;;  %3168 = vperm.xlu0 %4396, %v2923_v17  }
 0x45e   :  { %v2921_v4 = vsel %vm2345_vm7, %v5261_v47, inf  ;;  %v2917_v47 = vsel %vm2341_vm10, %v5455_v30, inf  ;;  %v5574_v7 = vsub.s32 %v3186_v58, %v5914_v12  ;;  %vm3445_vm7 = vcmask 1042434  }
 0x45f   :  { %3162 = vperm.xlu1 %4397, %v2921_v4   ;;  %vm3451_vm10 = vcmask 1045509  }
 0x460   :  { %v2276_v42 = vpop.xlane.xlu0 %2275 }
 0x461   :  { %vm2348_vm9 = vcmp.le.f32.partialorder %v2276_v42, 3.0  ;;  %3138 = vperm.xlu0 %4396, %v2913_v11  }
 0x462   :  { %v2924_v43 = vsel %vm2348_vm9, %v5276_v8, inf  ;;  %v2918_v8 = vsel %vm2342_vm12, %v5468_v37, inf  ;;  %v2928_v37 = vsel %vm2352_vm1, %v5373_v62, inf  ;;  %vm3449_vm9 = vcmask 1044484  }
 0x463   :  { %3171 = vperm.xlu1 %4397, %v2924_v43   ;;  %vm3455_vm12 = vcmask 1047559  }
 0x464   :  { %v2279_v44 = vpop.xlane.xlu0 %2278 }
 0x465   :  { %vm2349_vm11 = vcmp.le.f32.partialorder %v2279_v44, 3.0  ;;  %3144 = vperm.xlu0 %4396, %v2915_v53  }
 0x466   :  { %v2925_v36 = vsel %vm2349_vm11, %v5291_v32, inf  ;;  %vm3453_vm11 = vcmask 1046534  }
 0x467   :  { %3174 = vperm.xlu1 %4397, %v2925_v36  }
 0x468   :  { %v2282_v50 = vpop.xlane.xlu0 %2281 }
 0x469   :  { %vm2350_vm13 = vcmp.le.f32.partialorder %v2282_v50, 3.0  ;;  %3150 = vperm.xlu0 %4396, %v2917_v47  }
 0x46a   :  { %v2926_v16 = vsel %vm2350_vm13, %v5308_v29, inf }
 0x46b   :  { %3177 = vperm.xlu1 %4397, %v2926_v16  }
 0x46c   :  { %v2285_v22 = vpop.xlane.xlu0 %2284 }
 0x46d   :  { %3153 = vperm.xlu0 %4396, %v2918_v8   ;;  %vm2351_vm5 = vcmp.le.f32.partialorder %v2285_v22, 3.0 }
 0x46e   :  { %v2927_v27 = vsel %vm2351_vm5, %v5328_v24, inf }
 0x470   :  { %v2246_v32 = vpop.xlane.xlu0 %2245 }
 0x471   :  { %vm2338_vm0 = vcmp.le.f32.partialorder %v2246_v32, 3.0  ;;  %3156 = vperm.xlu0 %4396, %v2919_v57  }
 0x472   :  { %v2914_v30 = vsel %vm2338_vm0, %v5501_v45, inf }
 0x473   :  { %3141 = vperm.xlu1 %4397, %v2914_v30  }
 0x474   :  { %v2252_v55 = vpop.xlane.xlu0 %2251 }
 0x475   :  { %vm2340_vm3 = vcmp.le.f32.partialorder %v2252_v55, 3.0  ;;  %3159 = vperm.xlu0 %4396, %v2920_v49  }
 0x476   :  { %v2916_v29 = vsel %vm2340_vm3, %v5503_v13, inf }
 0x477   :  { %3147 = vperm.xlu1 %4397, %v2916_v29  }
 0x479   :  { %3183 = vperm.xlu0 %4396, %v2928_v37  }
 0x47a   :  { %v3022_v34 = vpop.permute.xlu1 %3021 }
 0x47b   :  { %3180 = vperm.xlu1 %4397, %v2927_v27   ;;  %v3226_v62 = vrot.slane %v3022_v34, %v5574_v7 }
 0x47c   :  { %v3019_v45 = vpop.permute.xlu0 %3018 }
 0x47d   :  { %v3222_v13 = vrot.slane %v3019_v45, %v5574_v7 }
 0x47e   :  { %v3025_v60 = vpop.permute.xlu1 %3024 }
 0x47f   :  { %v3230_v24 = vrot.slane %v3025_v60, %v5574_v7  ;;  %v3457_v25 = vsel %vm3443_vm6, %v3226_v62, %v3222_v13 }
 0x480   :  { %v3037_v63 = vpop.permute.xlu0 %3036 }
 0x481   :  { %v3458_v31 = vsel %vm3445_vm7, %v3230_v24, %v3457_v25  ;;  %v3246_v23 = vrot.slane %v3037_v63, %v5574_v7 }
 0x482   :  { %v3028_v39 = vpop.permute.xlu1 %3027 }
 0x483   :  { %v3234_v59 = vrot.slane %v3028_v39, %v5574_v7 }
 0x484   :  { %v2995_v38 = vpop.permute.xlu0 %2994 }
 0x485   :  { %v3459_v54 = vsel %vm3447_vm8, %v3234_v59, %v3458_v31  ;;  %v3190_v2 = vrot.slane %v2995_v38, %v5574_v7 }
 0x486   :  { %v3031_v0 = vpop.permute.xlu1 %3030 }
 0x487   :  { %v3238_v10 = vrot.slane %v3031_v0, %v5574_v7 }
 0x488   :  { %v3004_v52 = vpop.permute.xlu0 %3003 }
 0x489   :  { %v3460_v48 = vsel %vm3449_vm9, %v3238_v10, %v3459_v54  ;;  %v3202_v42 = vrot.slane %v3004_v52, %v5574_v7 }
 0x48a   :  { %v3034_v20 = vpop.permute.xlu1 %3033 }
 0x48b   :  { %v3242_v9 = vrot.slane %v3034_v20, %v5574_v7 }
 0x48c   :  { %v3007_v5 = vpop.permute.xlu0 %3006 }
 0x48d   :  { %v3461_v56 = vsel %vm3451_vm10, %v3242_v9, %v3460_v48  ;;  %v3206_v53 = vrot.slane %v3007_v5, %v5574_v7 }
 0x48e   :  { %v3040_v40 = vpop.permute.xlu1 %3039  ;;  %v3462_v26 = vsel %vm3453_vm11, %v3246_v23, %v3461_v56 }
 0x48f   :  { %v3250_v41 = vrot.slane %v3040_v40, %v5574_v7 }
 0x490   :  { %v3010_v6 = vpop.permute.xlu0 %3009 }
 0x491   :  { %v3463_v17 = vsel %vm3455_vm12, %v3250_v41, %v3462_v26  ;;  %v3210_v36 = vrot.slane %v3010_v6, %v5574_v7 }
 0x492   :  { %v2998_v61 = vpop.permute.xlu1 %2997  ;;  %v3517_v11 = vsel %vm2096_vm4, %v3463_v17, inf }
 0x493   :  { %v3194_v46 = vrot.slane %v2998_v61, %v5574_v7 }
 0x494   :  { %v3013_v28 = vpop.permute.xlu0 %3012 }
 0x495   :  { %v3444_v33 = vsel %vm3443_vm6, %v3194_v46, %v3190_v2  ;;  %v3214_v50 = vrot.slane %v3013_v28, %v5574_v7 }
 0x496   :  { %v3001_v51 = vpop.permute.xlu1 %3000 }
 0x497   :  { %v3198_v4 = vrot.slane %v3001_v51, %v5574_v7 }
 0x498   :  { %3518 = vmin.xlane.f32.xlu0 %v3517_v11  ;;  %v3070_v43 = vpop.permute.xlu0 %3069 }
 0x499   :  { %v3446_v44 = vsel %vm3445_vm7, %v3198_v4, %v3444_v33  ;;  %v3290_v34 = vrot.slane %v3070_v43, %v5574_v7 }
 0x49a   :  { %v3448_v47 = vsel %vm3447_vm8, %v3202_v42, %v3446_v44  ;;  %v3016_v1 = vpop.permute.xlu1 %3015 }
 0x49b   :  { %v3218_v16 = vrot.slane %v3016_v1, %v5574_v7  ;;  %v3450_v8 = vsel %vm3449_vm9, %v3206_v53, %v3448_v47 }
 0x49c   :  { %v3073_v22 = vpop.permute.xlu0 %3072  ;;  %v3452_v21 = vsel %vm3451_vm10, %v3210_v36, %v3450_v8 }
 0x49d   :  { %v3454_v57 = vsel %vm3453_vm11, %v3214_v50, %v3452_v21  ;;  %v3294_v58 = vrot.slane %v3073_v22, %v5574_v7 }
 0x49e   :  { %v3067_v32 = vpop.permute.xlu1 %3066  ;;  %v3456_v30 = vsel %vm3455_vm12, %v3218_v16, %v3454_v57 }
 0x49f   :  { %v3514_v49 = vsel %vm2096_vm4, %v3456_v30, inf  ;;  %v3286_v37 = vrot.slane %v3067_v32, %v5574_v7 }
 0x4a0   :  { %3515 = vmin.xlane.f32.xlu1 %v3514_v49  ;;  %v3085_v55 = vpop.permute.xlu0 %3084 }
 0x4a1   :  { %v3471_v60 = vsel %vm3443_vm6, %v3290_v34, %v3286_v37  ;;  %v3310_v25 = vrot.slane %v3085_v55, %v5574_v7 }
 0x4a2   :  { %v3076_v29 = vpop.permute.xlu1 %3075  ;;  %v3472_v12 = vsel %vm3445_vm7, %v3294_v58, %v3471_v60 }
 0x4a3   :  { %v3298_v35 = vrot.slane %v3076_v29, %v5574_v7 }
 0x4a4   :  { %v3043_v27 = vpop.permute.xlu0 %3042 }
 0x4a5   :  { %v3473_v13 = vsel %vm3447_vm8, %v3298_v35, %v3472_v12  ;;  %v3254_v40 = vrot.slane %v3043_v27, %v5574_v7 }
 0x4a6   :  { %v3079_v45 = vpop.permute.xlu1 %3078 }
 0x4a7   :  { %v3302_v63 = vrot.slane %v3079_v45, %v5574_v7 }
 0x4a8   :  { %v3049_v39 = vpop.permute.xlu0 %3048 }
 0x4a9   :  { %v3474_v62 = vsel %vm3449_vm9, %v3302_v63, %v3473_v13  ;;  %v3262_v6 = vrot.slane %v3049_v39, %v5574_v7 }
 0x4aa   :  { %v3082_v38 = vpop.permute.xlu1 %3081 }
 0x4ab   :  { %v3306_v0 = vrot.slane %v3082_v38, %v5574_v7 }
 0x4ac   :  { %v3055_v52 = vpop.permute.xlu0 %3054 }
 0x4ad   :  { %v3475_v24 = vsel %vm3451_vm10, %v3306_v0, %v3474_v62  ;;  %v3270_v26 = vrot.slane %v3055_v52, %v5574_v7 }
 0x4ae   :  { %v3088_v59 = vpop.permute.xlu1 %3087  ;;  %v3476_v9 = vsel %vm3453_vm11, %v3310_v25, %v3475_v24 }
 0x4af   :  { %v3314_v20 = vrot.slane %v3088_v59, %v5574_v7 }
 0x4b0   :  { %v3058_v10 = vpop.permute.xlu0 %3057 }
 0x4b1   :  { %v3477_v5 = vsel %vm3455_vm12, %v3314_v20, %v3476_v9  ;;  %v3274_v17 = vrot.slane %v3058_v10, %v5574_v7 }
 0x4b2   :  { %v3046_v31 = vpop.permute.xlu1 %3045  ;;  %v3523_v54 = vsel %vm2096_vm4, %v3477_v5, inf }
 0x4b3   :  { %v3258_v48 = vrot.slane %v3046_v31, %v5574_v7  ;;  %3524 = vmin.xlane.f32.xlu1 %v3523_v54 }
 0x4b4   :  { %v3061_v56 = vpop.permute.xlu0 %3060 }
 0x4b5   :  { %v3464_v41 = vsel %vm3443_vm6, %v3258_v48, %v3254_v40  ;;  %v3278_v51 = vrot.slane %v3061_v56, %v5574_v7 }
 0x4b6   :  { %v3052_v23 = vpop.permute.xlu1 %3051  ;;  %v3465_v46 = vsel %vm3445_vm7, %v3262_v6, %v3464_v41 }
 0x4b7   :  { %v3266_v61 = vrot.slane %v3052_v23, %v5574_v7 }
 0x4b8   :  { %v3118_v28 = vpop.permute.xlu0 %3117 }
 0x4b9   :  { %v3466_v2 = vsel %vm3447_vm8, %v3266_v61, %v3465_v46  ;;  %v3354_v22 = vrot.slane %v3118_v28, %v5574_v7 }
 0x4ba   :  { %v3467_v4 = vsel %vm3449_vm9, %v3270_v26, %v3466_v2  ;;  %v3064_v11 = vpop.permute.xlu1 %3063 }
 0x4bb   :  { %v3282_v42 = vrot.slane %v3064_v11, %v5574_v7  ;;  %v3468_v33 = vsel %vm3451_vm10, %v3274_v17, %v3467_v4 }
 0x4bc   :  { %v3121_v43 = vpop.permute.xlu0 %3120  ;;  %v3469_v53 = vsel %vm3453_vm11, %v3278_v51, %v3468_v33 }
 0x4bd   :  { %v3470_v44 = vsel %vm3455_vm12, %v3282_v42, %v3469_v53  ;;  %v3358_v30 = vrot.slane %v3121_v43, %v5574_v7 }
 0x4be   :  { %v3115_v36 = vpop.permute.xlu1 %3114  ;;  %v3520_v47 = vsel %vm2096_vm4, %v3470_v44, inf }
 0x4bf   :  { %3521 = vmin.xlane.f32.xlu0 %v3520_v47  ;;  %v3350_v16 = vrot.slane %v3115_v36, %v5574_v7 }
 0x4c0   :  { %v3133_v1 = vpop.permute.xlu0 %3132 }
 0x4c1   :  { %v3485_v57 = vsel %vm3443_vm6, %v3354_v22, %v3350_v16  ;;  %v3374_v58 = vrot.slane %v3133_v1, %v5574_v7 }
 0x4c2   :  { %v3124_v50 = vpop.permute.xlu1 %3123  ;;  %v3486_v29 = vsel %vm3445_vm7, %v3358_v30, %v3485_v57 }
 0x4c3   :  { %v3362_v32 = vrot.slane %v3124_v50, %v5574_v7 }
 0x4c4   :  { %v3091_v8 = vpop.permute.xlu0 %3090 }
 0x4c5   :  { %v3487_v27 = vsel %vm3447_vm8, %v3362_v32, %v3486_v29  ;;  %v3318_v52 = vrot.slane %v3091_v8, %v5574_v7 }
 0x4c6   :  { %v3127_v21 = vpop.permute.xlu1 %3126 }
 0x4c7   :  { %v3366_v49 = vrot.slane %v3127_v21, %v5574_v7 }
 0x4c8   :  { %v3097_v55 = vpop.permute.xlu0 %3096 }
 0x4c9   :  { %v3488_v45 = vsel %vm3449_vm9, %v3366_v49, %v3487_v27  ;;  %v3326_v20 = vrot.slane %v3097_v55, %v5574_v7 }
 0x4ca   :  { %v3130_v37 = vpop.permute.xlu1 %3129 }
 0x4cb   :  { %v3370_v34 = vrot.slane %v3130_v37, %v5574_v7 }
 0x4cc   :  { %v3103_v60 = vpop.permute.xlu0 %3102 }
 0x4cd   :  { %v3489_v35 = vsel %vm3451_vm10, %v3370_v34, %v3488_v45  ;;  %v3334_v5 = vrot.slane %v3103_v60, %v5574_v7 }
 0x4ce   :  { %v3136_v63 = vpop.permute.xlu1 %3135  ;;  %v3490_v38 = vsel %vm3453_vm11, %v3374_v58, %v3489_v35 }
 0x4cf   :  { %v3378_v39 = vrot.slane %v3136_v63, %v5574_v7 }
 0x4d0   :  { %v3106_v12 = vpop.permute.xlu0 %3105 }
 0x4d1   :  { %v3491_v13 = vsel %vm3455_vm12, %v3378_v39, %v3490_v38  ;;  %v3338_v40 = vrot.slane %v3106_v12, %v5574_v7 }
 0x4d2   :  { %v3094_v0 = vpop.permute.xlu1 %3093  ;;  %v3529_v62 = vsel %vm2096_vm4, %v3491_v13, inf }
 0x4d3   :  { %v3322_v24 = vrot.slane %v3094_v0, %v5574_v7  ;;  %3530 = vmin.xlane.f32.xlu1 %v3529_v62 }
 0x4d4   :  { %v3109_v25 = vpop.permute.xlu0 %3108 }
 0x4d5   :  { %v3478_v59 = vsel %vm3443_vm6, %v3322_v24, %v3318_v52  ;;  %v3342_v56 = vrot.slane %v3109_v25, %v5574_v7 }
 0x4d6   :  { %v3100_v10 = vpop.permute.xlu1 %3099  ;;  %v3479_v31 = vsel %vm3445_vm7, %v3326_v20, %v3478_v59 }
 0x4d7   :  { %v3330_v9 = vrot.slane %v3100_v10, %v5574_v7 }
 0x4d8   :  { %v3166_v54 = vpop.permute.xlu0 %3165 }
 0x4d9   :  { %v3480_v48 = vsel %vm3447_vm8, %v3330_v9, %v3479_v31  ;;  %v3418_v16 = vrot.slane %v3166_v54, %v5574_v7 }
 0x4da   :  { %v3481_v41 = vsel %vm3449_vm9, %v3334_v5, %v3480_v48  ;;  %v3112_v6 = vpop.permute.xlu1 %3111 }
 0x4db   :  { %v3346_v23 = vrot.slane %v3112_v6, %v5574_v7  ;;  %v3482_v61 = vsel %vm3451_vm10, %v3338_v40, %v3481_v41  ;;  %v5915_v40 = vld [vmem:[#allocation14_spill] sm:$0xff]  ;;  %v5916_v41 = vld [vmem:[#allocation15_spill] sm:$0xff] }
 0x4dc   :  { %v3169_v26 = vpop.permute.xlu0 %3168  ;;  %v3483_v46 = vsel %vm3453_vm11, %v3342_v56, %v3482_v61 }
 0x4dd   :  { %v3484_v28 = vsel %vm3455_vm12, %v3346_v23, %v3483_v46  ;;  %v3422_v49 = vrot.slane %v3169_v26, %v5574_v7  ;;  %v5917_v26 = vld [vmem:[#allocation16_spill] sm:$0xff] }
 0x4de   :  { %v3163_v17 = vpop.permute.xlu1 %3162  ;;  %v3526_v2 = vsel %vm2096_vm4, %v3484_v28, inf }
 0x4df   :  { %3527 = vmin.xlane.f32.xlu0 %v3526_v2  ;;  %v3414_v36 = vrot.slane %v3163_v17, %v5574_v7 }
 0x4e0   :  { %v3139_v51 = vpop.permute.xlu0 %3138 }
 0x4e1   :  { %v3382_v1 = vrot.slane %v3139_v51, %v5574_v7  ;;  %v3499_v21 = vsel %vm3443_vm6, %v3418_v16, %v3414_v36 }
 0x4e2   :  { %v3172_v4 = vpop.permute.xlu1 %3171  ;;  %v3500_v45 = vsel %vm3445_vm7, %v3422_v49, %v3499_v21 }
 0x4e3   :  { %v3426_v57 = vrot.slane %v3172_v4, %v5574_v7 }
 0x4e4   :  { %v3145_v11 = vpop.permute.xlu0 %3144 }
 0x4e5   :  { %v3390_v32 = vrot.slane %v3145_v11, %v5574_v7  ;;  %v3501_v63 = vsel %vm3447_vm8, %v3426_v57, %v3500_v45 }
 0x4e6   :  { %v3175_v42 = vpop.permute.xlu1 %3174 }
 0x4e7   :  { %v3430_v55 = vrot.slane %v3175_v42, %v5574_v7 }
 0x4e8   :  { %v3151_v33 = vpop.permute.xlu0 %3150 }
 0x4e9   :  { %v3398_v37 = vrot.slane %v3151_v33, %v5574_v7  ;;  %v3502_v13 = vsel %vm3449_vm9, %v3430_v55, %v3501_v63 }
 0x4ea   :  { %v3178_v53 = vpop.permute.xlu1 %3177 }
 0x4eb   :  { %v3434_v27 = vrot.slane %v3178_v53, %v5574_v7 }
 0x4ec   :  { %v3154_v43 = vpop.permute.xlu0 %3153 }
 0x4ed   :  { %v3402_v60 = vrot.slane %v3154_v43, %v5574_v7  ;;  %v3503_v24 = vsel %vm3451_vm10, %v3434_v27, %v3502_v13 }
 0x4f0   :  { %v3157_v44 = vpop.permute.xlu0 %3156 }
 0x4f1   :  { %v3406_v39 = vrot.slane %v3157_v44, %v5574_v7 }
 0x4f2   :  { %v3142_v47 = vpop.permute.xlu1 %3141 }
 0x4f3   :  { %v3386_v50 = vrot.slane %v3142_v47, %v5574_v7 }
 0x4f4   :  { %v3160_v8 = vpop.permute.xlu0 %3159 }
 0x4f5   :  { %v3492_v22 = vsel %vm3443_vm6, %v3386_v50, %v3382_v1  ;;  %v3410_v0 = vrot.slane %v3160_v8, %v5574_v7 }
 0x4f6   :  { %v3148_v30 = vpop.permute.xlu1 %3147  ;;  %v3493_v34 = vsel %vm3445_vm7, %v3390_v32, %v3492_v22 }
 0x4f7   :  { %v3394_v29 = vrot.slane %v3148_v30, %v5574_v7 }
 0x4f8   :  { %v3184_v58 = vpop.permute.xlu0 %3183 }
 0x4f9   :  { %v3494_v35 = vsel %vm3447_vm8, %v3394_v29, %v3493_v34  ;;  %v3442_v25 = vrot.slane %v3184_v58, %v5574_v7 }
 0x4fa   :  { %v3495_v12 = vsel %vm3449_vm9, %v3398_v37, %v3494_v35  ;;  %v3181_v38 = vpop.permute.xlu1 %3180 }
 0x4fb   :  { %v3438_v62 = vrot.slane %v3181_v38, %v5574_v7  ;;  %v3496_v52 = vsel %vm3451_vm10, %v3402_v60, %v3495_v12 }
 0x4fc   :  { %v3497_v59 = vsel %vm3453_vm11, %v3406_v39, %v3496_v52 }
 0x4fd   :  { %v3498_v20 = vsel %vm3455_vm12, %v3410_v0, %v3497_v59  ;;  %v3504_v10 = vsel %vm3453_vm11, %v3438_v62, %v3503_v24 }
 0x4fe   :  { %v3532_v9 = vsel %vm2096_vm4, %v3498_v20, inf  ;;  %v3505_v5 = vsel %vm3455_vm12, %v3442_v25, %v3504_v10 }
 0x4ff   :  { %3533 = vmin.xlane.f32.xlu0 %v3532_v9  ;;  %v3535_v31 = vsel %vm2096_vm4, %v3505_v5, inf }
 0x500   :  { %3536 = vmin.xlane.f32.xlu1 %v3535_v31 }
 0x525   :  { %v3519_v54 = vpop.xlane.xlu0 %3518 }
 0x526   :  { %vm3539_vm13 = vcmp.ge.f32.partialorder %v5915_v40, %v3519_v54 }
 0x527   :  { %v3547_v48 = vsel %vm3539_vm13, %v5915_v40, 0.0 }
 0x528   :  { %v3557_v7 = vsel %vm2096_vm4, %v3547_v48, -inf }
 0x529   :  { %3558 = vmax.xlane.f32.xlu1 %v3557_v7 }
 0x52d   :  { %v3516_v56 = vpop.xlane.xlu1 %3515 }
 0x52e   :  { %vm3538_vm14 = vcmp.ge.f32.partialorder %v5916_v41, %v3516_v56 }
 0x52f   :  { %v3546_v6 = vsel %vm3538_vm14, %v5916_v41, 0.0 }
 0x530   :  { %v3554_v23 = vsel %vm2096_vm4, %v3546_v6, -inf }
 0x531   :  { %3555 = vmax.xlane.f32.xlu0 %v3554_v23 }
 0x540   :  { %v3525_v61 = vpop.xlane.xlu1 %3524 }
 0x541   :  { %vm3541_vm15 = vcmp.ge.f32.partialorder %v5917_v26, %v3525_v61 }
 0x542   :  { %v3549_v46 = vsel %vm3541_vm15, %v5917_v26, 0.0  ;;  %v3898_v26 = vld [vmem:[%s5788_s5] sm:$0xff]  ;;  %s4459_s5 = smov 64  }
 0x543   :  { %v3563_v28 = vsel %vm2096_vm4, %v3549_v46, -inf  ;;  %4345 = vmatprep.subr.mxu1 %v3898_v26 }
 0x544   :  { %3564 = vmax.xlane.f32.xlu1 %v3563_v28  ;;  %4346 = vmatpush3.msra.mxu1 %v3898_v26 }
 0x54c   :  { %v3522_v17 = vpop.xlane.xlu0 %3521 }
 0x54d   :  { %vm3540_vm0 = vcmp.ge.f32.partialorder %v4707_v3, %v3522_v17 }
 0x54e   :  { %v3548_v2 = vsel %vm3540_vm0, %v4707_v3, 0.0 }
 0x54f   :  { %v3560_v51 = vsel %vm2096_vm4, %v3548_v2, -inf }
 0x550   :  { %3561 = vmax.xlane.f32.xlu0 %v3560_v51 }
 0x560   :  { %v3531_v4 = vpop.xlane.xlu1 %3530 }
 0x561   :  { %vm3543_vm1 = vcmp.ge.f32.partialorder %v4723_v14, %v3531_v4 }
 0x562   :  { %v3551_v11 = vsel %vm3543_vm1, %v4723_v14, 0.0 }
 0x563   :  { %v3569_v42 = vsel %vm2096_vm4, %v3551_v11, -inf }
 0x564   :  { %3570 = vmax.xlane.f32.xlu1 %v3569_v42 }
 0x56c   :  { %v3528_v33 = vpop.xlane.xlu0 %3527 }
 0x56d   :  { %vm3542_vm3 = vcmp.ge.f32.partialorder %v4725_v15, %v3528_v33 }
 0x56e   :  { %v3550_v43 = vsel %vm3542_vm3, %v4725_v15, 0.0 }
 0x56f   :  { %v3566_v53 = vsel %vm2096_vm4, %v3550_v43, -inf }
 0x570   :  { %3567 = vmax.xlane.f32.xlu0 %v3566_v53 }
 0x58c   :  { %v3534_v3 = vpop.xlane.xlu0 %3533 }
 0x58d   :  { %vm3544_vm5 = vcmp.ge.f32.partialorder %v4731_v19, %v3534_v3  ;;  %v3537_v44 = vpop.xlane.xlu1 %3536 }
 0x58e   :  { %v3552_v36 = vsel %vm3544_vm5, %v4731_v19, 0.0  ;;  %vm3545_vm13 = vcmp.ge.f32.partialorder %v4729_v18, %v3537_v44 }
 0x58f   :  { %v3553_v14 = vsel %vm3545_vm13, %v4729_v18, 0.0  ;;  %v3572_v47 = vsel %vm2096_vm4, %v3552_v36, -inf }
 0x590   :  { %3573 = vmax.xlane.f32.xlu0 %v3572_v47  ;;  %v3575_v1 = vsel %vm2096_vm4, %v3553_v14, -inf }
 0x591   :  { %3576 = vmax.xlane.f32.xlu1 %v3575_v1 }
 0x5b6   :  { %v3559_v15 = vpop.xlane.xlu1 %3558 }
 0x5b7   :  { %v3579_v50 = vsub.f32 %v3547_v48, %v3559_v15 }
 0x5b9   :  { %v3588_v16 = vmul.f32 1.442695, %v3579_v50  ;;  %v5918_v50 = vld [vmem:[#allocation6_spill] sm:$0xff] }
 0x5bb   :  { %4398 = vpow2.f32 %v3588_v16 }
 0x5be   :  { %v3556_v8 = vpop.xlane.xlu0 %3555 }
 0x5bf   :  { %v3578_v22 = vsub.f32 %v3546_v6, %v3556_v8 }
 0x5c1   :  { %v3586_v21 = vmul.f32 1.442695, %v3578_v22  ;;  %v5919_v22 = vld [vmem:[#allocation9_spill] sm:$0xff] }
 0x5c3   :  { %4400 = vpow2.f32 %v3586_v21  ;;  %v5920_v21 = vld [vmem:[#allocation8_spill] sm:$0xff] }
 0x5c5   :  { %v4399_v57 = vpop.eup %4398 }
 0x5c6   :  { %v3605_v19 = vsel %vm2096_vm4, %v4399_v57, 0.0 }
 0x5c7   :  { %3606 = vadd.xlane.f32.xlu1 %v3605_v19  ;;  %v5922_v19 = vld [vmem:[#allocation11_spill] sm:$0xff] }
 0x5cd   :  { %v4401_v32 = vpop.eup %4400 }
 0x5ce   :  { %v3602_v18 = vsel %vm2096_vm4, %v4401_v32, 0.0 }
 0x5cf   :  { %3603 = vadd.xlane.f32.xlu0 %v3602_v18  ;;  %v5924_v18 = vld [vmem:[#allocation13_spill] sm:$0xff] }
 0x5d1   :  { %v3565_v30 = vpop.xlane.xlu1 %3564 }
 0x5d2   :  { %v3581_v49 = vsub.f32 %v3549_v46, %v3565_v30  ;;  %v5925_v30 = vld [vmem:[#allocation12_spill] sm:$0xff] }
 0x5d4   :  { %v3592_v55 = vmul.f32 1.442695, %v3581_v49 }
 0x5d6   :  { %4402 = vpow2.f32 %v3592_v55 }
 0x5dd   :  { %v3562_v29 = vpop.xlane.xlu0 %3561 }
 0x5de   :  { %v3580_v37 = vsub.f32 %v3548_v2, %v3562_v29 }
 0x5e0   :  { %v4403_v27 = vpop.eup %4402  ;;  %v3590_v34 = vmul.f32 1.442695, %v3580_v37 }
 0x5e1   :  { %v3611_v45 = vsel %vm2096_vm4, %v4403_v27, 0.0 }
 0x5e2   :  { %4404 = vpow2.f32 %v3590_v34  ;;  %3612 = vadd.xlane.f32.xlu1 %v3611_v45 }
 0x5ec   :  { %v4405_v60 = vpop.eup %4404 }
 0x5ed   :  { %v3608_v35 = vsel %vm2096_vm4, %v4405_v60, 0.0 }
 0x5ee   :  { %3609 = vadd.xlane.f32.xlu0 %v3608_v35 }
 0x5f1   :  { %v3571_v58 = vpop.xlane.xlu1 %3570 }
 0x5f2   :  { %v3583_v63 = vsub.f32 %v3551_v11, %v3571_v58 }
 0x5f4   :  { %v3596_v39 = vmul.f32 1.442695, %v3583_v63 }
 0x5f6   :  { %4406 = vpow2.f32 %v3596_v39 }
 0x5fd   :  { %v3568_v12 = vpop.xlane.xlu0 %3567 }
 0x5fe   :  { %v3582_v38 = vsub.f32 %v3550_v43, %v3568_v12 }
 0x600   :  { %v4407_v13 = vpop.eup %4406  ;;  %v3594_v0 = vmul.f32 1.442695, %v3582_v38 }
 0x601   :  { %v3617_v62 = vsel %vm2096_vm4, %v4407_v13, 0.0 }
 0x602   :  { %4408 = vpow2.f32 %v3594_v0  ;;  %3618 = vadd.xlane.f32.xlu1 %v3617_v62 }
 0x60c   :  { %v4409_v52 = vpop.eup %4408 }
 0x60d   :  { %v3614_v24 = vsel %vm2096_vm4, %v4409_v52, 0.0 }
 0x60e   :  { %3615 = vadd.xlane.f32.xlu0 %v3614_v24 }
 0x61d   :  { %v3574_v25 = vpop.xlane.xlu0 %3573 }
 0x61e   :  { %v3584_v59 = vsub.f32 %v3552_v36, %v3574_v25  ;;  %v3577_v20 = vpop.xlane.xlu1 %3576 }
 0x61f   :  { %v3585_v10 = vsub.f32 %v3553_v14, %v3577_v20 }
 0x620   :  { %v3598_v9 = vmul.f32 1.442695, %v3584_v59 }
 0x621   :  { %v3600_v5 = vmul.f32 1.442695, %v3585_v10 }
 0x622   :  { %4410 = vpow2.f32 %v3598_v9 }
 0x623   :  { %4412 = vpow2.f32 %v3600_v5 }
 0x62c   :  { %v4411_v31 = vpop.eup %4410 }
 0x62d   :  { %v4413_v54 = vpop.eup %4412  ;;  %v3620_v40 = vsel %vm2096_vm4, %v4411_v31, 0.0 }
 0x62e   :  { %3621 = vadd.xlane.f32.xlu0 %v3620_v40  ;;  %v3623_v48 = vsel %vm2096_vm4, %v4413_v54, 0.0 }
 0x62f   :  { %3624 = vadd.xlane.f32.xlu1 %v3623_v48 }
 0x654   :  { %v3607_v7 = vpop.xlane.xlu1 %3606 }
 0x655   :  { %4414 = vrcp.f32 %v3607_v7 }
 0x65c   :  { %v3604_v56 = vpop.xlane.xlu0 %3603 }
 0x65d   :  { %4416 = vrcp.f32 %v3604_v56 }
 0x65f   :  { %v4415_v41 = vpop.eup %4414 }
 0x660   :  { %v3635_v6 = vmul.f32 %v4415_v41, %v4399_v57  ;;  %v5921_v57 = vld [vmem:[#allocation7_spill] sm:$0xff] }
 0x662   :  { %3674 = vxpose.xlu1.b32.start.end [1/1] (short) (narrow) %v3635_v6, 8 }
 0x667   :  { %v4417_v23 = vpop.eup %4416 }
 0x668   :  { %v3634_v61 = vmul.f32 %v4417_v23, %v4401_v32  ;;  %v5923_v32 = vld [vmem:[#allocation10_spill] sm:$0xff] }
 0x66a   :  { %3642 = vxpose.xlu0.b32.start.end [1/1] (short) (narrow) %v3634_v61, 8 }
 0x66f   :  { %v3613_v46 = vpop.xlane.xlu1 %3612 }
 0x670   :  { %4418 = vrcp.f32 %v3613_v46 }
 0x67a   :  { %v4419_v28 = vpop.eup %4418 }
 0x67b   :  { %v3610_v17 = vpop.xlane.xlu0 %3609  ;;  %v3637_v2 = vmul.f32 %v4419_v28, %v4403_v27 }
 0x67c   :  { %4420 = vrcp.f32 %v3610_v17 }
 0x67d   :  { %3738 = vxpose.xlu0.b32.start.end [1/1] (short) (narrow) %v3637_v2, 8 }
 0x686   :  { %v4421_v51 = vpop.eup %4420 }
 0x687   :  { %v3636_v4 = vmul.f32 %v4421_v51, %v4405_v60 }
 0x689   :  { %3706 = vxpose.xlu0.b32.start.end [1/1] (short) (narrow) %v3636_v4, 8 }
 0x68f   :  { %v3619_v11 = vpop.xlane.xlu1 %3618 }
 0x690   :  { %4422 = vrcp.f32 %v3619_v11 }
 0x69a   :  { %v4423_v42 = vpop.eup %4422 }
 0x69b   :  { %v3616_v33 = vpop.xlane.xlu0 %3615  ;;  %v3639_v43 = vmul.f32 %v4423_v42, %v4407_v13 }
 0x69c   :  { %4424 = vrcp.f32 %v3616_v33 }
 0x69d   :  { %3802 = vxpose.xlu1.b32.start.end [1/1] (short) (narrow) %v3639_v43, 8 }
 0x6a6   :  { %v4425_v53 = vpop.eup %4424 }
 0x6a7   :  { %v3638_v3 = vmul.f32 %v4425_v53, %v4409_v52 }
 0x6a9   :  { %3770 = vxpose.xlu0.b32.start.end [1/1] (short) (narrow) %v3638_v3, 8 }
 0x6bb   :  { %v3622_v44 = vpop.xlane.xlu0 %3621 }
 0x6bc   :  { %4426 = vrcp.f32 %v3622_v44  ;;  %v3625_v36 = vpop.xlane.xlu1 %3624 }
 0x6bd   :  { %4428 = vrcp.f32 %v3625_v36 }
 0x6c6   :  { %v4427_v14 = vpop.eup %4426 }
 0x6c7   :  { %v4429_v47 = vpop.eup %4428  ;;  %v3640_v1 = vmul.f32 %v4427_v14, %v4411_v31 }
 0x6c8   :  { %v3641_v15 = vmul.f32 %v4429_v47, %v4413_v54 }
 0x6c9   :  { %3834 = vxpose.xlu0.b32.start.end [1/1] (short) (narrow) %v3640_v1, 8 }
 0x6ca   :  { %3866 = vxpose.xlu1.b32.start.end [1/1] (short) (narrow) %v3641_v15, 8 }
 0x6e2   :  { %v3690_v16 = vpop.trf.xlu1 }
 0x6e8   :  { %4038 = vrot.lane.b32.xlu1 %v5918_v50, %s4459_s5 }
 0x6ea   :  { %v3658_v8 = vpop.trf.xlu0 }
 0x6eb   :  { %4347 = vmatprep.mubr.msk.f32.mxu1 %vm2096_vm4, %v3658_v8 }
 0x6ec   :  { %4040 = vrot.lane.b32.xlu1 %v5919_v22, %s4459_s5  ;;  %4348 = vmatmul.mubr.msk.f32.vlgmr.msra.gmra.mrb[8].mxu1 %vm2096_vm4, %v3690_v16 }
 0x6f0   :  { %4042 = vrot.lane.b32.xlu1 %v5920_v21, %s4459_s5 }
 0x6f2   :  { %4036 = vrot.lane.b32.xlu0 %v5921_v57, %s4459_s5 }
 0x6f4   :  { %4044 = vrot.lane.b32.xlu1 %v5922_v19, %s4459_s5 }
 0x6f6   :  { %4046 = vrot.lane.b32.xlu0 %v5923_v32, %s4459_s5 }
 0x6f8   :  { %4048 = vrot.lane.b32.xlu1 %v5924_v18, %s4459_s5 }
 0x6fa   :  { %4050 = vrot.lane.b32.xlu0 %v5925_v30, %s4459_s5 }
 0x6fd   :  { %v3754_v49 = vpop.trf.xlu0 }
 0x709   :  { %v3722_v55 = vpop.trf.xlu0 }
 0x70a   :  { %4350 = vmatprep.mubr.msk.f32.mxu1 %vm2096_vm4, %v3722_v55 }
 0x70b   :  { %4351 = vmatmul.mubr.msk.f32.gmra.mrb[10].mxu1 %vm2096_vm4, %v3754_v49 }
 0x71d   :  { %v3818_v29 = vpop.trf.xlu1 }
 0x729   :  { %v3786_v37 = vpop.trf.xlu0 }
 0x72a   :  { %4353 = vmatprep.mubr.msk.f32.mxu1 %vm2096_vm4, %v3786_v37 }
 0x72b   :  { %4354 = vmatmul.mubr.msk.f32.gmra.mrb[12].mxu1 %vm2096_vm4, %v3818_v29 }
 0x749   :  { %v3850_v27 = vpop.trf.xlu0 }
 0x74a   :  { %v3882_v34 = vpop.trf.xlu1  ;;  %4356 = vmatprep.mubr.msk.f32.mxu1 %vm2096_vm4, %v3850_v27 }
 0x74b   :  { %4357 = vmatmul.mubr.msk.f32.gmra.mrb[14].mxu1 %vm2096_vm4, %v3882_v34 }
 0x75a   :  { %v4039_v45 = vpop.permute.xlu1 %4038 }
 0x75e   :  { %v4041_v40 = vpop.permute.xlu1 %4040 }
 0x762   :  { %v4043_v48 = vpop.permute.xlu1 %4042 }
 0x764   :  { %v4037_v35 = vpop.permute.xlu0 %4036 }
 0x766   :  { %v4045_v47 = vpop.permute.xlu1 %4044 }
 0x768   :  { %v4047_v36 = vpop.permute.xlu0 %4046 }
 0x7bf   :  { %v4349_v60 = vpop.f32.mrb[8].mxu1 }
 0x7c0   :  { %v4061_v58 = vmul.f32 %v4349_v60, %v4039_v45  ;;  %v3989_v63 = vpop.f32.mrb[9].mxu1  ;;  %v4051_v60 = vpop.permute.xlu0 %4050 }
 0x7c1   :  { %v4060_v39 = vmul.f32 %v4037_v35, %v3989_v63 }
 0x7c2   :  { %v4075_v12 = vsel %vm350_vm2, %v4061_v58, 0.0  ;;  %v4049_v58 = vpop.permute.xlu1 %4048 }
 0x7c3   :  { %v4076_v38 = vrot.slane %v4075_v12, 4  ;;  %v4068_v13 = vsel %vm350_vm2, %v4060_v39, 0.0 }
 0x7c4   :  { %v4069_v0 = vrot.slane %v4068_v13, 4 }
 0x7c5   :  { %v4077_v62 = vadd.f32 %v4076_v38, %v4075_v12 }
 0x7c6   :  { %v4070_v52 = vadd.f32 %v4069_v0, %v4068_v13 }
 0x7c7   :  { %v4078_v24 = vrot.slane %v4077_v62, 2 }
 0x7c8   :  { %v4071_v25 = vrot.slane %v4070_v52, 2 }
 0x7c9   :  { %v4079_v59 = vadd.f32 %v4078_v24, %v4077_v62 }
 0x7ca   :  { %v4072_v20 = vadd.f32 %v4071_v25, %v4070_v52 }
 0x7cb   :  { %v4080_v10 = vrot.slane %v4079_v59, 1 }
 0x7cc   :  { %v4073_v9 = vrot.slane %v4072_v20, 1 }
 0x7cd   :  { %v4081_v5 = vadd.f32 %v4080_v10, %v4079_v59 }
 0x7ce   :  { %v4074_v31 = vadd.f32 %v4073_v9, %v4072_v20 }
 0x7d0   :  { %v4132_v54 = vsel %vm3443_vm6, %v4081_v5, %v4074_v31 }
 0x7de   :  { %v4352_v7 = vpop.f32.mrb[10].mxu1 }
 0x7df   :  { %v4063_v56 = vmul.f32 %v4352_v7, %v4043_v48  ;;  %v3999_v41 = vpop.f32.mrb[11].mxu1 }
 0x7e0   :  { %v4062_v6 = vmul.f32 %v4041_v40, %v3999_v41 }
 0x7e1   :  { %v4089_v23 = vsel %vm350_vm2, %v4063_v56, 0.0 }
 0x7e2   :  { %v4090_v61 = vrot.slane %v4089_v23, 4  ;;  %v4082_v26 = vsel %vm350_vm2, %v4062_v6, 0.0 }
 0x7e3   :  { %v4083_v46 = vrot.slane %v4082_v26, 4 }
 0x7e4   :  { %v4091_v28 = vadd.f32 %v4090_v61, %v4089_v23 }
 0x7e5   :  { %v4084_v17 = vadd.f32 %v4083_v46, %v4082_v26 }
 0x7e6   :  { %v4092_v2 = vrot.slane %v4091_v28, 2 }
 0x7e7   :  { %v4085_v51 = vrot.slane %v4084_v17, 2 }
 0x7e8   :  { %v4093_v4 = vadd.f32 %v4092_v2, %v4091_v28 }
 0x7e9   :  { %v4086_v11 = vadd.f32 %v4085_v51, %v4084_v17 }
 0x7ea   :  { %v4094_v42 = vrot.slane %v4093_v4, 1 }
 0x7eb   :  { %v4087_v33 = vrot.slane %v4086_v11, 1 }
 0x7ec   :  { %v4095_v53 = vadd.f32 %v4094_v42, %v4093_v4 }
 0x7ed   :  { %v4088_v43 = vadd.f32 %v4087_v33, %v4086_v11 }
 0x7ef   :  { %v4133_v3 = vsel %vm3445_vm7, %v4088_v43, %v4132_v54 }
 0x7f0   :  { %v4134_v44 = vsel %vm3447_vm8, %v4095_v53, %v4133_v3 }
 0x7fe   :  { %v4355_v14 = vpop.f32.mrb[12].mxu1 }
 0x7ff   :  { %v4065_v1 = vmul.f32 %v4355_v14, %v4047_v36  ;;  %v4009_v15 = vpop.f32.mrb[13].mxu1 }
 0x800   :  { %v4064_v50 = vmul.f32 %v4045_v47, %v4009_v15 }
 0x801   :  { %v4103_v16 = vsel %vm350_vm2, %v4065_v1, 0.0 }
 0x802   :  { %v4104_v8 = vrot.slane %v4103_v16, 4  ;;  %v4096_v22 = vsel %vm350_vm2, %v4064_v50, 0.0 }
 0x803   :  { %v4097_v21 = vrot.slane %v4096_v22, 4 }
 0x804   :  { %v4105_v57 = vadd.f32 %v4104_v8, %v4103_v16 }
 0x805   :  { %v4098_v19 = vadd.f32 %v4097_v21, %v4096_v22 }
 0x806   :  { %v4106_v32 = vrot.slane %v4105_v57, 2 }
 0x807   :  { %v4099_v18 = vrot.slane %v4098_v19, 2 }
 0x808   :  { %v4107_v30 = vadd.f32 %v4106_v32, %v4105_v57 }
 0x809   :  { %v4100_v49 = vadd.f32 %v4099_v18, %v4098_v19 }
 0x80a   :  { %v4108_v55 = vrot.slane %v4107_v30, 1 }
 0x80b   :  { %v4101_v29 = vrot.slane %v4100_v49, 1 }
 0x80c   :  { %v4109_v27 = vadd.f32 %v4108_v55, %v4107_v30 }
 0x80d   :  { %v4102_v37 = vadd.f32 %v4101_v29, %v4100_v49 }
 0x80f   :  { %v4135_v34 = vsel %vm3449_vm9, %v4102_v37, %v4134_v44 }
 0x810   :  { %v4136_v45 = vsel %vm3451_vm10, %v4109_v27, %v4135_v34 }
 0x81e   :  { %v4358_v35 = vpop.f32.mrb[14].mxu1 }
 0x81f   :  { %v4067_v63 = vmul.f32 %v4358_v35, %v4051_v60  ;;  %v4019_v39 = vpop.f32.mrb[15].mxu1 }
 0x820   :  { %v4066_v12 = vmul.f32 %v4049_v58, %v4019_v39 }
 0x821   :  { %v4117_v38 = vsel %vm350_vm2, %v4067_v63, 0.0 }
 0x822   :  { %v4118_v13 = vrot.slane %v4117_v38, 4  ;;  %v4110_v0 = vsel %vm350_vm2, %v4066_v12, 0.0 }
 0x823   :  { %v4111_v62 = vrot.slane %v4110_v0, 4 }
 0x824   :  { %v4119_v52 = vadd.f32 %v4118_v13, %v4117_v38 }
 0x825   :  { %v4112_v24 = vadd.f32 %v4111_v62, %v4110_v0 }
 0x826   :  { %v4120_v25 = vrot.slane %v4119_v52, 2 }
 0x827   :  { %v4113_v59 = vrot.slane %v4112_v24, 2 }
 0x828   :  { %v4121_v20 = vadd.f32 %v4120_v25, %v4119_v52 }
 0x829   :  { %v4114_v10 = vadd.f32 %v4113_v59, %v4112_v24 }
 0x82a   :  { %v4122_v9 = vrot.slane %v4121_v20, 1 }
 0x82b   :  { %v4115_v5 = vrot.slane %v4114_v10, 1 }
 0x82c   :  { %v4123_v54 = vadd.f32 %v4122_v9, %v4121_v20 }
 0x82d   :  { %v4116_v31 = vadd.f32 %v4115_v5, %v4114_v10 }
 0x82f   :  { %v4137_v40 = vsel %vm3453_vm11, %v4116_v31, %v4136_v45 }
 0x830   :  { %v4138_v48 = vsel %vm3455_vm12, %v4123_v54, %v4137_v40 }
 0x831   :  { %4140 = vst.msk [vmem:[#allocation2] sm:$0xff] %vm350_vm2, %v4138_v48 }
 0x832   :  { %4441 = shalt.err (!%p4438_p4)
}
 0x833   :  { %s4442_s23 = scalar_lea.hbm %s5789_s6, 128 }
 0x834   :  { %p4443_p5 = scmp.ne.s32.totalorder %s5789_s6, %s4442_s23  ;;  %p4446_p6 = scmp.lt.u32.totalorder %s4442_s23, %s5789_s6 }
 0x836   :  { %p4448_p7 = pnand %p4446_p6, %p4443_p5 }
 0x838   :  { %4451 = shalt.err (!%p4448_p7)
}
 0x839   :  { %4150 = dma.vmem_to_hbm [thread:$0]  %s4148_s19, 128, %s5789_s6, [#allocation3]  }
 0x83a   :  { %4452 = dma.done.wait [#allocation3], 128  }
 0x83b   :  { %4453 = vsyncadd [#allocation3], 4294967168 }
 0x83c   :  { %4154 = vsyncpa [#allocation3], 1 }

</bundles_post_ra>
